<compile_context>
chip_gen: v7x
topology: tpu7x:2x2x1
jax: 0.10.0
libtpu: 0.0.40
codegen_flags: <defaults>
</compile_context>

<pallas_src>
import functools
import math

import jax
import jax.numpy as jnp
from jax.experimental import pallas as pl
from jax.experimental.pallas import tpu as pltpu


PARAM_ORDER = ("sa_wqkv", "sa_bqkv", "sa_wo", "sa_bo", "ln1_g", "ln1_b",
               "ca_wq", "ca_bq", "ca_wkv", "ca_bkv", "ca_wo", "ca_bo",
               "ln2_g", "ln2_b", "w1", "b1", "w2", "b2", "ln3_g", "ln3_b")


# ---------------------------------------------------------------------------
# Fused kernel: one grid step == (one encoder, one batch element), both layers
# ---------------------------------------------------------------------------

def _cross_decoder_kernel(
        tgt_ref, mema_ref, memb_ref,
        sa_wqkv_ref, sa_bqkv_ref, sa_wo_ref, sa_bo_ref, ln1_g_ref, ln1_b_ref,
        ca_wq_ref, ca_bq_ref, ca_wkv_ref, ca_bkv_ref, ca_wo_ref, ca_bo_ref,
        ln2_g_ref, ln2_b_ref,
        w1_ref, b1_ref, w2_ref, b2_ref, ln3_g_ref, ln3_b_ref,
        out_ref,
        *, num_heads, n_layers, eps, scale):
    S, D = out_ref.shape
    hd = D // num_heads
    bf16 = jnp.bfloat16

    x = tgt_ref[...].astype(jnp.float32)                        # (S, D)
    # cross-attention memory = cat(other_a, other_b) along seq — built in VMEM
    mem_bf = jnp.concatenate([mema_ref[...], memb_ref[...]],
                             axis=0).astype(bf16)                # (2S, D)

    def add_ln(a, b, g, beta):                                   # all f32
        z = a + b
        mu = jnp.mean(z, axis=-1, keepdims=True)
        c = z - mu
        var = jnp.mean(c * c, axis=-1, keepdims=True)
        return c * jax.lax.rsqrt(var + eps) * g + beta

    def attend(q, k_bf, v_bf, wo, bo):
        # q: (Sq, D) f32 (unscaled); k_bf, v_bf: (Sk, D) bf16; wo bf16; bo f32.
        def heads(t):                                            # -> (H, Sx, hd)
            return jnp.stack(
                [t[:, h * hd:(h + 1) * hd] for h in range(num_heads)], axis=0)
        qh = heads((q * scale).astype(bf16))
        kh = heads(k_bf)
        vh = heads(v_bf)
        s = jnp.einsum("hqd,hkd->hqk", qh, kh,
                       preferred_element_type=jnp.float32)       # f32 scores
        s = s - jnp.max(s, axis=-1, keepdims=True)
        p = jnp.exp(s)
        p = p / jnp.sum(p, axis=-1, keepdims=True)               # exact softmax
        o = jnp.einsum("hqk,hkd->hqd", p.astype(bf16), vh,
                       preferred_element_type=jnp.float32)       # (H, Sq, hd)
        o = jnp.concatenate([o[h] for h in range(num_heads)], axis=-1)
        return jnp.dot(o.astype(bf16), wo,
                       preferred_element_type=jnp.float32) + bo

    for l in range(n_layers):        # static: both layers' weights are resident
        # ---- self attention (fused QKV projection) ----
        qkv = jnp.dot(x.astype(bf16), sa_wqkv_ref[l],
                      preferred_element_type=jnp.float32) + sa_bqkv_ref[l]
        sa = attend(qkv[:, :D],
                    qkv[:, D:2 * D].astype(bf16),
                    qkv[:, 2 * D:].astype(bf16),
                    sa_wo_ref[l], sa_bo_ref[l])
        x = add_ln(x, sa, ln1_g_ref[l], ln1_b_ref[l])

        # ---- cross attention over cat(other_a, other_b) (fused KV proj) ----
        q = jnp.dot(x.astype(bf16), ca_wq_ref[l],
                    preferred_element_type=jnp.float32) + ca_bq_ref[l]
        kv = jnp.dot(mem_bf, ca_wkv_ref[l],
                     preferred_element_type=jnp.float32) + ca_bkv_ref[l]
        ca = attend(q, kv[:, :D].astype(bf16), kv[:, D:].astype(bf16),
                    ca_wo_ref[l], ca_bo_ref[l])
        x = add_ln(x, ca, ln2_g_ref[l], ln2_b_ref[l])

        # ---- feed forward (relu) ----
        h = jnp.dot(x.astype(bf16), w1_ref[l],
                    preferred_element_type=jnp.float32) + b1_ref[l]
        h = jnp.maximum(h, 0.0)
        ff = jnp.dot(h.astype(bf16), w2_ref[l],
                     preferred_element_type=jnp.float32) + b2_ref[l]
        x = add_ln(x, ff, ln3_g_ref[l], ln3_b_ref[l])

    out_ref[...] = x.astype(out_ref.dtype)


# ---------------------------------------------------------------------------
# Wrapper: one pallas_call for the whole CrossTransformerDecoder forward
# ---------------------------------------------------------------------------

@functools.partial(jax.jit, static_argnames=("num_heads",))
def cross_transformer_decoder(x1, x2, x3, params, *, num_heads):
    B, S, D = x1.shape
    n_layers = params["sa_wo"].shape[1]
    assert D % num_heads == 0, "d_model must be divisible by n_heads"
    assert S % 8 == 0, "seq length must be a multiple of 8 (output tiling)"

    x_all = jnp.stack([x1, x2, x3], axis=0)              # (3, B, S, D), one copy

    # encoder e attends over cat(other_a, other_b):
    #   e=0 -> (x2, x3), e=1 -> (x1, x3), e=2 -> (x1, x2)
    x_block = (None, None, S, D)
    tgt_spec = pl.BlockSpec(x_block, lambda e, b: (e, b, 0, 0))
    mema_spec = pl.BlockSpec(x_block,
                             lambda e, b: (jnp.where(e == 0, 1, 0), b, 0, 0))
    memb_spec = pl.BlockSpec(x_block,
                             lambda e, b: (jnp.where(e == 2, 1, 2), b, 0, 0))

    def w_spec(name):
        shape = params[name].shape                       # (3, n_layers, rows, cols)
        # batch-independent index map -> weight block reused across b steps
        return pl.BlockSpec((None,) + tuple(shape[1:]), lambda e, b: (e, 0, 0, 0))

    in_specs = [tgt_spec, mema_spec, memb_spec] + [w_spec(n) for n in PARAM_ORDER]
    out_spec = pl.BlockSpec((None, S, D), lambda e, b: (b, e, 0))

    # VMEM limit from actual per-encoder weight block bytes x2 (double buffer)
    # plus margin for input/output blocks and in-kernel activations.
    weight_block_bytes = sum(
        (params[n].size // 3) * params[n].dtype.itemsize for n in PARAM_ORDER)
    vmem_limit = int(min(100 * 2 ** 20,
                         max(32 * 2 ** 20,
                             2 * weight_block_bytes + 16 * 2 ** 20)))

    kernel = functools.partial(
        _cross_decoder_kernel, num_heads=num_heads, n_layers=n_layers,
        eps=1e-5, scale=1.0 / math.sqrt(D // num_heads))

    # TODO(synk): for much larger n_layers / weights (v7x 64 MiB VMEM), move the
    # layer loop into an "arbitrary" grid axis and carry x in VMEM scratch so
    # only one layer's weights are resident/double-buffered at a time.
    return pl.pallas_call(
        kernel,
        out_shape=jax.ShapeDtypeStruct((B, 3 * S, D), jnp.float32),
        grid=(3, B),
        in_specs=in_specs,
        out_specs=out_spec,
        compiler_params=pltpu.CompilerParams(
            dimension_semantics=("parallel", "parallel"),
            vmem_limit_bytes=vmem_limit),
    )(x_all, x_all, x_all, *[params[n] for n in PARAM_ORDER])


# ---------------------------------------------------------------------------
# Deterministic parameter init (nn.TransformerDecoderLayer layout), stored
# pre-transposed (in, out) so the kernel does x @ W; weights bf16, biases/LN f32.
# ---------------------------------------------------------------------------

def init_cross_decoder_params(key, d_model, d_ff, n_layers, n_heads,
                              w_dtype=jnp.bfloat16):
    assert d_model % n_heads == 0
    D, F = d_model, d_ff
    std = 0.05

    def rnd(k, shape, dtype=jnp.float32):
        return (jax.random.normal(k, shape, jnp.float32) * std).astype(dtype)

    def one_layer(k):
        ks = jax.random.split(k, 14)
        ln_g = jnp.ones((1, D), jnp.float32)
        ln_b = jnp.zeros((1, D), jnp.float32)
        return dict(
            sa_wqkv=rnd(ks[0], (D, 3 * D), w_dtype),   # [Wq^T | Wk^T | Wv^T]
            sa_bqkv=rnd(ks[1], (1, 3 * D)),
            sa_wo=rnd(ks[2], (D, D), w_dtype),
            sa_bo=rnd(ks[3], (1, D)),
            ln1_g=ln_g, ln1_b=ln_b,
            ca_wq=rnd(ks[4], (D, D), w_dtype),
            ca_bq=rnd(ks[5], (1, D)),
            ca_wkv=rnd(ks[6], (D, 2 * D), w_dtype),    # [Wk^T | Wv^T]
            ca_bkv=rnd(ks[7], (1, 2 * D)),
            ca_wo=rnd(ks[8], (D, D), w_dtype),
            ca_bo=rnd(ks[9], (1, D)),
            ln2_g=ln_g, ln2_b=ln_b,
            w1=rnd(ks[10], (D, F), w_dtype),
            b1=rnd(ks[11], (1, F)),
            w2=rnd(ks[12], (F, D), w_dtype),
            b2=rnd(ks[13], (1, D)),
            ln3_g=ln_g, ln3_b=ln_b,
        )

    enc_layers = []
    for _ in range(3):
        key, sub = jax.random.split(key)
        enc_layers.append([one_layer(k) for k in jax.random.split(sub, n_layers)])

    params = {}
    for name in PARAM_ORDER:
        params[name] = jnp.stack(
            [jnp.stack([enc_layers[e][l][name] for l in range(n_layers)], axis=0)
             for e in range(3)], axis=0)               # (3, n_layers, rows, cols)
    return params


# ---------------------------------------------------------------------------

if __name__ == "__main__":
    B, S, D = 2, 8, 32           # small demo shapes (module default dim_in=300)
    N_HEADS, N_LAYERS = 2, 2
    D_FF = 2048                  # nn.TransformerDecoderLayer default dim_feedforward

    key = jax.random.PRNGKey(0)
    kp, k1, k2, k3 = jax.random.split(key, 4)
    params = init_cross_decoder_params(kp, D, D_FF, N_LAYERS, N_HEADS)

    x1 = jax.random.normal(k1, (B, S, D), jnp.float32)
    x2 = jax.random.normal(k2, (B, S, D), jnp.float32)
    x3 = jax.random.normal(k3, (B, S, D), jnp.float32)

    out = cross_transformer_decoder(x1, x2, x3, params, num_heads=N_HEADS)
    out = jax.block_until_ready(out)

    assert out.shape == (B, 3 * S, D), out.shape
    assert bool(jnp.all(jnp.isfinite(out)))
    # TODO(synk): dropout layers (p=0.1) are identity in eval mode; training-mode
    # dropout / key-padding masks (None in this forward) are not implemented.
    print("KERNEL_OK")
</pallas_src>

<mosaic_0001>
module attributes {stable_mosaic.version = 11 : i64} {
  func.func @_cross_decoder_kernel(%arg0: i32, %arg1: i32, %arg2: memref<1x1x8x32xf32, #tpu.memory_space<vmem>>, %arg3: memref<1x1x8x32xf32, #tpu.memory_space<vmem>>, %arg4: memref<1x1x8x32xf32, #tpu.memory_space<vmem>>, %arg5: memref<1x2x32x96xbf16, #tpu.memory_space<vmem>>, %arg6: memref<1x2x1x96xf32, #tpu.memory_space<vmem>>, %arg7: memref<1x2x32x32xbf16, #tpu.memory_space<vmem>>, %arg8: memref<1x2x1x32xf32, #tpu.memory_space<vmem>>, %arg9: memref<1x2x1x32xf32, #tpu.memory_space<vmem>>, %arg10: memref<1x2x1x32xf32, #tpu.memory_space<vmem>>, %arg11: memref<1x2x32x32xbf16, #tpu.memory_space<vmem>>, %arg12: memref<1x2x1x32xf32, #tpu.memory_space<vmem>>, %arg13: memref<1x2x32x64xbf16, #tpu.memory_space<vmem>>, %arg14: memref<1x2x1x64xf32, #tpu.memory_space<vmem>>, %arg15: memref<1x2x32x32xbf16, #tpu.memory_space<vmem>>, %arg16: memref<1x2x1x32xf32, #tpu.memory_space<vmem>>, %arg17: memref<1x2x1x32xf32, #tpu.memory_space<vmem>>, %arg18: memref<1x2x1x32xf32, #tpu.memory_space<vmem>>, %arg19: memref<1x2x32x2048xbf16, #tpu.memory_space<vmem>>, %arg20: memref<1x2x1x2048xf32, #tpu.memory_space<vmem>>, %arg21: memref<1x2x2048x32xbf16, #tpu.memory_space<vmem>>, %arg22: memref<1x2x1x32xf32, #tpu.memory_space<vmem>>, %arg23: memref<1x2x1x32xf32, #tpu.memory_space<vmem>>, %arg24: memref<1x2x1x32xf32, #tpu.memory_space<vmem>>, %arg25: memref<1x8x32xf32, #tpu.memory_space<vmem>>) attributes {dimension_semantics = [#tpu.dimension_semantics<parallel>, #tpu.dimension_semantics<parallel>], iteration_bounds = array<i64: 3, 2>, scalar_prefetch = 0 : i64, scratch_operands = 0 : i64, tpu.core_type = #tpu.core_type<tc>, window_params = [{transform_indices = @transform_0, window_bounds = array<i64: 1, 1, 8, 32>}, {transform_indices = @transform_1, window_bounds = array<i64: 1, 1, 8, 32>}, {transform_indices = @transform_2, window_bounds = array<i64: 1, 1, 8, 32>}, {transform_indices = @transform_3, window_bounds = array<i64: 1, 2, 32, 96>}, {transform_indices = @transform_4, window_bounds = array<i64: 1, 2, 1, 96>}, {transform_indices = @transform_5, window_bounds = array<i64: 1, 2, 32, 32>}, {transform_indices = @transform_6, window_bounds = array<i64: 1, 2, 1, 32>}, {transform_indices = @transform_7, window_bounds = array<i64: 1, 2, 1, 32>}, {transform_indices = @transform_8, window_bounds = array<i64: 1, 2, 1, 32>}, {transform_indices = @transform_9, window_bounds = array<i64: 1, 2, 32, 32>}, {transform_indices = @transform_10, window_bounds = array<i64: 1, 2, 1, 32>}, {transform_indices = @transform_11, window_bounds = array<i64: 1, 2, 32, 64>}, {transform_indices = @transform_12, window_bounds = array<i64: 1, 2, 1, 64>}, {transform_indices = @transform_13, window_bounds = array<i64: 1, 2, 32, 32>}, {transform_indices = @transform_14, window_bounds = array<i64: 1, 2, 1, 32>}, {transform_indices = @transform_15, window_bounds = array<i64: 1, 2, 1, 32>}, {transform_indices = @transform_16, window_bounds = array<i64: 1, 2, 1, 32>}, {transform_indices = @transform_17, window_bounds = array<i64: 1, 2, 32, 2048>}, {transform_indices = @transform_18, window_bounds = array<i64: 1, 2, 1, 2048>}, {transform_indices = @transform_19, window_bounds = array<i64: 1, 2, 2048, 32>}, {transform_indices = @transform_20, window_bounds = array<i64: 1, 2, 1, 32>}, {transform_indices = @transform_21, window_bounds = array<i64: 1, 2, 1, 32>}, {transform_indices = @transform_22, window_bounds = array<i64: 1, 2, 1, 32>}, {transform_indices = @transform_23, window_bounds = array<i64: 1, 8, 32>}]} {
    %c0 = arith.constant 0 : index
    %c0_0 = arith.constant 0 : index
    %c0_1 = arith.constant 0 : index
    %c0_2 = arith.constant 0 : index
    %0 = vector.load %arg2[%c0, %c0_0, %c0_1, %c0_2] : memref<1x1x8x32xf32, #tpu.memory_space<vmem>>, vector<1x1x8x32xf32>
    %1 = vector.shape_cast %0 : vector<1x1x8x32xf32> to vector<8x32xf32>
    %c0_3 = arith.constant 0 : index
    %c0_4 = arith.constant 0 : index
    %c0_5 = arith.constant 0 : index
    %c0_6 = arith.constant 0 : index
    %2 = vector.load %arg3[%c0_3, %c0_4, %c0_5, %c0_6] : memref<1x1x8x32xf32, #tpu.memory_space<vmem>>, vector<1x1x8x32xf32>
    %3 = vector.shape_cast %2 : vector<1x1x8x32xf32> to vector<8x32xf32>
    %c0_7 = arith.constant 0 : index
    %c0_8 = arith.constant 0 : index
    %c0_9 = arith.constant 0 : index
    %c0_10 = arith.constant 0 : index
    %4 = vector.load %arg4[%c0_7, %c0_8, %c0_9, %c0_10] : memref<1x1x8x32xf32, #tpu.memory_space<vmem>>, vector<1x1x8x32xf32>
    %5 = vector.shape_cast %4 : vector<1x1x8x32xf32> to vector<8x32xf32>
    %6 = tpu.concatenate %3, %5 in 0 : vector<8x32xf32>, vector<8x32xf32> -> vector<16x32xf32>
    %7 = arith.truncf %6 : vector<16x32xf32> to vector<16x32xbf16>
    %8 = arith.truncf %1 : vector<8x32xf32> to vector<8x32xbf16>
    %c0_11 = arith.constant 0 : index
    %c0_12 = arith.constant 0 : index
    %c0_13 = arith.constant 0 : index
    %c0_14 = arith.constant 0 : index
    %9 = vector.load %arg5[%c0_11, %c0_12, %c0_13, %c0_14] : memref<1x2x32x96xbf16, #tpu.memory_space<vmem>>, vector<1x1x32x96xbf16>
    %10 = vector.shape_cast %9 : vector<1x1x32x96xbf16> to vector<32x96xbf16>
    %cst = arith.constant dense<0.000000e+00> : vector<8x96xf32>
    %11 = tpu.matmul %8, %10, %cst {dimension_numbers = #tpu.dot_dimension_numbers<[1], [0], [0], [1], [0, 0, 1, 1], [], []>} : vector<8x32xbf16>, vector<32x96xbf16>, vector<8x96xf32> -> vector<8x96xf32>
    %c0_15 = arith.constant 0 : index
    %c0_16 = arith.constant 0 : index
    %c0_17 = arith.constant 0 : index
    %c0_18 = arith.constant 0 : index
    %12 = vector.load %arg6[%c0_15, %c0_16, %c0_17, %c0_18] : memref<1x2x1x96xf32, #tpu.memory_space<vmem>>, vector<1x1x1x96xf32>
    %13 = vector.shape_cast %12 : vector<1x1x1x96xf32> to vector<1x96xf32>
    %14 = vector.broadcast %13 : vector<1x96xf32> to vector<8x96xf32>
    %15 = arith.addf %11, %14 : vector<8x96xf32>
    %16 = vector.extract_strided_slice %15 {offsets = [0, 0], sizes = [8, 32], strides = [1, 1]} : vector<8x96xf32> to vector<8x32xf32>
    %17 = vector.extract_strided_slice %15 {offsets = [0, 32], sizes = [8, 32], strides = [1, 1]} : vector<8x96xf32> to vector<8x32xf32>
    %18 = arith.truncf %17 : vector<8x32xf32> to vector<8x32xbf16>
    %19 = vector.extract_strided_slice %15 {offsets = [0, 64], sizes = [8, 32], strides = [1, 1]} : vector<8x96xf32> to vector<8x32xf32>
    %20 = arith.truncf %19 : vector<8x32xf32> to vector<8x32xbf16>
    %c0_19 = arith.constant 0 : index
    %c0_20 = arith.constant 0 : index
    %c0_21 = arith.constant 0 : index
    %c0_22 = arith.constant 0 : index
    %21 = vector.load %arg7[%c0_19, %c0_20, %c0_21, %c0_22] : memref<1x2x32x32xbf16, #tpu.memory_space<vmem>>, vector<1x1x32x32xbf16>
    %22 = vector.shape_cast %21 : vector<1x1x32x32xbf16> to vector<32x32xbf16>
    %c0_23 = arith.constant 0 : index
    %c0_24 = arith.constant 0 : index
    %c0_25 = arith.constant 0 : index
    %c0_26 = arith.constant 0 : index
    %23 = vector.load %arg8[%c0_23, %c0_24, %c0_25, %c0_26] : memref<1x2x1x32xf32, #tpu.memory_space<vmem>>, vector<1x1x1x32xf32>
    %24 = vector.shape_cast %23 : vector<1x1x1x32xf32> to vector<1x32xf32>
    %cst_27 = arith.constant 2.500000e-01 : f32
    %25 = vector.broadcast %cst_27 : f32 to vector<8x32xf32>
    %26 = arith.mulf %16, %25 : vector<8x32xf32>
    %27 = arith.truncf %26 : vector<8x32xf32> to vector<8x32xbf16>
    %28 = vector.extract_strided_slice %27 {offsets = [0, 0], sizes = [8, 16], strides = [1, 1]} : vector<8x32xbf16> to vector<8x16xbf16>
    %29 = vector.extract_strided_slice %27 {offsets = [0, 16], sizes = [8, 16], strides = [1, 1]} : vector<8x32xbf16> to vector<8x16xbf16>
    %30 = vector.shape_cast %28 : vector<8x16xbf16> to vector<1x8x16xbf16>
    %31 = vector.shape_cast %29 : vector<8x16xbf16> to vector<1x8x16xbf16>
    %32 = tpu.concatenate %30, %31 in 0 : vector<1x8x16xbf16>, vector<1x8x16xbf16> -> vector<2x8x16xbf16>
    %33 = vector.extract_strided_slice %18 {offsets = [0, 0], sizes = [8, 16], strides = [1, 1]} : vector<8x32xbf16> to vector<8x16xbf16>
    %34 = vector.extract_strided_slice %18 {offsets = [0, 16], sizes = [8, 16], strides = [1, 1]} : vector<8x32xbf16> to vector<8x16xbf16>
    %35 = vector.shape_cast %33 : vector<8x16xbf16> to vector<1x8x16xbf16>
    %36 = vector.shape_cast %34 : vector<8x16xbf16> to vector<1x8x16xbf16>
    %37 = tpu.concatenate %35, %36 in 0 : vector<1x8x16xbf16>, vector<1x8x16xbf16> -> vector<2x8x16xbf16>
    %38 = vector.extract_strided_slice %20 {offsets = [0, 0], sizes = [8, 16], strides = [1, 1]} : vector<8x32xbf16> to vector<8x16xbf16>
    %39 = vector.extract_strided_slice %20 {offsets = [0, 16], sizes = [8, 16], strides = [1, 1]} : vector<8x32xbf16> to vector<8x16xbf16>
    %40 = vector.shape_cast %38 : vector<8x16xbf16> to vector<1x8x16xbf16>
    %41 = vector.shape_cast %39 : vector<8x16xbf16> to vector<1x8x16xbf16>
    %42 = tpu.concatenate %40, %41 in 0 : vector<1x8x16xbf16>, vector<1x8x16xbf16> -> vector<2x8x16xbf16>
    "tpu.trace_start"() <{level = 10 : i32, message = "hqd,hkd->hqk"}> : () -> ()
    %cst_28 = arith.constant dense<0.000000e+00> : vector<2x8x8xf32>
    %43 = tpu.matmul %32, %37, %cst_28 {dimension_numbers = #tpu.dot_dimension_numbers<[2], [2], [1], [1], [0, 0, 0, 1, 1, 1], [0], [0]>} : vector<2x8x16xbf16>, vector<2x8x16xbf16>, vector<2x8x8xf32> -> vector<2x8x8xf32>
    "tpu.trace_stop"() : () -> ()
    %cst_29 = arith.constant dense<0xFF800000> : vector<2x8xf32>
    %44 = vector.multi_reduction <maximumf>, %43, %cst_29 [2] : vector<2x8x8xf32> to vector<2x8xf32>
    %45 = vector.shape_cast %44 : vector<2x8xf32> to vector<2x8x1xf32>
    %46 = vector.broadcast %45 : vector<2x8x1xf32> to vector<2x8x8xf32>
    %47 = arith.subf %43, %46 : vector<2x8x8xf32>
    %48 = math.exp %47 : vector<2x8x8xf32>
    %cst_30 = arith.constant dense<0.000000e+00> : vector<2x8xf32>
    %49 = vector.multi_reduction <add>, %48, %cst_30 [2] : vector<2x8x8xf32> to vector<2x8xf32>
    %50 = vector.shape_cast %49 : vector<2x8xf32> to vector<2x8x1xf32>
    %51 = vector.broadcast %50 : vector<2x8x1xf32> to vector<2x8x8xf32>
    %52 = arith.divf %48, %51 : vector<2x8x8xf32>
    %53 = arith.truncf %52 : vector<2x8x8xf32> to vector<2x8x8xbf16>
    "tpu.trace_start"() <{level = 10 : i32, message = "hqk,hkd->hqd"}> : () -> ()
    %cst_31 = arith.constant dense<0.000000e+00> : vector<2x8x16xf32>
    %54 = tpu.matmul %53, %42, %cst_31 {dimension_numbers = #tpu.dot_dimension_numbers<[2], [1], [1], [2], [0, 0, 0, 1, 1, 2], [0], [0]>} : vector<2x8x8xbf16>, vector<2x8x16xbf16>, vector<2x8x16xf32> -> vector<2x8x16xf32>
    "tpu.trace_stop"() : () -> ()
    %55 = vector.extract_strided_slice %54 {offsets = [0, 0, 0], sizes = [1, 8, 16], strides = [1, 1, 1]} : vector<2x8x16xf32> to vector<1x8x16xf32>
    %56 = vector.shape_cast %55 : vector<1x8x16xf32> to vector<8x16xf32>
    %57 = vector.extract_strided_slice %54 {offsets = [1, 0, 0], sizes = [1, 8, 16], strides = [1, 1, 1]} : vector<2x8x16xf32> to vector<1x8x16xf32>
    %58 = vector.shape_cast %57 : vector<1x8x16xf32> to vector<8x16xf32>
    %59 = tpu.concatenate %56, %58 in 1 : vector<8x16xf32>, vector<8x16xf32> -> vector<8x32xf32>
    %60 = arith.truncf %59 : vector<8x32xf32> to vector<8x32xbf16>
    %cst_32 = arith.constant dense<0.000000e+00> : vector<8x32xf32>
    %61 = tpu.matmul %60, %22, %cst_32 {dimension_numbers = #tpu.dot_dimension_numbers<[1], [0], [0], [1], [0, 0, 1, 1], [], []>} : vector<8x32xbf16>, vector<32x32xbf16>, vector<8x32xf32> -> vector<8x32xf32>
    %62 = vector.broadcast %24 : vector<1x32xf32> to vector<8x32xf32>
    %63 = arith.addf %61, %62 : vector<8x32xf32>
    %c0_33 = arith.constant 0 : index
    %c0_34 = arith.constant 0 : index
    %c0_35 = arith.constant 0 : index
    %c0_36 = arith.constant 0 : index
    %64 = vector.load %arg9[%c0_33, %c0_34, %c0_35, %c0_36] : memref<1x2x1x32xf32, #tpu.memory_space<vmem>>, vector<1x1x1x32xf32>
    %65 = vector.shape_cast %64 : vector<1x1x1x32xf32> to vector<1x32xf32>
    %c0_37 = arith.constant 0 : index
    %c0_38 = arith.constant 0 : index
    %c0_39 = arith.constant 0 : index
    %c0_40 = arith.constant 0 : index
    %66 = vector.load %arg10[%c0_37, %c0_38, %c0_39, %c0_40] : memref<1x2x1x32xf32, #tpu.memory_space<vmem>>, vector<1x1x1x32xf32>
    %67 = vector.shape_cast %66 : vector<1x1x1x32xf32> to vector<1x32xf32>
    %68 = arith.addf %1, %63 : vector<8x32xf32>
    %cst_41 = arith.constant dense<0.000000e+00> : vector<8xf32>
    %69 = vector.multi_reduction <add>, %68, %cst_41 [1] : vector<8x32xf32> to vector<8xf32>
    %70 = vector.shape_cast %69 : vector<8xf32> to vector<8x1xf32>
    %cst_42 = arith.constant 3.200000e+01 : f32
    %71 = vector.broadcast %cst_42 : f32 to vector<8x1xf32>
    %72 = arith.divf %70, %71 : vector<8x1xf32>
    %73 = vector.broadcast %72 : vector<8x1xf32> to vector<8x32xf32>
    %74 = arith.subf %68, %73 : vector<8x32xf32>
    %75 = arith.mulf %74, %74 : vector<8x32xf32>
    %cst_43 = arith.constant dense<0.000000e+00> : vector<8xf32>
    %76 = vector.multi_reduction <add>, %75, %cst_43 [1] : vector<8x32xf32> to vector<8xf32>
    %77 = vector.shape_cast %76 : vector<8xf32> to vector<8x1xf32>
    %cst_44 = arith.constant 3.200000e+01 : f32
    %78 = vector.broadcast %cst_44 : f32 to vector<8x1xf32>
    %79 = arith.divf %77, %78 : vector<8x1xf32>
    %cst_45 = arith.constant 9.99999974E-6 : f32
    %80 = vector.broadcast %cst_45 : f32 to vector<8x1xf32>
    %81 = arith.addf %79, %80 : vector<8x1xf32>
    %82 = math.rsqrt %81 : vector<8x1xf32>
    %83 = vector.broadcast %82 : vector<8x1xf32> to vector<8x32xf32>
    %84 = arith.mulf %74, %83 : vector<8x32xf32>
    %85 = vector.broadcast %65 : vector<1x32xf32> to vector<8x32xf32>
    %86 = arith.mulf %84, %85 : vector<8x32xf32>
    %87 = vector.broadcast %67 : vector<1x32xf32> to vector<8x32xf32>
    %88 = arith.addf %86, %87 : vector<8x32xf32>
    %89 = arith.truncf %88 : vector<8x32xf32> to vector<8x32xbf16>
    %c0_46 = arith.constant 0 : index
    %c0_47 = arith.constant 0 : index
    %c0_48 = arith.constant 0 : index
    %c0_49 = arith.constant 0 : index
    %90 = vector.load %arg11[%c0_46, %c0_47, %c0_48, %c0_49] : memref<1x2x32x32xbf16, #tpu.memory_space<vmem>>, vector<1x1x32x32xbf16>
    %91 = vector.shape_cast %90 : vector<1x1x32x32xbf16> to vector<32x32xbf16>
    %cst_50 = arith.constant dense<0.000000e+00> : vector<8x32xf32>
    %92 = tpu.matmul %89, %91, %cst_50 {dimension_numbers = #tpu.dot_dimension_numbers<[1], [0], [0], [1], [0, 0, 1, 1], [], []>} : vector<8x32xbf16>, vector<32x32xbf16>, vector<8x32xf32> -> vector<8x32xf32>
    %c0_51 = arith.constant 0 : index
    %c0_52 = arith.constant 0 : index
    %c0_53 = arith.constant 0 : index
    %c0_54 = arith.constant 0 : index
    %93 = vector.load %arg12[%c0_51, %c0_52, %c0_53, %c0_54] : memref<1x2x1x32xf32, #tpu.memory_space<vmem>>, vector<1x1x1x32xf32>
    %94 = vector.shape_cast %93 : vector<1x1x1x32xf32> to vector<1x32xf32>
    %95 = vector.broadcast %94 : vector<1x32xf32> to vector<8x32xf32>
    %96 = arith.addf %92, %95 : vector<8x32xf32>
    %c0_55 = arith.constant 0 : index
    %c0_56 = arith.constant 0 : index
    %c0_57 = arith.constant 0 : index
    %c0_58 = arith.constant 0 : index
    %97 = vector.load %arg13[%c0_55, %c0_56, %c0_57, %c0_58] : memref<1x2x32x64xbf16, #tpu.memory_space<vmem>>, vector<1x1x32x64xbf16>
    %98 = vector.shape_cast %97 : vector<1x1x32x64xbf16> to vector<32x64xbf16>
    %cst_59 = arith.constant dense<0.000000e+00> : vector<16x64xf32>
    %99 = tpu.matmul %7, %98, %cst_59 {dimension_numbers = #tpu.dot_dimension_numbers<[1], [0], [0], [1], [0, 0, 1, 1], [], []>} : vector<16x32xbf16>, vector<32x64xbf16>, vector<16x64xf32> -> vector<16x64xf32>
    %c0_60 = arith.constant 0 : index
    %c0_61 = arith.constant 0 : index
    %c0_62 = arith.constant 0 : index
    %c0_63 = arith.constant 0 : index
    %100 = vector.load %arg14[%c0_60, %c0_61, %c0_62, %c0_63] : memref<1x2x1x64xf32, #tpu.memory_space<vmem>>, vector<1x1x1x64xf32>
    %101 = vector.shape_cast %100 : vector<1x1x1x64xf32> to vector<1x64xf32>
    %102 = vector.broadcast %101 : vector<1x64xf32> to vector<16x64xf32>
    %103 = arith.addf %99, %102 : vector<16x64xf32>
    %104 = vector.extract_strided_slice %103 {offsets = [0, 0], sizes = [16, 32], strides = [1, 1]} : vector<16x64xf32> to vector<16x32xf32>
    %105 = arith.truncf %104 : vector<16x32xf32> to vector<16x32xbf16>
    %106 = vector.extract_strided_slice %103 {offsets = [0, 32], sizes = [16, 32], strides = [1, 1]} : vector<16x64xf32> to vector<16x32xf32>
    %107 = arith.truncf %106 : vector<16x32xf32> to vector<16x32xbf16>
    %c0_64 = arith.constant 0 : index
    %c0_65 = arith.constant 0 : index
    %c0_66 = arith.constant 0 : index
    %c0_67 = arith.constant 0 : index
    %108 = vector.load %arg15[%c0_64, %c0_65, %c0_66, %c0_67] : memref<1x2x32x32xbf16, #tpu.memory_space<vmem>>, vector<1x1x32x32xbf16>
    %109 = vector.shape_cast %108 : vector<1x1x32x32xbf16> to vector<32x32xbf16>
    %c0_68 = arith.constant 0 : index
    %c0_69 = arith.constant 0 : index
    %c0_70 = arith.constant 0 : index
    %c0_71 = arith.constant 0 : index
    %110 = vector.load %arg16[%c0_68, %c0_69, %c0_70, %c0_71] : memref<1x2x1x32xf32, #tpu.memory_space<vmem>>, vector<1x1x1x32xf32>
    %111 = vector.shape_cast %110 : vector<1x1x1x32xf32> to vector<1x32xf32>
    %cst_72 = arith.constant 2.500000e-01 : f32
    %112 = vector.broadcast %cst_72 : f32 to vector<8x32xf32>
    %113 = arith.mulf %96, %112 : vector<8x32xf32>
    %114 = arith.truncf %113 : vector<8x32xf32> to vector<8x32xbf16>
    %115 = vector.extract_strided_slice %114 {offsets = [0, 0], sizes = [8, 16], strides = [1, 1]} : vector<8x32xbf16> to vector<8x16xbf16>
    %116 = vector.extract_strided_slice %114 {offsets = [0, 16], sizes = [8, 16], strides = [1, 1]} : vector<8x32xbf16> to vector<8x16xbf16>
    %117 = vector.shape_cast %115 : vector<8x16xbf16> to vector<1x8x16xbf16>
    %118 = vector.shape_cast %116 : vector<8x16xbf16> to vector<1x8x16xbf16>
    %119 = tpu.concatenate %117, %118 in 0 : vector<1x8x16xbf16>, vector<1x8x16xbf16> -> vector<2x8x16xbf16>
    %120 = vector.extract_strided_slice %105 {offsets = [0, 0], sizes = [16, 16], strides = [1, 1]} : vector<16x32xbf16> to vector<16x16xbf16>
    %121 = vector.extract_strided_slice %105 {offsets = [0, 16], sizes = [16, 16], strides = [1, 1]} : vector<16x32xbf16> to vector<16x16xbf16>
    %122 = vector.shape_cast %120 : vector<16x16xbf16> to vector<1x16x16xbf16>
    %123 = vector.shape_cast %121 : vector<16x16xbf16> to vector<1x16x16xbf16>
    %124 = tpu.concatenate %122, %123 in 0 : vector<1x16x16xbf16>, vector<1x16x16xbf16> -> vector<2x16x16xbf16>
    %125 = vector.extract_strided_slice %107 {offsets = [0, 0], sizes = [16, 16], strides = [1, 1]} : vector<16x32xbf16> to vector<16x16xbf16>
    %126 = vector.extract_strided_slice %107 {offsets = [0, 16], sizes = [16, 16], strides = [1, 1]} : vector<16x32xbf16> to vector<16x16xbf16>
    %127 = vector.shape_cast %125 : vector<16x16xbf16> to vector<1x16x16xbf16>
    %128 = vector.shape_cast %126 : vector<16x16xbf16> to vector<1x16x16xbf16>
    %129 = tpu.concatenate %127, %128 in 0 : vector<1x16x16xbf16>, vector<1x16x16xbf16> -> vector<2x16x16xbf16>
    "tpu.trace_start"() <{level = 10 : i32, message = "hqd,hkd->hqk"}> : () -> ()
    %cst_73 = arith.constant dense<0.000000e+00> : vector<2x8x16xf32>
    %130 = tpu.matmul %119, %124, %cst_73 {dimension_numbers = #tpu.dot_dimension_numbers<[2], [2], [1], [1], [0, 0, 0, 1, 1, 1], [0], [0]>} : vector<2x8x16xbf16>, vector<2x16x16xbf16>, vector<2x8x16xf32> -> vector<2x8x16xf32>
    "tpu.trace_stop"() : () -> ()
    %cst_74 = arith.constant dense<0xFF800000> : vector<2x8xf32>
    %131 = vector.multi_reduction <maximumf>, %130, %cst_74 [2] : vector<2x8x16xf32> to vector<2x8xf32>
    %132 = vector.shape_cast %131 : vector<2x8xf32> to vector<2x8x1xf32>
    %133 = vector.broadcast %132 : vector<2x8x1xf32> to vector<2x8x16xf32>
    %134 = arith.subf %130, %133 : vector<2x8x16xf32>
    %135 = math.exp %134 : vector<2x8x16xf32>
    %cst_75 = arith.constant dense<0.000000e+00> : vector<2x8xf32>
    %136 = vector.multi_reduction <add>, %135, %cst_75 [2] : vector<2x8x16xf32> to vector<2x8xf32>
    %137 = vector.shape_cast %136 : vector<2x8xf32> to vector<2x8x1xf32>
    %138 = vector.broadcast %137 : vector<2x8x1xf32> to vector<2x8x16xf32>
    %139 = arith.divf %135, %138 : vector<2x8x16xf32>
    %140 = arith.truncf %139 : vector<2x8x16xf32> to vector<2x8x16xbf16>
    "tpu.trace_start"() <{level = 10 : i32, message = "hqk,hkd->hqd"}> : () -> ()
    %cst_76 = arith.constant dense<0.000000e+00> : vector<2x8x16xf32>
    %141 = tpu.matmul %140, %129, %cst_76 {dimension_numbers = #tpu.dot_dimension_numbers<[2], [1], [1], [2], [0, 0, 0, 1, 1, 2], [0], [0]>} : vector<2x8x16xbf16>, vector<2x16x16xbf16>, vector<2x8x16xf32> -> vector<2x8x16xf32>
    "tpu.trace_stop"() : () -> ()
    %142 = vector.extract_strided_slice %141 {offsets = [0, 0, 0], sizes = [1, 8, 16], strides = [1, 1, 1]} : vector<2x8x16xf32> to vector<1x8x16xf32>
    %143 = vector.shape_cast %142 : vector<1x8x16xf32> to vector<8x16xf32>
    %144 = vector.extract_strided_slice %141 {offsets = [1, 0, 0], sizes = [1, 8, 16], strides = [1, 1, 1]} : vector<2x8x16xf32> to vector<1x8x16xf32>
    %145 = vector.shape_cast %144 : vector<1x8x16xf32> to vector<8x16xf32>
    %146 = tpu.concatenate %143, %145 in 1 : vector<8x16xf32>, vector<8x16xf32> -> vector<8x32xf32>
    %147 = arith.truncf %146 : vector<8x32xf32> to vector<8x32xbf16>
    %cst_77 = arith.constant dense<0.000000e+00> : vector<8x32xf32>
    %148 = tpu.matmul %147, %109, %cst_77 {dimension_numbers = #tpu.dot_dimension_numbers<[1], [0], [0], [1], [0, 0, 1, 1], [], []>} : vector<8x32xbf16>, vector<32x32xbf16>, vector<8x32xf32> -> vector<8x32xf32>
    %149 = vector.broadcast %111 : vector<1x32xf32> to vector<8x32xf32>
    %150 = arith.addf %148, %149 : vector<8x32xf32>
    %c0_78 = arith.constant 0 : index
    %c0_79 = arith.constant 0 : index
    %c0_80 = arith.constant 0 : index
    %c0_81 = arith.constant 0 : index
    %151 = vector.load %arg17[%c0_78, %c0_79, %c0_80, %c0_81] : memref<1x2x1x32xf32, #tpu.memory_space<vmem>>, vector<1x1x1x32xf32>
    %152 = vector.shape_cast %151 : vector<1x1x1x32xf32> to vector<1x32xf32>
    %c0_82 = arith.constant 0 : index
    %c0_83 = arith.constant 0 : index
    %c0_84 = arith.constant 0 : index
    %c0_85 = arith.constant 0 : index
    %153 = vector.load %arg18[%c0_82, %c0_83, %c0_84, %c0_85] : memref<1x2x1x32xf32, #tpu.memory_space<vmem>>, vector<1x1x1x32xf32>
    %154 = vector.shape_cast %153 : vector<1x1x1x32xf32> to vector<1x32xf32>
    %155 = arith.addf %88, %150 : vector<8x32xf32>
    %cst_86 = arith.constant dense<0.000000e+00> : vector<8xf32>
    %156 = vector.multi_reduction <add>, %155, %cst_86 [1] : vector<8x32xf32> to vector<8xf32>
    %157 = vector.shape_cast %156 : vector<8xf32> to vector<8x1xf32>
    %cst_87 = arith.constant 3.200000e+01 : f32
    %158 = vector.broadcast %cst_87 : f32 to vector<8x1xf32>
    %159 = arith.divf %157, %158 : vector<8x1xf32>
    %160 = vector.broadcast %159 : vector<8x1xf32> to vector<8x32xf32>
    %161 = arith.subf %155, %160 : vector<8x32xf32>
    %162 = arith.mulf %161, %161 : vector<8x32xf32>
    %cst_88 = arith.constant dense<0.000000e+00> : vector<8xf32>
    %163 = vector.multi_reduction <add>, %162, %cst_88 [1] : vector<8x32xf32> to vector<8xf32>
    %164 = vector.shape_cast %163 : vector<8xf32> to vector<8x1xf32>
    %cst_89 = arith.constant 3.200000e+01 : f32
    %165 = vector.broadcast %cst_89 : f32 to vector<8x1xf32>
    %166 = arith.divf %164, %165 : vector<8x1xf32>
    %cst_90 = arith.constant 9.99999974E-6 : f32
    %167 = vector.broadcast %cst_90 : f32 to vector<8x1xf32>
    %168 = arith.addf %166, %167 : vector<8x1xf32>
    %169 = math.rsqrt %168 : vector<8x1xf32>
    %170 = vector.broadcast %169 : vector<8x1xf32> to vector<8x32xf32>
    %171 = arith.mulf %161, %170 : vector<8x32xf32>
    %172 = vector.broadcast %152 : vector<1x32xf32> to vector<8x32xf32>
    %173 = arith.mulf %171, %172 : vector<8x32xf32>
    %174 = vector.broadcast %154 : vector<1x32xf32> to vector<8x32xf32>
    %175 = arith.addf %173, %174 : vector<8x32xf32>
    %176 = arith.truncf %175 : vector<8x32xf32> to vector<8x32xbf16>
    %c0_91 = arith.constant 0 : index
    %c0_92 = arith.constant 0 : index
    %c0_93 = arith.constant 0 : index
    %c0_94 = arith.constant 0 : index
    %177 = vector.load %arg19[%c0_91, %c0_92, %c0_93, %c0_94] : memref<1x2x32x2048xbf16, #tpu.memory_space<vmem>>, vector<1x1x32x2048xbf16>
    %178 = vector.shape_cast %177 : vector<1x1x32x2048xbf16> to vector<32x2048xbf16>
    %cst_95 = arith.constant dense<0.000000e+00> : vector<8x2048xf32>
    %179 = tpu.matmul %176, %178, %cst_95 {dimension_numbers = #tpu.dot_dimension_numbers<[1], [0], [0], [1], [0, 0, 1, 1], [], []>} : vector<8x32xbf16>, vector<32x2048xbf16>, vector<8x2048xf32> -> vector<8x2048xf32>
    %c0_96 = arith.constant 0 : index
    %c0_97 = arith.constant 0 : index
    %c0_98 = arith.constant 0 : index
    %c0_99 = arith.constant 0 : index
    %180 = vector.load %arg20[%c0_96, %c0_97, %c0_98, %c0_99] : memref<1x2x1x2048xf32, #tpu.memory_space<vmem>>, vector<1x1x1x2048xf32>
    %181 = vector.shape_cast %180 : vector<1x1x1x2048xf32> to vector<1x2048xf32>
    %182 = vector.broadcast %181 : vector<1x2048xf32> to vector<8x2048xf32>
    %183 = arith.addf %179, %182 : vector<8x2048xf32>
    %cst_100 = arith.constant 0.000000e+00 : f32
    %184 = vector.broadcast %cst_100 : f32 to vector<8x2048xf32>
    %185 = arith.maximumf %183, %184 : vector<8x2048xf32>
    %186 = arith.truncf %185 : vector<8x2048xf32> to vector<8x2048xbf16>
    %c0_101 = arith.constant 0 : index
    %c0_102 = arith.constant 0 : index
    %c0_103 = arith.constant 0 : index
    %c0_104 = arith.constant 0 : index
    %187 = vector.load %arg21[%c0_101, %c0_102, %c0_103, %c0_104] : memref<1x2x2048x32xbf16, #tpu.memory_space<vmem>>, vector<1x1x2048x32xbf16>
    %188 = vector.shape_cast %187 : vector<1x1x2048x32xbf16> to vector<2048x32xbf16>
    %cst_105 = arith.constant dense<0.000000e+00> : vector<8x32xf32>
    %189 = tpu.matmul %186, %188, %cst_105 {dimension_numbers = #tpu.dot_dimension_numbers<[1], [0], [0], [1], [0, 0, 1, 1], [], []>} : vector<8x2048xbf16>, vector<2048x32xbf16>, vector<8x32xf32> -> vector<8x32xf32>
    %c0_106 = arith.constant 0 : index
    %c0_107 = arith.constant 0 : index
    %c0_108 = arith.constant 0 : index
    %c0_109 = arith.constant 0 : index
    %190 = vector.load %arg22[%c0_106, %c0_107, %c0_108, %c0_109] : memref<1x2x1x32xf32, #tpu.memory_space<vmem>>, vector<1x1x1x32xf32>
    %191 = vector.shape_cast %190 : vector<1x1x1x32xf32> to vector<1x32xf32>
    %192 = vector.broadcast %191 : vector<1x32xf32> to vector<8x32xf32>
    %193 = arith.addf %189, %192 : vector<8x32xf32>
    %c0_110 = arith.constant 0 : index
    %c0_111 = arith.constant 0 : index
    %c0_112 = arith.constant 0 : index
    %c0_113 = arith.constant 0 : index
    %194 = vector.load %arg23[%c0_110, %c0_111, %c0_112, %c0_113] : memref<1x2x1x32xf32, #tpu.memory_space<vmem>>, vector<1x1x1x32xf32>
    %195 = vector.shape_cast %194 : vector<1x1x1x32xf32> to vector<1x32xf32>
    %c0_114 = arith.constant 0 : index
    %c0_115 = arith.constant 0 : index
    %c0_116 = arith.constant 0 : index
    %c0_117 = arith.constant 0 : index
    %196 = vector.load %arg24[%c0_114, %c0_115, %c0_116, %c0_117] : memref<1x2x1x32xf32, #tpu.memory_space<vmem>>, vector<1x1x1x32xf32>
    %197 = vector.shape_cast %196 : vector<1x1x1x32xf32> to vector<1x32xf32>
    %198 = arith.addf %175, %193 : vector<8x32xf32>
    %cst_118 = arith.constant dense<0.000000e+00> : vector<8xf32>
    %199 = vector.multi_reduction <add>, %198, %cst_118 [1] : vector<8x32xf32> to vector<8xf32>
    %200 = vector.shape_cast %199 : vector<8xf32> to vector<8x1xf32>
    %cst_119 = arith.constant 3.200000e+01 : f32
    %201 = vector.broadcast %cst_119 : f32 to vector<8x1xf32>
    %202 = arith.divf %200, %201 : vector<8x1xf32>
    %203 = vector.broadcast %202 : vector<8x1xf32> to vector<8x32xf32>
    %204 = arith.subf %198, %203 : vector<8x32xf32>
    %205 = arith.mulf %204, %204 : vector<8x32xf32>
    %cst_120 = arith.constant dense<0.000000e+00> : vector<8xf32>
    %206 = vector.multi_reduction <add>, %205, %cst_120 [1] : vector<8x32xf32> to vector<8xf32>
    %207 = vector.shape_cast %206 : vector<8xf32> to vector<8x1xf32>
    %cst_121 = arith.constant 3.200000e+01 : f32
    %208 = vector.broadcast %cst_121 : f32 to vector<8x1xf32>
    %209 = arith.divf %207, %208 : vector<8x1xf32>
    %cst_122 = arith.constant 9.99999974E-6 : f32
    %210 = vector.broadcast %cst_122 : f32 to vector<8x1xf32>
    %211 = arith.addf %209, %210 : vector<8x1xf32>
    %212 = math.rsqrt %211 : vector<8x1xf32>
    %213 = vector.broadcast %212 : vector<8x1xf32> to vector<8x32xf32>
    %214 = arith.mulf %204, %213 : vector<8x32xf32>
    %215 = vector.broadcast %195 : vector<1x32xf32> to vector<8x32xf32>
    %216 = arith.mulf %214, %215 : vector<8x32xf32>
    %217 = vector.broadcast %197 : vector<1x32xf32> to vector<8x32xf32>
    %218 = arith.addf %216, %217 : vector<8x32xf32>
    %219 = arith.truncf %218 : vector<8x32xf32> to vector<8x32xbf16>
    %c0_123 = arith.constant 0 : index
    %c1 = arith.constant 1 : index
    %c0_124 = arith.constant 0 : index
    %c0_125 = arith.constant 0 : index
    %220 = vector.load %arg5[%c0_123, %c1, %c0_124, %c0_125] : memref<1x2x32x96xbf16, #tpu.memory_space<vmem>>, vector<1x1x32x96xbf16>
    %221 = vector.shape_cast %220 : vector<1x1x32x96xbf16> to vector<32x96xbf16>
    %cst_126 = arith.constant dense<0.000000e+00> : vector<8x96xf32>
    %222 = tpu.matmul %219, %221, %cst_126 {dimension_numbers = #tpu.dot_dimension_numbers<[1], [0], [0], [1], [0, 0, 1, 1], [], []>} : vector<8x32xbf16>, vector<32x96xbf16>, vector<8x96xf32> -> vector<8x96xf32>
    %c0_127 = arith.constant 0 : index
    %c1_128 = arith.constant 1 : index
    %c0_129 = arith.constant 0 : index
    %c0_130 = arith.constant 0 : index
    %223 = vector.load %arg6[%c0_127, %c1_128, %c0_129, %c0_130] : memref<1x2x1x96xf32, #tpu.memory_space<vmem>>, vector<1x1x1x96xf32>
    %224 = vector.shape_cast %223 : vector<1x1x1x96xf32> to vector<1x96xf32>
    %225 = vector.broadcast %224 : vector<1x96xf32> to vector<8x96xf32>
    %226 = arith.addf %222, %225 : vector<8x96xf32>
    %227 = vector.extract_strided_slice %226 {offsets = [0, 0], sizes = [8, 32], strides = [1, 1]} : vector<8x96xf32> to vector<8x32xf32>
    %228 = vector.extract_strided_slice %226 {offsets = [0, 32], sizes = [8, 32], strides = [1, 1]} : vector<8x96xf32> to vector<8x32xf32>
    %229 = arith.truncf %228 : vector<8x32xf32> to vector<8x32xbf16>
    %230 = vector.extract_strided_slice %226 {offsets = [0, 64], sizes = [8, 32], strides = [1, 1]} : vector<8x96xf32> to vector<8x32xf32>
    %231 = arith.truncf %230 : vector<8x32xf32> to vector<8x32xbf16>
    %c0_131 = arith.constant 0 : index
    %c1_132 = arith.constant 1 : index
    %c0_133 = arith.constant 0 : index
    %c0_134 = arith.constant 0 : index
    %232 = vector.load %arg7[%c0_131, %c1_132, %c0_133, %c0_134] : memref<1x2x32x32xbf16, #tpu.memory_space<vmem>>, vector<1x1x32x32xbf16>
    %233 = vector.shape_cast %232 : vector<1x1x32x32xbf16> to vector<32x32xbf16>
    %c0_135 = arith.constant 0 : index
    %c1_136 = arith.constant 1 : index
    %c0_137 = arith.constant 0 : index
    %c0_138 = arith.constant 0 : index
    %234 = vector.load %arg8[%c0_135, %c1_136, %c0_137, %c0_138] : memref<1x2x1x32xf32, #tpu.memory_space<vmem>>, vector<1x1x1x32xf32>
    %235 = vector.shape_cast %234 : vector<1x1x1x32xf32> to vector<1x32xf32>
    %cst_139 = arith.constant 2.500000e-01 : f32
    %236 = vector.broadcast %cst_139 : f32 to vector<8x32xf32>
    %237 = arith.mulf %227, %236 : vector<8x32xf32>
    %238 = arith.truncf %237 : vector<8x32xf32> to vector<8x32xbf16>
    %239 = vector.extract_strided_slice %238 {offsets = [0, 0], sizes = [8, 16], strides = [1, 1]} : vector<8x32xbf16> to vector<8x16xbf16>
    %240 = vector.extract_strided_slice %238 {offsets = [0, 16], sizes = [8, 16], strides = [1, 1]} : vector<8x32xbf16> to vector<8x16xbf16>
    %241 = vector.shape_cast %239 : vector<8x16xbf16> to vector<1x8x16xbf16>
    %242 = vector.shape_cast %240 : vector<8x16xbf16> to vector<1x8x16xbf16>
    %243 = tpu.concatenate %241, %242 in 0 : vector<1x8x16xbf16>, vector<1x8x16xbf16> -> vector<2x8x16xbf16>
    %244 = vector.extract_strided_slice %229 {offsets = [0, 0], sizes = [8, 16], strides = [1, 1]} : vector<8x32xbf16> to vector<8x16xbf16>
    %245 = vector.extract_strided_slice %229 {offsets = [0, 16], sizes = [8, 16], strides = [1, 1]} : vector<8x32xbf16> to vector<8x16xbf16>
    %246 = vector.shape_cast %244 : vector<8x16xbf16> to vector<1x8x16xbf16>
    %247 = vector.shape_cast %245 : vector<8x16xbf16> to vector<1x8x16xbf16>
    %248 = tpu.concatenate %246, %247 in 0 : vector<1x8x16xbf16>, vector<1x8x16xbf16> -> vector<2x8x16xbf16>
    %249 = vector.extract_strided_slice %231 {offsets = [0, 0], sizes = [8, 16], strides = [1, 1]} : vector<8x32xbf16> to vector<8x16xbf16>
    %250 = vector.extract_strided_slice %231 {offsets = [0, 16], sizes = [8, 16], strides = [1, 1]} : vector<8x32xbf16> to vector<8x16xbf16>
    %251 = vector.shape_cast %249 : vector<8x16xbf16> to vector<1x8x16xbf16>
    %252 = vector.shape_cast %250 : vector<8x16xbf16> to vector<1x8x16xbf16>
    %253 = tpu.concatenate %251, %252 in 0 : vector<1x8x16xbf16>, vector<1x8x16xbf16> -> vector<2x8x16xbf16>
    "tpu.trace_start"() <{level = 10 : i32, message = "hqd,hkd->hqk"}> : () -> ()
    %cst_140 = arith.constant dense<0.000000e+00> : vector<2x8x8xf32>
    %254 = tpu.matmul %243, %248, %cst_140 {dimension_numbers = #tpu.dot_dimension_numbers<[2], [2], [1], [1], [0, 0, 0, 1, 1, 1], [0], [0]>} : vector<2x8x16xbf16>, vector<2x8x16xbf16>, vector<2x8x8xf32> -> vector<2x8x8xf32>
    "tpu.trace_stop"() : () -> ()
    %cst_141 = arith.constant dense<0xFF800000> : vector<2x8xf32>
    %255 = vector.multi_reduction <maximumf>, %254, %cst_141 [2] : vector<2x8x8xf32> to vector<2x8xf32>
    %256 = vector.shape_cast %255 : vector<2x8xf32> to vector<2x8x1xf32>
    %257 = vector.broadcast %256 : vector<2x8x1xf32> to vector<2x8x8xf32>
    %258 = arith.subf %254, %257 : vector<2x8x8xf32>
    %259 = math.exp %258 : vector<2x8x8xf32>
    %cst_142 = arith.constant dense<0.000000e+00> : vector<2x8xf32>
    %260 = vector.multi_reduction <add>, %259, %cst_142 [2] : vector<2x8x8xf32> to vector<2x8xf32>
    %261 = vector.shape_cast %260 : vector<2x8xf32> to vector<2x8x1xf32>
    %262 = vector.broadcast %261 : vector<2x8x1xf32> to vector<2x8x8xf32>
    %263 = arith.divf %259, %262 : vector<2x8x8xf32>
    %264 = arith.truncf %263 : vector<2x8x8xf32> to vector<2x8x8xbf16>
    "tpu.trace_start"() <{level = 10 : i32, message = "hqk,hkd->hqd"}> : () -> ()
    %cst_143 = arith.constant dense<0.000000e+00> : vector<2x8x16xf32>
    %265 = tpu.matmul %264, %253, %cst_143 {dimension_numbers = #tpu.dot_dimension_numbers<[2], [1], [1], [2], [0, 0, 0, 1, 1, 2], [0], [0]>} : vector<2x8x8xbf16>, vector<2x8x16xbf16>, vector<2x8x16xf32> -> vector<2x8x16xf32>
    "tpu.trace_stop"() : () -> ()
    %266 = vector.extract_strided_slice %265 {offsets = [0, 0, 0], sizes = [1, 8, 16], strides = [1, 1, 1]} : vector<2x8x16xf32> to vector<1x8x16xf32>
    %267 = vector.shape_cast %266 : vector<1x8x16xf32> to vector<8x16xf32>
    %268 = vector.extract_strided_slice %265 {offsets = [1, 0, 0], sizes = [1, 8, 16], strides = [1, 1, 1]} : vector<2x8x16xf32> to vector<1x8x16xf32>
    %269 = vector.shape_cast %268 : vector<1x8x16xf32> to vector<8x16xf32>
    %270 = tpu.concatenate %267, %269 in 1 : vector<8x16xf32>, vector<8x16xf32> -> vector<8x32xf32>
    %271 = arith.truncf %270 : vector<8x32xf32> to vector<8x32xbf16>
    %cst_144 = arith.constant dense<0.000000e+00> : vector<8x32xf32>
    %272 = tpu.matmul %271, %233, %cst_144 {dimension_numbers = #tpu.dot_dimension_numbers<[1], [0], [0], [1], [0, 0, 1, 1], [], []>} : vector<8x32xbf16>, vector<32x32xbf16>, vector<8x32xf32> -> vector<8x32xf32>
    %273 = vector.broadcast %235 : vector<1x32xf32> to vector<8x32xf32>
    %274 = arith.addf %272, %273 : vector<8x32xf32>
    %c0_145 = arith.constant 0 : index
    %c1_146 = arith.constant 1 : index
    %c0_147 = arith.constant 0 : index
    %c0_148 = arith.constant 0 : index
    %275 = vector.load %arg9[%c0_145, %c1_146, %c0_147, %c0_148] : memref<1x2x1x32xf32, #tpu.memory_space<vmem>>, vector<1x1x1x32xf32>
    %276 = vector.shape_cast %275 : vector<1x1x1x32xf32> to vector<1x32xf32>
    %c0_149 = arith.constant 0 : index
    %c1_150 = arith.constant 1 : index
    %c0_151 = arith.constant 0 : index
    %c0_152 = arith.constant 0 : index
    %277 = vector.load %arg10[%c0_149, %c1_150, %c0_151, %c0_152] : memref<1x2x1x32xf32, #tpu.memory_space<vmem>>, vector<1x1x1x32xf32>
    %278 = vector.shape_cast %277 : vector<1x1x1x32xf32> to vector<1x32xf32>
    %279 = arith.addf %218, %274 : vector<8x32xf32>
    %cst_153 = arith.constant dense<0.000000e+00> : vector<8xf32>
    %280 = vector.multi_reduction <add>, %279, %cst_153 [1] : vector<8x32xf32> to vector<8xf32>
    %281 = vector.shape_cast %280 : vector<8xf32> to vector<8x1xf32>
    %cst_154 = arith.constant 3.200000e+01 : f32
    %282 = vector.broadcast %cst_154 : f32 to vector<8x1xf32>
    %283 = arith.divf %281, %282 : vector<8x1xf32>
    %284 = vector.broadcast %283 : vector<8x1xf32> to vector<8x32xf32>
    %285 = arith.subf %279, %284 : vector<8x32xf32>
    %286 = arith.mulf %285, %285 : vector<8x32xf32>
    %cst_155 = arith.constant dense<0.000000e+00> : vector<8xf32>
    %287 = vector.multi_reduction <add>, %286, %cst_155 [1] : vector<8x32xf32> to vector<8xf32>
    %288 = vector.shape_cast %287 : vector<8xf32> to vector<8x1xf32>
    %cst_156 = arith.constant 3.200000e+01 : f32
    %289 = vector.broadcast %cst_156 : f32 to vector<8x1xf32>
    %290 = arith.divf %288, %289 : vector<8x1xf32>
    %cst_157 = arith.constant 9.99999974E-6 : f32
    %291 = vector.broadcast %cst_157 : f32 to vector<8x1xf32>
    %292 = arith.addf %290, %291 : vector<8x1xf32>
    %293 = math.rsqrt %292 : vector<8x1xf32>
    %294 = vector.broadcast %293 : vector<8x1xf32> to vector<8x32xf32>
    %295 = arith.mulf %285, %294 : vector<8x32xf32>
    %296 = vector.broadcast %276 : vector<1x32xf32> to vector<8x32xf32>
    %297 = arith.mulf %295, %296 : vector<8x32xf32>
    %298 = vector.broadcast %278 : vector<1x32xf32> to vector<8x32xf32>
    %299 = arith.addf %297, %298 : vector<8x32xf32>
    %300 = arith.truncf %299 : vector<8x32xf32> to vector<8x32xbf16>
    %c0_158 = arith.constant 0 : index
    %c1_159 = arith.constant 1 : index
    %c0_160 = arith.constant 0 : index
    %c0_161 = arith.constant 0 : index
    %301 = vector.load %arg11[%c0_158, %c1_159, %c0_160, %c0_161] : memref<1x2x32x32xbf16, #tpu.memory_space<vmem>>, vector<1x1x32x32xbf16>
    %302 = vector.shape_cast %301 : vector<1x1x32x32xbf16> to vector<32x32xbf16>
    %cst_162 = arith.constant dense<0.000000e+00> : vector<8x32xf32>
    %303 = tpu.matmul %300, %302, %cst_162 {dimension_numbers = #tpu.dot_dimension_numbers<[1], [0], [0], [1], [0, 0, 1, 1], [], []>} : vector<8x32xbf16>, vector<32x32xbf16>, vector<8x32xf32> -> vector<8x32xf32>
    %c0_163 = arith.constant 0 : index
    %c1_164 = arith.constant 1 : index
    %c0_165 = arith.constant 0 : index
    %c0_166 = arith.constant 0 : index
    %304 = vector.load %arg12[%c0_163, %c1_164, %c0_165, %c0_166] : memref<1x2x1x32xf32, #tpu.memory_space<vmem>>, vector<1x1x1x32xf32>
    %305 = vector.shape_cast %304 : vector<1x1x1x32xf32> to vector<1x32xf32>
    %306 = vector.broadcast %305 : vector<1x32xf32> to vector<8x32xf32>
    %307 = arith.addf %303, %306 : vector<8x32xf32>
    %c0_167 = arith.constant 0 : index
    %c1_168 = arith.constant 1 : index
    %c0_169 = arith.constant 0 : index
    %c0_170 = arith.constant 0 : index
    %308 = vector.load %arg13[%c0_167, %c1_168, %c0_169, %c0_170] : memref<1x2x32x64xbf16, #tpu.memory_space<vmem>>, vector<1x1x32x64xbf16>
    %309 = vector.shape_cast %308 : vector<1x1x32x64xbf16> to vector<32x64xbf16>
    %cst_171 = arith.constant dense<0.000000e+00> : vector<16x64xf32>
    %310 = tpu.matmul %7, %309, %cst_171 {dimension_numbers = #tpu.dot_dimension_numbers<[1], [0], [0], [1], [0, 0, 1, 1], [], []>} : vector<16x32xbf16>, vector<32x64xbf16>, vector<16x64xf32> -> vector<16x64xf32>
    %c0_172 = arith.constant 0 : index
    %c1_173 = arith.constant 1 : index
    %c0_174 = arith.constant 0 : index
    %c0_175 = arith.constant 0 : index
    %311 = vector.load %arg14[%c0_172, %c1_173, %c0_174, %c0_175] : memref<1x2x1x64xf32, #tpu.memory_space<vmem>>, vector<1x1x1x64xf32>
    %312 = vector.shape_cast %311 : vector<1x1x1x64xf32> to vector<1x64xf32>
    %313 = vector.broadcast %312 : vector<1x64xf32> to vector<16x64xf32>
    %314 = arith.addf %310, %313 : vector<16x64xf32>
    %315 = vector.extract_strided_slice %314 {offsets = [0, 0], sizes = [16, 32], strides = [1, 1]} : vector<16x64xf32> to vector<16x32xf32>
    %316 = arith.truncf %315 : vector<16x32xf32> to vector<16x32xbf16>
    %317 = vector.extract_strided_slice %314 {offsets = [0, 32], sizes = [16, 32], strides = [1, 1]} : vector<16x64xf32> to vector<16x32xf32>
    %318 = arith.truncf %317 : vector<16x32xf32> to vector<16x32xbf16>
    %c0_176 = arith.constant 0 : index
    %c1_177 = arith.constant 1 : index
    %c0_178 = arith.constant 0 : index
    %c0_179 = arith.constant 0 : index
    %319 = vector.load %arg15[%c0_176, %c1_177, %c0_178, %c0_179] : memref<1x2x32x32xbf16, #tpu.memory_space<vmem>>, vector<1x1x32x32xbf16>
    %320 = vector.shape_cast %319 : vector<1x1x32x32xbf16> to vector<32x32xbf16>
    %c0_180 = arith.constant 0 : index
    %c1_181 = arith.constant 1 : index
    %c0_182 = arith.constant 0 : index
    %c0_183 = arith.constant 0 : index
    %321 = vector.load %arg16[%c0_180, %c1_181, %c0_182, %c0_183] : memref<1x2x1x32xf32, #tpu.memory_space<vmem>>, vector<1x1x1x32xf32>
    %322 = vector.shape_cast %321 : vector<1x1x1x32xf32> to vector<1x32xf32>
    %cst_184 = arith.constant 2.500000e-01 : f32
    %323 = vector.broadcast %cst_184 : f32 to vector<8x32xf32>
    %324 = arith.mulf %307, %323 : vector<8x32xf32>
    %325 = arith.truncf %324 : vector<8x32xf32> to vector<8x32xbf16>
    %326 = vector.extract_strided_slice %325 {offsets = [0, 0], sizes = [8, 16], strides = [1, 1]} : vector<8x32xbf16> to vector<8x16xbf16>
    %327 = vector.extract_strided_slice %325 {offsets = [0, 16], sizes = [8, 16], strides = [1, 1]} : vector<8x32xbf16> to vector<8x16xbf16>
    %328 = vector.shape_cast %326 : vector<8x16xbf16> to vector<1x8x16xbf16>
    %329 = vector.shape_cast %327 : vector<8x16xbf16> to vector<1x8x16xbf16>
    %330 = tpu.concatenate %328, %329 in 0 : vector<1x8x16xbf16>, vector<1x8x16xbf16> -> vector<2x8x16xbf16>
    %331 = vector.extract_strided_slice %316 {offsets = [0, 0], sizes = [16, 16], strides = [1, 1]} : vector<16x32xbf16> to vector<16x16xbf16>
    %332 = vector.extract_strided_slice %316 {offsets = [0, 16], sizes = [16, 16], strides = [1, 1]} : vector<16x32xbf16> to vector<16x16xbf16>
    %333 = vector.shape_cast %331 : vector<16x16xbf16> to vector<1x16x16xbf16>
    %334 = vector.shape_cast %332 : vector<16x16xbf16> to vector<1x16x16xbf16>
    %335 = tpu.concatenate %333, %334 in 0 : vector<1x16x16xbf16>, vector<1x16x16xbf16> -> vector<2x16x16xbf16>
    %336 = vector.extract_strided_slice %318 {offsets = [0, 0], sizes = [16, 16], strides = [1, 1]} : vector<16x32xbf16> to vector<16x16xbf16>
    %337 = vector.extract_strided_slice %318 {offsets = [0, 16], sizes = [16, 16], strides = [1, 1]} : vector<16x32xbf16> to vector<16x16xbf16>
    %338 = vector.shape_cast %336 : vector<16x16xbf16> to vector<1x16x16xbf16>
    %339 = vector.shape_cast %337 : vector<16x16xbf16> to vector<1x16x16xbf16>
    %340 = tpu.concatenate %338, %339 in 0 : vector<1x16x16xbf16>, vector<1x16x16xbf16> -> vector<2x16x16xbf16>
    "tpu.trace_start"() <{level = 10 : i32, message = "hqd,hkd->hqk"}> : () -> ()
    %cst_185 = arith.constant dense<0.000000e+00> : vector<2x8x16xf32>
    %341 = tpu.matmul %330, %335, %cst_185 {dimension_numbers = #tpu.dot_dimension_numbers<[2], [2], [1], [1], [0, 0, 0, 1, 1, 1], [0], [0]>} : vector<2x8x16xbf16>, vector<2x16x16xbf16>, vector<2x8x16xf32> -> vector<2x8x16xf32>
    "tpu.trace_stop"() : () -> ()
    %cst_186 = arith.constant dense<0xFF800000> : vector<2x8xf32>
    %342 = vector.multi_reduction <maximumf>, %341, %cst_186 [2] : vector<2x8x16xf32> to vector<2x8xf32>
    %343 = vector.shape_cast %342 : vector<2x8xf32> to vector<2x8x1xf32>
    %344 = vector.broadcast %343 : vector<2x8x1xf32> to vector<2x8x16xf32>
    %345 = arith.subf %341, %344 : vector<2x8x16xf32>
    %346 = math.exp %345 : vector<2x8x16xf32>
    %cst_187 = arith.constant dense<0.000000e+00> : vector<2x8xf32>
    %347 = vector.multi_reduction <add>, %346, %cst_187 [2] : vector<2x8x16xf32> to vector<2x8xf32>
    %348 = vector.shape_cast %347 : vector<2x8xf32> to vector<2x8x1xf32>
    %349 = vector.broadcast %348 : vector<2x8x1xf32> to vector<2x8x16xf32>
    %350 = arith.divf %346, %349 : vector<2x8x16xf32>
    %351 = arith.truncf %350 : vector<2x8x16xf32> to vector<2x8x16xbf16>
    "tpu.trace_start"() <{level = 10 : i32, message = "hqk,hkd->hqd"}> : () -> ()
    %cst_188 = arith.constant dense<0.000000e+00> : vector<2x8x16xf32>
    %352 = tpu.matmul %351, %340, %cst_188 {dimension_numbers = #tpu.dot_dimension_numbers<[2], [1], [1], [2], [0, 0, 0, 1, 1, 2], [0], [0]>} : vector<2x8x16xbf16>, vector<2x16x16xbf16>, vector<2x8x16xf32> -> vector<2x8x16xf32>
    "tpu.trace_stop"() : () -> ()
    %353 = vector.extract_strided_slice %352 {offsets = [0, 0, 0], sizes = [1, 8, 16], strides = [1, 1, 1]} : vector<2x8x16xf32> to vector<1x8x16xf32>
    %354 = vector.shape_cast %353 : vector<1x8x16xf32> to vector<8x16xf32>
    %355 = vector.extract_strided_slice %352 {offsets = [1, 0, 0], sizes = [1, 8, 16], strides = [1, 1, 1]} : vector<2x8x16xf32> to vector<1x8x16xf32>
    %356 = vector.shape_cast %355 : vector<1x8x16xf32> to vector<8x16xf32>
    %357 = tpu.concatenate %354, %356 in 1 : vector<8x16xf32>, vector<8x16xf32> -> vector<8x32xf32>
    %358 = arith.truncf %357 : vector<8x32xf32> to vector<8x32xbf16>
    %cst_189 = arith.constant dense<0.000000e+00> : vector<8x32xf32>
    %359 = tpu.matmul %358, %320, %cst_189 {dimension_numbers = #tpu.dot_dimension_numbers<[1], [0], [0], [1], [0, 0, 1, 1], [], []>} : vector<8x32xbf16>, vector<32x32xbf16>, vector<8x32xf32> -> vector<8x32xf32>
    %360 = vector.broadcast %322 : vector<1x32xf32> to vector<8x32xf32>
    %361 = arith.addf %359, %360 : vector<8x32xf32>
    %c0_190 = arith.constant 0 : index
    %c1_191 = arith.constant 1 : index
    %c0_192 = arith.constant 0 : index
    %c0_193 = arith.constant 0 : index
    %362 = vector.load %arg17[%c0_190, %c1_191, %c0_192, %c0_193] : memref<1x2x1x32xf32, #tpu.memory_space<vmem>>, vector<1x1x1x32xf32>
    %363 = vector.shape_cast %362 : vector<1x1x1x32xf32> to vector<1x32xf32>
    %c0_194 = arith.constant 0 : index
    %c1_195 = arith.constant 1 : index
    %c0_196 = arith.constant 0 : index
    %c0_197 = arith.constant 0 : index
    %364 = vector.load %arg18[%c0_194, %c1_195, %c0_196, %c0_197] : memref<1x2x1x32xf32, #tpu.memory_space<vmem>>, vector<1x1x1x32xf32>
    %365 = vector.shape_cast %364 : vector<1x1x1x32xf32> to vector<1x32xf32>
    %366 = arith.addf %299, %361 : vector<8x32xf32>
    %cst_198 = arith.constant dense<0.000000e+00> : vector<8xf32>
    %367 = vector.multi_reduction <add>, %366, %cst_198 [1] : vector<8x32xf32> to vector<8xf32>
    %368 = vector.shape_cast %367 : vector<8xf32> to vector<8x1xf32>
    %cst_199 = arith.constant 3.200000e+01 : f32
    %369 = vector.broadcast %cst_199 : f32 to vector<8x1xf32>
    %370 = arith.divf %368, %369 : vector<8x1xf32>
    %371 = vector.broadcast %370 : vector<8x1xf32> to vector<8x32xf32>
    %372 = arith.subf %366, %371 : vector<8x32xf32>
    %373 = arith.mulf %372, %372 : vector<8x32xf32>
    %cst_200 = arith.constant dense<0.000000e+00> : vector<8xf32>
    %374 = vector.multi_reduction <add>, %373, %cst_200 [1] : vector<8x32xf32> to vector<8xf32>
    %375 = vector.shape_cast %374 : vector<8xf32> to vector<8x1xf32>
    %cst_201 = arith.constant 3.200000e+01 : f32
    %376 = vector.broadcast %cst_201 : f32 to vector<8x1xf32>
    %377 = arith.divf %375, %376 : vector<8x1xf32>
    %cst_202 = arith.constant 9.99999974E-6 : f32
    %378 = vector.broadcast %cst_202 : f32 to vector<8x1xf32>
    %379 = arith.addf %377, %378 : vector<8x1xf32>
    %380 = math.rsqrt %379 : vector<8x1xf32>
    %381 = vector.broadcast %380 : vector<8x1xf32> to vector<8x32xf32>
    %382 = arith.mulf %372, %381 : vector<8x32xf32>
    %383 = vector.broadcast %363 : vector<1x32xf32> to vector<8x32xf32>
    %384 = arith.mulf %382, %383 : vector<8x32xf32>
    %385 = vector.broadcast %365 : vector<1x32xf32> to vector<8x32xf32>
    %386 = arith.addf %384, %385 : vector<8x32xf32>
    %387 = arith.truncf %386 : vector<8x32xf32> to vector<8x32xbf16>
    %c0_203 = arith.constant 0 : index
    %c1_204 = arith.constant 1 : index
    %c0_205 = arith.constant 0 : index
    %c0_206 = arith.constant 0 : index
    %388 = vector.load %arg19[%c0_203, %c1_204, %c0_205, %c0_206] : memref<1x2x32x2048xbf16, #tpu.memory_space<vmem>>, vector<1x1x32x2048xbf16>
    %389 = vector.shape_cast %388 : vector<1x1x32x2048xbf16> to vector<32x2048xbf16>
    %cst_207 = arith.constant dense<0.000000e+00> : vector<8x2048xf32>
    %390 = tpu.matmul %387, %389, %cst_207 {dimension_numbers = #tpu.dot_dimension_numbers<[1], [0], [0], [1], [0, 0, 1, 1], [], []>} : vector<8x32xbf16>, vector<32x2048xbf16>, vector<8x2048xf32> -> vector<8x2048xf32>
    %c0_208 = arith.constant 0 : index
    %c1_209 = arith.constant 1 : index
    %c0_210 = arith.constant 0 : index
    %c0_211 = arith.constant 0 : index
    %391 = vector.load %arg20[%c0_208, %c1_209, %c0_210, %c0_211] : memref<1x2x1x2048xf32, #tpu.memory_space<vmem>>, vector<1x1x1x2048xf32>
    %392 = vector.shape_cast %391 : vector<1x1x1x2048xf32> to vector<1x2048xf32>
    %393 = vector.broadcast %392 : vector<1x2048xf32> to vector<8x2048xf32>
    %394 = arith.addf %390, %393 : vector<8x2048xf32>
    %cst_212 = arith.constant 0.000000e+00 : f32
    %395 = vector.broadcast %cst_212 : f32 to vector<8x2048xf32>
    %396 = arith.maximumf %394, %395 : vector<8x2048xf32>
    %397 = arith.truncf %396 : vector<8x2048xf32> to vector<8x2048xbf16>
    %c0_213 = arith.constant 0 : index
    %c1_214 = arith.constant 1 : index
    %c0_215 = arith.constant 0 : index
    %c0_216 = arith.constant 0 : index
    %398 = vector.load %arg21[%c0_213, %c1_214, %c0_215, %c0_216] : memref<1x2x2048x32xbf16, #tpu.memory_space<vmem>>, vector<1x1x2048x32xbf16>
    %399 = vector.shape_cast %398 : vector<1x1x2048x32xbf16> to vector<2048x32xbf16>
    %cst_217 = arith.constant dense<0.000000e+00> : vector<8x32xf32>
    %400 = tpu.matmul %397, %399, %cst_217 {dimension_numbers = #tpu.dot_dimension_numbers<[1], [0], [0], [1], [0, 0, 1, 1], [], []>} : vector<8x2048xbf16>, vector<2048x32xbf16>, vector<8x32xf32> -> vector<8x32xf32>
    %c0_218 = arith.constant 0 : index
    %c1_219 = arith.constant 1 : index
    %c0_220 = arith.constant 0 : index
    %c0_221 = arith.constant 0 : index
    %401 = vector.load %arg22[%c0_218, %c1_219, %c0_220, %c0_221] : memref<1x2x1x32xf32, #tpu.memory_space<vmem>>, vector<1x1x1x32xf32>
    %402 = vector.shape_cast %401 : vector<1x1x1x32xf32> to vector<1x32xf32>
    %403 = vector.broadcast %402 : vector<1x32xf32> to vector<8x32xf32>
    %404 = arith.addf %400, %403 : vector<8x32xf32>
    %c0_222 = arith.constant 0 : index
    %c1_223 = arith.constant 1 : index
    %c0_224 = arith.constant 0 : index
    %c0_225 = arith.constant 0 : index
    %405 = vector.load %arg23[%c0_222, %c1_223, %c0_224, %c0_225] : memref<1x2x1x32xf32, #tpu.memory_space<vmem>>, vector<1x1x1x32xf32>
    %406 = vector.shape_cast %405 : vector<1x1x1x32xf32> to vector<1x32xf32>
    %c0_226 = arith.constant 0 : index
    %c1_227 = arith.constant 1 : index
    %c0_228 = arith.constant 0 : index
    %c0_229 = arith.constant 0 : index
    %407 = vector.load %arg24[%c0_226, %c1_227, %c0_228, %c0_229] : memref<1x2x1x32xf32, #tpu.memory_space<vmem>>, vector<1x1x1x32xf32>
    %408 = vector.shape_cast %407 : vector<1x1x1x32xf32> to vector<1x32xf32>
    %409 = arith.addf %386, %404 : vector<8x32xf32>
    %cst_230 = arith.constant dense<0.000000e+00> : vector<8xf32>
    %410 = vector.multi_reduction <add>, %409, %cst_230 [1] : vector<8x32xf32> to vector<8xf32>
    %411 = vector.shape_cast %410 : vector<8xf32> to vector<8x1xf32>
    %cst_231 = arith.constant 3.200000e+01 : f32
    %412 = vector.broadcast %cst_231 : f32 to vector<8x1xf32>
    %413 = arith.divf %411, %412 : vector<8x1xf32>
    %414 = vector.broadcast %413 : vector<8x1xf32> to vector<8x32xf32>
    %415 = arith.subf %409, %414 : vector<8x32xf32>
    %416 = arith.mulf %415, %415 : vector<8x32xf32>
    %cst_232 = arith.constant dense<0.000000e+00> : vector<8xf32>
    %417 = vector.multi_reduction <add>, %416, %cst_232 [1] : vector<8x32xf32> to vector<8xf32>
    %418 = vector.shape_cast %417 : vector<8xf32> to vector<8x1xf32>
    %cst_233 = arith.constant 3.200000e+01 : f32
    %419 = vector.broadcast %cst_233 : f32 to vector<8x1xf32>
    %420 = arith.divf %418, %419 : vector<8x1xf32>
    %cst_234 = arith.constant 9.99999974E-6 : f32
    %421 = vector.broadcast %cst_234 : f32 to vector<8x1xf32>
    %422 = arith.addf %420, %421 : vector<8x1xf32>
    %423 = math.rsqrt %422 : vector<8x1xf32>
    %424 = vector.broadcast %423 : vector<8x1xf32> to vector<8x32xf32>
    %425 = arith.mulf %415, %424 : vector<8x32xf32>
    %426 = vector.broadcast %406 : vector<1x32xf32> to vector<8x32xf32>
    %427 = arith.mulf %425, %426 : vector<8x32xf32>
    %428 = vector.broadcast %408 : vector<1x32xf32> to vector<8x32xf32>
    %429 = arith.addf %427, %428 : vector<8x32xf32>
    %c0_235 = arith.constant 0 : index
    %c0_236 = arith.constant 0 : index
    %c0_237 = arith.constant 0 : index
    %430 = vector.load %arg25[%c0_235, %c0_236, %c0_237] : memref<1x8x32xf32, #tpu.memory_space<vmem>>, vector<1x8x32xf32>
    %431 = vector.shape_cast %430 : vector<1x8x32xf32> to vector<8x32xf32>
    %432 = vector.shape_cast %429 : vector<8x32xf32> to vector<1x8x32xf32>
    tpu.vector_store %arg25[%c0_235, %c0_236, %c0_237], %432 {strides = array<i32>} : memref<1x8x32xf32, #tpu.memory_space<vmem>>, vector<1x8x32xf32>,
    return
  }
  func.func @transform_0(%arg0: i32, %arg1: i32) -> (i32, i32, i32, i32) {
    %c0_i32 = arith.constant 0 : i32
    %c0_i32_0 = arith.constant 0 : i32
    %c0_i32_1 = arith.constant 0 : i32
    return %arg0, %arg1, %c0_i32, %c0_i32_0 : i32, i32, i32, i32
  }
  func.func @transform_1(%arg0: i32, %arg1: i32) -> (i32, i32, i32, i32) {
    %c0_i32 = arith.constant 0 : i32
    %0 = arith.cmpi eq, %arg0, %c0_i32 : i32
    %c1_i32 = arith.constant 1 : i32
    %c0_i32_0 = arith.constant 0 : i32
    %1 = arith.select %0, %c1_i32, %c0_i32_0 : i32
    %c0_i32_1 = arith.constant 0 : i32
    %c0_i32_2 = arith.constant 0 : i32
    %c0_i32_3 = arith.constant 0 : i32
    return %1, %arg1, %c0_i32_1, %c0_i32_2 : i32, i32, i32, i32
  }
  func.func @transform_2(%arg0: i32, %arg1: i32) -> (i32, i32, i32, i32) {
    %c2_i32 = arith.constant 2 : i32
    %0 = arith.cmpi eq, %arg0, %c2_i32 : i32
    %c1_i32 = arith.constant 1 : i32
    %c2_i32_0 = arith.constant 2 : i32
    %1 = arith.select %0, %c1_i32, %c2_i32_0 : i32
    %c0_i32 = arith.constant 0 : i32
    %c0_i32_1 = arith.constant 0 : i32
    %c0_i32_2 = arith.constant 0 : i32
    return %1, %arg1, %c0_i32, %c0_i32_1 : i32, i32, i32, i32
  }
  func.func @transform_3(%arg0: i32, %arg1: i32) -> (i32, i32, i32, i32) {
    %c0_i32 = arith.constant 0 : i32
    %c0_i32_0 = arith.constant 0 : i32
    %c0_i32_1 = arith.constant 0 : i32
    %c0_i32_2 = arith.constant 0 : i32
    return %arg0, %c0_i32, %c0_i32_0, %c0_i32_1 : i32, i32, i32, i32
  }
  func.func @transform_4(%arg0: i32, %arg1: i32) -> (i32, i32, i32, i32) {
    %c0_i32 = arith.constant 0 : i32
    %c0_i32_0 = arith.constant 0 : i32
    %c0_i32_1 = arith.constant 0 : i32
    %c0_i32_2 = arith.constant 0 : i32
    return %arg0, %c0_i32, %c0_i32_0, %c0_i32_1 : i32, i32, i32, i32
  }
  func.func @transform_5(%arg0: i32, %arg1: i32) -> (i32, i32, i32, i32) {
    %c0_i32 = arith.constant 0 : i32
    %c0_i32_0 = arith.constant 0 : i32
    %c0_i32_1 = arith.constant 0 : i32
    %c0_i32_2 = arith.constant 0 : i32
    return %arg0, %c0_i32, %c0_i32_0, %c0_i32_1 : i32, i32, i32, i32
  }
  func.func @transform_6(%arg0: i32, %arg1: i32) -> (i32, i32, i32, i32) {
    %c0_i32 = arith.constant 0 : i32
    %c0_i32_0 = arith.constant 0 : i32
    %c0_i32_1 = arith.constant 0 : i32
    %c0_i32_2 = arith.constant 0 : i32
    return %arg0, %c0_i32, %c0_i32_0, %c0_i32_1 : i32, i32, i32, i32
  }
  func.func @transform_7(%arg0: i32, %arg1: i32) -> (i32, i32, i32, i32) {
    %c0_i32 = arith.constant 0 : i32
    %c0_i32_0 = arith.constant 0 : i32
    %c0_i32_1 = arith.constant 0 : i32
    %c0_i32_2 = arith.constant 0 : i32
    return %arg0, %c0_i32, %c0_i32_0, %c0_i32_1 : i32, i32, i32, i32
  }
  func.func @transform_8(%arg0: i32, %arg1: i32) -> (i32, i32, i32, i32) {
    %c0_i32 = arith.constant 0 : i32
    %c0_i32_0 = arith.constant 0 : i32
    %c0_i32_1 = arith.constant 0 : i32
    %c0_i32_2 = arith.constant 0 : i32
    return %arg0, %c0_i32, %c0_i32_0, %c0_i32_1 : i32, i32, i32, i32
  }
  func.func @transform_9(%arg0: i32, %arg1: i32) -> (i32, i32, i32, i32) {
    %c0_i32 = arith.constant 0 : i32
    %c0_i32_0 = arith.constant 0 : i32
    %c0_i32_1 = arith.constant 0 : i32
    %c0_i32_2 = arith.constant 0 : i32
    return %arg0, %c0_i32, %c0_i32_0, %c0_i32_1 : i32, i32, i32, i32
  }
  func.func @transform_10(%arg0: i32, %arg1: i32) -> (i32, i32, i32, i32) {
    %c0_i32 = arith.constant 0 : i32
    %c0_i32_0 = arith.constant 0 : i32
    %c0_i32_1 = arith.constant 0 : i32
    %c0_i32_2 = arith.constant 0 : i32
    return %arg0, %c0_i32, %c0_i32_0, %c0_i32_1 : i32, i32, i32, i32
  }
  func.func @transform_11(%arg0: i32, %arg1: i32) -> (i32, i32, i32, i32) {
    %c0_i32 = arith.constant 0 : i32
    %c0_i32_0 = arith.constant 0 : i32
    %c0_i32_1 = arith.constant 0 : i32
    %c0_i32_2 = arith.constant 0 : i32
    return %arg0, %c0_i32, %c0_i32_0, %c0_i32_1 : i32, i32, i32, i32
  }
  func.func @transform_12(%arg0: i32, %arg1: i32) -> (i32, i32, i32, i32) {
    %c0_i32 = arith.constant 0 : i32
    %c0_i32_0 = arith.constant 0 : i32
    %c0_i32_1 = arith.constant 0 : i32
    %c0_i32_2 = arith.constant 0 : i32
    return %arg0, %c0_i32, %c0_i32_0, %c0_i32_1 : i32, i32, i32, i32
  }
  func.func @transform_13(%arg0: i32, %arg1: i32) -> (i32, i32, i32, i32) {
    %c0_i32 = arith.constant 0 : i32
    %c0_i32_0 = arith.constant 0 : i32
    %c0_i32_1 = arith.constant 0 : i32
    %c0_i32_2 = arith.constant 0 : i32
    return %arg0, %c0_i32, %c0_i32_0, %c0_i32_1 : i32, i32, i32, i32
  }
  func.func @transform_14(%arg0: i32, %arg1: i32) -> (i32, i32, i32, i32) {
    %c0_i32 = arith.constant 0 : i32
    %c0_i32_0 = arith.constant 0 : i32
    %c0_i32_1 = arith.constant 0 : i32
    %c0_i32_2 = arith.constant 0 : i32
    return %arg0, %c0_i32, %c0_i32_0, %c0_i32_1 : i32, i32, i32, i32
  }
  func.func @transform_15(%arg0: i32, %arg1: i32) -> (i32, i32, i32, i32) {
    %c0_i32 = arith.constant 0 : i32
    %c0_i32_0 = arith.constant 0 : i32
    %c0_i32_1 = arith.constant 0 : i32
    %c0_i32_2 = arith.constant 0 : i32
    return %arg0, %c0_i32, %c0_i32_0, %c0_i32_1 : i32, i32, i32, i32
  }
  func.func @transform_16(%arg0: i32, %arg1: i32) -> (i32, i32, i32, i32) {
    %c0_i32 = arith.constant 0 : i32
    %c0_i32_0 = arith.constant 0 : i32
    %c0_i32_1 = arith.constant 0 : i32
    %c0_i32_2 = arith.constant 0 : i32
    return %arg0, %c0_i32, %c0_i32_0, %c0_i32_1 : i32, i32, i32, i32
  }
  func.func @transform_17(%arg0: i32, %arg1: i32) -> (i32, i32, i32, i32) {
    %c0_i32 = arith.constant 0 : i32
    %c0_i32_0 = arith.constant 0 : i32
    %c0_i32_1 = arith.constant 0 : i32
    %c0_i32_2 = arith.constant 0 : i32
    return %arg0, %c0_i32, %c0_i32_0, %c0_i32_1 : i32, i32, i32, i32
  }
  func.func @transform_18(%arg0: i32, %arg1: i32) -> (i32, i32, i32, i32) {
    %c0_i32 = arith.constant 0 : i32
    %c0_i32_0 = arith.constant 0 : i32
    %c0_i32_1 = arith.constant 0 : i32
    %c0_i32_2 = arith.constant 0 : i32
    return %arg0, %c0_i32, %c0_i32_0, %c0_i32_1 : i32, i32, i32, i32
  }
  func.func @transform_19(%arg0: i32, %arg1: i32) -> (i32, i32, i32, i32) {
    %c0_i32 = arith.constant 0 : i32
    %c0_i32_0 = arith.constant 0 : i32
    %c0_i32_1 = arith.constant 0 : i32
    %c0_i32_2 = arith.constant 0 : i32
    return %arg0, %c0_i32, %c0_i32_0, %c0_i32_1 : i32, i32, i32, i32
  }
  func.func @transform_20(%arg0: i32, %arg1: i32) -> (i32, i32, i32, i32) {
    %c0_i32 = arith.constant 0 : i32
    %c0_i32_0 = arith.constant 0 : i32
    %c0_i32_1 = arith.constant 0 : i32
    %c0_i32_2 = arith.constant 0 : i32
    return %arg0, %c0_i32, %c0_i32_0, %c0_i32_1 : i32, i32, i32, i32
  }
  func.func @transform_21(%arg0: i32, %arg1: i32) -> (i32, i32, i32, i32) {
    %c0_i32 = arith.constant 0 : i32
    %c0_i32_0 = arith.constant 0 : i32
    %c0_i32_1 = arith.constant 0 : i32
    %c0_i32_2 = arith.constant 0 : i32
    return %arg0, %c0_i32, %c0_i32_0, %c0_i32_1 : i32, i32, i32, i32
  }
  func.func @transform_22(%arg0: i32, %arg1: i32) -> (i32, i32, i32, i32) {
    %c0_i32 = arith.constant 0 : i32
    %c0_i32_0 = arith.constant 0 : i32
    %c0_i32_1 = arith.constant 0 : i32
    %c0_i32_2 = arith.constant 0 : i32
    return %arg0, %c0_i32, %c0_i32_0, %c0_i32_1 : i32, i32, i32, i32
  }
  func.func @transform_23(%arg0: i32, %arg1: i32) -> (i32, i32, i32) {
    %c0_i32 = arith.constant 0 : i32
    %c0_i32_0 = arith.constant 0 : i32
    return %arg1, %arg0, %c0_i32 : i32, i32, i32
  }
}

</mosaic_0001>

<bundles_post_ra>
// kernel: cross_transformer_decoder.1
= control target key start
LH: loop header
LB: loop body
LE: loop exit
PB: predicated region body
PF: predicated region fallthrough
CT: control target
= control target key end

     0   :  { %s10369_s0 = inlined_call_operand.vmem [shape: f32[3,2,8,32], index: 0, kind: input, shape index: {}, may-alias: {0,1,2}]   ;;  %s10370_s1 = inlined_call_operand.vmem [shape: f32[3,2,8,32], index: 1, kind: input, shape index: {}, may-alias: {0,1,2}]   ;;  %s10371_s2 = inlined_call_operand.vmem [shape: f32[3,2,8,32], index: 2, kind: input, shape index: {}, may-alias: {0,1,2}]   ;;  %s10372_s3 = inlined_call_operand.vmem [shape: bf16[3,2,32,96], index: 3, kind: input, shape index: {}]   ;;  %s10373_s4 = inlined_call_operand.vmem [shape: f32[3,2,1,96], index: 4, kind: input, shape index: {}]   ;;  %s10374_s5 = inlined_call_operand.vmem [shape: bf16[3,2,32,32], index: 5, kind: input, shape index: {}]   ;;  %s10375_s6 = inlined_call_operand.vmem [shape: f32[3,2,1,32], index: 6, kind: input, shape index: {}]   ;;  %s10376_s7 = inlined_call_operand.vmem [shape: f32[3,2,1,32], index: 7, kind: input, shape index: {}]   ;;  %s10377_s8 = inlined_call_operand.vmem [shape: f32[3,2,1,32], index: 8, kind: input, shape index: {}]   ;;  %s10378_s9 = inlined_call_operand.vmem [shape: bf16[3,2,32,32], index: 9, kind: input, shape index: {}]   ;;  %s10379_s10 = inlined_call_operand.vmem [shape: f32[3,2,1,32], index: 10, kind: input, shape index: {}]   ;;  %s10380_s11 = inlined_call_operand.vmem [shape: bf16[3,2,32,64], index: 11, kind: input, shape index: {}]   ;;  %s10381_s12 = inlined_call_operand.vmem [shape: f32[3,2,1,64], index: 12, kind: input, shape index: {}]   ;;  %s10382_s13 = inlined_call_operand.vmem [shape: bf16[3,2,32,32], index: 13, kind: input, shape index: {}]   ;;  %s10383_s14 = inlined_call_operand.vmem [shape: f32[3,2,1,32], index: 14, kind: input, shape index: {}]   ;;  %s10384_s15 = inlined_call_operand.vmem [shape: f32[3,2,1,32], index: 15, kind: input, shape index: {}]   ;;  %s10385_s16 = inlined_call_operand.vmem [shape: f32[3,2,1,32], index: 16, kind: input, shape index: {}]   ;;  %s10386_s17 = inlined_call_operand.vmem [shape: bf16[3,2,32,2048], index: 17, kind: input, shape index: {}]   ;;  %s10387_s18 = inlined_call_operand.vmem [shape: f32[3,2,1,2048], index: 18, kind: input, shape index: {}]   ;;  %s10388_s19 = inlined_call_operand.vmem [shape: bf16[3,2,2048,32], index: 19, kind: input, shape index: {}]   ;;  %s10389_s20 = inlined_call_operand.vmem [shape: f32[3,2,1,32], index: 20, kind: input, shape index: {}]   ;;  %s10390_s21 = inlined_call_operand.vmem [shape: f32[3,2,1,32], index: 21, kind: input, shape index: {}]   ;;  %s10391_s22 = inlined_call_operand.vmem [shape: f32[3,2,1,32], index: 22, kind: input, shape index: {}]   ;;  %s10392_s23 = inlined_call_operand.hbm [shape: f32[2,24,32], index: 23, kind: output, shape index: {}]  }
   0x1   :  { %10422 = sst [smem:[#allocation22_spill]] %s10369_s0 }
   0x2   :  { %10423 = sst [smem:[#allocation23_spill]] %s10370_s1 }
   0x3   :  { %10424 = sst [smem:[#allocation24_spill]] %s10371_s2 }
   0x4   :  { %10425 = sst [smem:[#allocation25_spill]] %s10372_s3 }
   0x5   :  { %10426 = sst [smem:[#allocation26_spill]] %s10373_s4 }
   0x6   :  { %10427 = sst [smem:[#allocation27_spill]] %s10374_s5 }
   0x7   :  { %10428 = sst [smem:[#allocation28_spill]] %s10375_s6 }
   0x8   :  { %10429 = sst [smem:[#allocation29_spill]] %s10376_s7 }
   0x9   :  { %10430 = sst [smem:[#allocation30_spill]] %s10377_s8 }
   0xa   :  { %10431 = sst [smem:[#allocation31_spill]] %s10378_s9 }
   0xb   :  { %10432 = sst [smem:[#allocation32_spill]] %s10379_s10 }
   0xc   :  { %10433 = sst [smem:[#allocation33_spill]] %s10380_s11 }
   0xd   :  { %10434 = sst [smem:[#allocation34_spill]] %s10381_s12 }
   0xe   :  { %10435 = sst [smem:[#allocation35_spill]] %s10382_s13 }
   0xf   :  { %10436 = sst [smem:[#allocation36_spill]] %s10383_s14 }
  0x10   :  { %10437 = sst [smem:[#allocation37_spill]] %s10384_s15 }
  0x11   :  { %10438 = sst [smem:[#allocation38_spill]] %s10388_s19 }
  0x12   :  { %10439 = sst [smem:[#allocation39_spill]] %s10390_s21 }
  0x13   :  { %10440 = sst [smem:[#allocation40_spill]] %s10391_s22 }
  0x14   :  { %10441 = sst [smem:[#allocation41_spill]] %s10392_s23 }
  0x15   :  { %28 = vsyncpa [#allocation3], 0 }
  0x16   :  { %30 = vsyncpa [#allocation3 + $0x1], 0  ;;  %s9308_s4 = smov 0   ;;  %s9310_s30 = smov 0  }
  0x17   :  { %s9312_s24 = smov 0   ;;  %s9314_s25 = smov 0  }
  0x18   :  { %s9316_s5 = smov 0   ;;  %s9318_s1 = smov 0  }
  0x19   :  { %s9320_s26 = smov 0   ;;  %s9322_s2 = smov 0  }
  0x1a LB: > { %10442 = sst [smem:[#allocation5_spill]] %s9150_s4  ;;  %s7316_s6 = sadd.s32 4294967295, %s9178_s2   ;;  %s9178_s2 = sphi %s9322_s2, %s36_s2   ;;  %s9174_s26 = sphi %s9320_s26, %s10502_s26   ;;  %s9170_s1 = sphi %s9318_s1, %s10501_s1   ;;  %s9166_s5 = sphi %s9316_s5, %s10500_s5   ;;  %s9162_s25 = sphi %s9314_s25, %s10499_s25   ;;  %s9158_s24 = sphi %s9312_s24, %s10498_s24   ;;  %s9154_s30 = sphi %s9310_s30, %s10497_s30   ;;  %s9150_s4 = sphi %s9308_s4, %s10496_s4  }
  0x1b   : > { %10443 = sst [smem:[#allocation6_spill]] %s9154_s30  ;;  %s7317_s27 = sadd.s32 4294967294, %s9178_s2  }
  0x1c   : > { %10444 = sst [smem:[#allocation7_spill]] %s9158_s24  ;;  %s45_s7 = sadd.s32 1, %s9170_s1 }
  0x1d   : > { %10445 = sst [smem:[#allocation8_spill]] %s9162_s25  ;;  %p46_p0 = scmp.ge.s32.totalorder %s45_s7, 2 }
  0x1e   : > { %10446 = sst [smem:[#allocation9_spill]] %s9166_s5  ;;  %s48_s28 = sadd.s32 1, %s9174_s26 }
  0x1f   : > { %10447 = sst [smem:[#allocation10_spill]] %s9170_s1  ;;  %p679_p1 = scmp.ne.s32.totalorder %s9158_s24, %s9154_s30 }
  0x20   : > { %10448 = sst [smem:[#allocation11_spill]] %s9174_s26  ;;  %p680_p2 = scmp.eq.s32.totalorder %s7316_s6, 5 }
  0x21   : > { %10449 = sst [smem:[#allocation12_spill]] %s9178_s2  ;;  %s10504_s7 = smov (%p46_p0, %s45_s7), 0 }
  0x22   : > { %10450 = sst [smem:[#allocation13_spill]] %s10504_s7  ;;  %s10506_s28 = smov (!%p46_p0, %s48_s28), %s9174_s26 }
  0x23   : > { %s664_s29 = ssub.s32 %s9170_s1, %s10504_s7  ;;  %p9359_p3 = por %p680_p2, %p679_p1 }
  0x24   : > { %p50_p4 = scmp.ge.s32.totalorder %s10506_s28, 3  ;;  %p685_p5 = scmp.ne.s32.totalorder %s9154_s30, %s9150_s4 }
  0x25   : > { %s10451_s3 = scalar_select %p9359_p3, 1, 0 }
  0x26   : > { %p686_p6 = scmp.eq.s32.totalorder %s7317_s27, 5  ;;  %p7320_p7 = scmp.ge.s32.totalorder %s9178_s2, 1 }
  0x27   : > { %10452 = sst [smem:[#allocation14_spill]] %s10451_s3  ;;  %s10508_s28 = smov (%p50_p4, %s10506_s28), 0 }
  0x28   : > { %10453 = sst [smem:[#allocation15_spill]] %s10508_s28  ;;  %p9368_p8 = por %p686_p6, %p685_p5 }
  0x29   : > { %p891_p9 = scmp.lt.s32.totalorder %s9178_s2, 7  ;;  %s665_s6 = ssub.s32 %s9174_s26, %s10508_s28 }
  0x2a   : > { %s10454_s0 = scalar_select %p9368_p8, 1, 0 }
  0x2b   : > { %s669_s23 = sadd.s32 1, %s9158_s24  ;;  %s666_s22 = sor.u32 %s665_s6, %s664_s29 }
  0x2c   : > { %10455 = sst [smem:[#allocation16_spill]] %s10454_s0  ;;  %p892_p10 = pnand %p7320_p7, %p891_p9 }
  0x2d   : > { %p667_p11 = scmp.eq.s32.totalorder %s666_s22, 0 }
  0x2e   : > { %895 = sbr.rel (%p892_p10) target bundleno = 8917 (0x22d5), region = 112 }
  0x2f   : > { %s9377_s7 = scalar_select %p667_p11, %s9158_s24, %s669_s23  }
  0x31   : > { %10456 = sst [smem:[#allocation17_spill]] %s9377_s7 }
  0x35   : > { %p1064_p12 = scmp.lt.s32.totalorder %s9166_s5, 2  ;;  %p1066_p13 = scmp.lt.s32.totalorder %s9162_s25, 1  ;;  %v9180_v0 = vmov 0.0   ;;  %vm9181_vm0 = vmmov 0   ;;  %vm1211_vm1 = vcmask 261120   ;;  %vm1271_vm2 = vcmask 130048  }
  0x36   : > { %8508 = vmatprep.subr.bf16.mxu0 %v9180_v0  ;;  %8512 = vmatprep.mubr.msk.bf16.mxu0 %vm9181_vm0, %v9180_v0  ;;  %s10457_s26 = sld [smem:[#allocation25_spill]]  ;;  %s10459_s19 = sld [smem:[#allocation38_spill]]  ;;  %vm1366_vm3 = vcmask 64512   ;;  %vm1396_vm4 = vcmask 1043456  }
  0x37   : > { %s9385_s27 = scalar_select %p1064_p12, %s9166_s5, 2  ;;  %8516 = vmatprep.subr.bf16.mxu1 %v9180_v0  ;;  %8518 = vmatprep.mubr.msk.bf16.mxu1 %vm9181_vm0, %v9180_v0 }
  0x38   : > { %s9391_s22 = scalar_select %p1066_p13, %s9162_s25, 1 }
  0x39   : > { %s9394_s23 = sshll.u32 %s9385_s27, 1  ;;  %s9397_s29 = sshll.u32 %s9385_s27, 5 }
  0x3a   : > { %s8093_s7 = sshll.u32 %s9385_s27, 11  ;;  %s1069_s2 = sadd.s32 %s9394_s23, %s9391_s22 }
  0x3b   : > { %s7323_s3 = sshll.u32 %s1069_s2, 3  ;;  %s10412_s25 = smov 112  }
  0x3c   : > { %s9403_s1 = scalar_lea.vmem %s10457_s26, %s9397_s29  ;;  %s9410_s4 = scalar_lea.vmem %s10459_s19, %s8093_s7 }
  0x3d   : > { %10458 = sst [smem:[#allocation18_spill]] %s9403_s1  ;;  %v8763_v1 = vld [vmem:[%s9403_s1] sm:$0xff]   ;;  %v8764_v2 = vld [vmem:[%s9403_s1 + $0x8] sm:$0xff]   ;;  %s10460_s26 = sld [smem:[#allocation22_spill]] }
  0x3e   : > { %8509 = vmatpush3.bf16.msra.mxu0 %v8763_v1  ;;  %s10461_s7 = sld [smem:[#allocation26_spill]]  ;;  %s10406_s28 = smov 64  }
  0x3f   : > { %8510 = vmatprep.subr.bf16.mxu0 %v9180_v0  ;;  %s10463_s2 = sld [smem:[#allocation27_spill]]  ;;  %p1072_p0 = scmp.eq.s32.totalorder %s9166_s5, 0 }
  0x40   : > { %p1084_p1 = scmp.eq.s32.totalorder %s9166_s5, 2  ;;  %s10467_s11 = sld [smem:[#allocation33_spill]] }
  0x41   : > { %s10469_s9 = sld [smem:[#allocation31_spill]]  ;;  %s10470_s5 = sld [smem:[#allocation24_spill]] }
  0x42   : > { %8511 = vmatpush3.bf16.msra.mxu0 %v8764_v2  ;;  %s10472_s8 = sld [smem:[#allocation30_spill]]  ;;  %s10473_s12 = sld [smem:[#allocation34_spill]] }
  0x43   : > { %s9419_s6 = scalar_lea.vmem %s10460_s26, %s7323_s3  ;;  %8522 = vmatprep.subr.bf16.mxu0 %v9180_v0  ;;  %s10408_s3 = smov 96  }
  0x44   : > { %v1183_v3 = vld [vmem:[%s9419_s6] sm:$0xff]  ;;  %s9430_s0 = scalar_lea.vmem %s10461_s7, %s9394_s23  ;;  %s10475_s10 = sld [smem:[#allocation32_spill]] }
  0x45   : > { %v1187_v4 = vpack.c.bf16 %v1183_v3, %v1183_v3  ;;  %10462 = sst [smem:[#allocation19_spill]] %s9430_s0  ;;  %v7355_v5 = vld [vmem:[%s9430_s0] ss:$0 sm:$0xff]  ;;  %s9467_s7 = scalar_lea.vmem %s10463_s2, %s9397_s29 }
  0x46   : > { %10464 = sst [smem:[#allocation20_spill]] %s9467_s7  ;;  %v8765_v52 = vld [vmem:[%s9467_s7] sm:$0xff]   ;;  %v8766_v57 = vld [vmem:[%s9467_s7 + $0x8] sm:$0xff]   ;;  %s10465_s2 = sld [smem:[#allocation28_spill]] }
  0x47   : > { %8513 = vmatmul.mubr.msk.bf16.vlgmr.msra.gmra.mrb[0].mxu0 %vm1211_vm1, %v1187_v4  ;;  %s1073_s26 = scalar_select %p1072_p0, 1, 0 }
  0x48   : > { %8524 = vmatprep.mubr.msk.bf16.mxu0 %vm9181_vm0, %v9180_v0  ;;  %s10468_s7 = sld [smem:[#allocation23_spill]]  ;;  %s9509_s1 = scalar_lea.vmem %s10469_s9, %s9397_s29 }
  0x49   : > { %s10477_s13 = sld [smem:[#allocation35_spill]]  ;;  %s10479_s14 = sld [smem:[#allocation36_spill]] }
  0x4a   : > { %s10480_s15 = sld [smem:[#allocation37_spill]]  ;;  %s10485_s9 = smov 64  }
 0x11a   : > { %v1249_v6 = vpop.f32.mrb[0].mxu0 }
 0x11b   : > { %v1250_v7 = vadd.f32 %v7355_v5, %v1249_v6  ;;  %v8514_v8 = vpop.f32.mrb[1].mxu0 }
 0x11c   : > { %v1252_v9 = vpop.f32.mrb[2].mxu0  ;;  %v9083_v8 = vld [vmem:[%s9419_s6] sm:$0xff]  ;;  %s9494_s6 = scalar_lea.vmem %s10467_s11, %s9397_s29  ;;  %s10476_s11 = smov 96  }
 0x11d   : > { %v1255_v10 = vpack.c.bf16 %v1250_v7, %v1250_v7  ;;  %v8515_v11 = vpop.f32.mrb[3].mxu0  ;;  %v1261_v12 = vmul.f32 0.25, %v1250_v7 }
 0x11f   : > { %1267 = vrot.lane.b32.xlu0 %v1255_v10, %s10412_s25  ;;  %v1262_v13 = vpack.c.bf16 %v1261_v12, %v1261_v12 }
 0x121   : > { %1264 = vrot.lane.b32.xlu1 %v1262_v13, %s10412_s25  ;;  %s7324_s25 = sshll.u32 %s1073_s26, 1  ;;  %s9598_s26 = scalar_lea.vmem %s10479_s14, %s9394_s23 }
 0x122   : > { %s1079_s19 = sadd.s32 %s7324_s25, %s9391_s22  ;;  %s10489_s14 = sld [smem:[#allocation8_spill]] }
 0x123   : > { %s7325_s30 = sshll.u32 %s1079_s19, 3  ;;  %s10474_s19 = smov 112  }
 0x124   : > { %s1081_s21 = scalar_lea.vmem %s10468_s7, %s7325_s30  ;;  %s9534_s7 = scalar_lea.vmem %s10472_s8, %s9394_s23 }
 0x125   : > { %1269 = vrot.lane.b32.xlu1 %v1255_v10, %s10408_s3  ;;  %s9634_s8 = scalar_lea.vmem %s10385_s16, %s9394_s23 }
 0x191   : > { %v1268_v14 = vpop.permute.xlu0 %1267 }
 0x192   : > { %1318 = vrot.lane.b32.xlu0 %v1268_v14, %s10408_s3  ;;  %s9482_s3 = scalar_lea.vmem %s10465_s2, %s9394_s23 }
 0x193   : > { %v1265_v15 = vpop.permute.xlu1 %1264  ;;  %10466 = sst [smem:[#allocation21_spill]] %s9482_s3  ;;  %v7363_v2 = vld [vmem:[%s9482_s3] ss:$0 sm:$0xff]  ;;  %s9586_s3 = scalar_lea.vmem %s10477_s13, %s9397_s29 }
 0x194   : > { %s10487_s13 = sld [smem:[#allocation21_spill]] }
 0x197   : > { %v1270_v16 = vpop.permute.xlu1 %1269 }
 0x198   : > { %v1276_v17 = vsel %vm1271_vm2, %v1270_v16, 0  ;;  %v8767_v16 = vld [vmem:[%s9494_s6] sm:$0xff]  }
 0x199   : > { %8517 = vmatpush3.bf16.xpose.msra.mxu1 %v1276_v17  ;;  %v8768_v17 = vld [vmem:[%s9494_s6 + $0x8] sm:$0xff]  }
 0x19a   : > { %8528 = vmatprep.subr.bf16.mxu1 %v9180_v0 }
 0x1a0   : > { %8519 = vmatmul.mubr.msk.bf16.vlgmr.msra.gmra.mrb[0].mxu1 %vm1271_vm2, %v1262_v13 }
 0x1a1   : > { %8530 = vmatprep.mubr.msk.bf16.mxu1 %vm9181_vm0, %v9180_v0 }
 0x204   : > { %v1319_v18 = vpop.permute.xlu0 %1318 }
 0x205   : > { %v1324_v19 = vsel %vm1271_vm2, %v1319_v18, 0  ;;  %v1184_v18 = vld [vmem:[%s1081_s21] sm:$0xff]  ;;  %s9726_s21 = scalar_lea.vmem %s10387_s18, %s9397_s29  ;;  %s10482_s29 = sld [smem:[#allocation19_spill]] }
 0x206   : > { %8523 = vmatpush3.bf16.xpose.msra.mxu0 %v1324_v19  ;;  %v8769_v19 = vld [vmem:[%s9509_s1] sm:$0xff]  }
 0x207   : > { %8534 = vmatprep.subr.bf16.mxu0 %v9180_v0 }
 0x20d   : > { %8525 = vmatmul.mubr.msk.bf16.vlgmr.msra.gmra.mrb[4].mxu0 %vm1271_vm2, %v1265_v15 }
 0x20e   : > { %8536 = vmatprep.mubr.msk.bf16.mxu0 %vm9181_vm0, %v9180_v0 }
 0x273   : > { %v1312_v20 = vpop.f32.mrb[0].mxu1 }
 0x274   : > { %v8520_v21 = vpop.f32.mrb[1].mxu1  ;;  %v1367_v22 = vsel %vm1366_vm3, %v1312_v20, -inf }
 0x275   : > { %1368 = vmax.xlane.f32.xlu1 %v1367_v22  ;;  %v1315_v23 = vpop.f32.mrb[2].mxu1  ;;  %v8770_v22 = vld [vmem:[%s9509_s1 + $0x8] sm:$0xff]  }
 0x276   : > { %v8521_v24 = vpop.f32.mrb[3].mxu1 }
 0x2e0   : > { %v1360_v25 = vpop.f32.mrb[4].mxu0 }
 0x2e1   : > { %v8526_v26 = vpop.f32.mrb[5].mxu0  ;;  %v1370_v27 = vsel %vm1366_vm3, %v1360_v25, -inf }
 0x2e2   : > { %1371 = vmax.xlane.f32.xlu0 %v1370_v27  ;;  %v1363_v28 = vpop.f32.mrb[6].mxu0 }
 0x2e3   : > { %v8527_v29 = vpop.f32.mrb[7].mxu0 }
 0x2e4   : > { %v7368_v29 = vld [vmem:[%s9534_s7] ss:$0 sm:$0xff] }
 0x302   : > { %v1369_v30 = vpop.xlane.xlu1 %1368 }
 0x303   : > { %v1373_v31 = vsub.f32 %v1312_v20, %v1369_v30 }
 0x305   : > { %v1375_v32 = vmul.f32 1.442695, %v1373_v31 }
 0x307   : > { %9039 = vpow2.f32 %v1375_v32 }
 0x311   : > { %v9040_v33 = vpop.eup %9039 }
 0x312   : > { %v1379_v34 = vsel %vm1366_vm3, %v9040_v33, 0.0 }
 0x313   : > { %1380 = vadd.xlane.f32.xlu1 %v1379_v34 }
 0x324   : > { %1391 = vrot.lane.b32.xlu1 %v1255_v10, %s10406_s28 }
 0x36f   : > { %v1372_v35 = vpop.xlane.xlu0 %1371 }
 0x370   : > { %v1374_v36 = vsub.f32 %v1360_v25, %v1372_v35 }
 0x372   : > { %v1377_v37 = vmul.f32 1.442695, %v1374_v36 }
 0x374   : > { %9041 = vpow2.f32 %v1377_v37 }
 0x37e   : > { %v9042_v38 = vpop.eup %9041 }
 0x37f   : > { %v1382_v39 = vsel %vm1366_vm3, %v9042_v38, 0.0 }
 0x380   : > { %1383 = vadd.xlane.f32.xlu0 %v1382_v39 }
 0x396   : > { %1440 = vrot.lane.b32.xlu0 %v1268_v14, %s10406_s28  ;;  %s10410_s28 = smov 16  }
 0x3a0   : > { %v1381_v40 = vpop.xlane.xlu1 %1380 }
 0x3a1   : > { %9043 = vrcp.f32 %v1381_v40 }
 0x3a4   : > { %v1392_v41 = vpop.permute.xlu1 %1391 }
 0x3a5   : > { %v1398_v42 = vsel %vm1396_vm4, %v1392_v41, 0 }
 0x3a6   : > { %8529 = vmatpush3.bf16.msra.mxu1 %v1398_v42 }
 0x3a7   : > { %8540 = vmatprep.subr.bf16.mxu1 %v9180_v0 }
 0x3ab   : > { %v9044_v43 = vpop.eup %9043 }
 0x3ac   : > { %v1386_v44 = vmul.f32 %v9044_v43, %v9040_v33 }
 0x3ae   : > { %v1389_v45 = vpack.c.bf16 %v1386_v44, %v1386_v44 }
 0x3b0   : > { %8531 = vmatmul.mubr.msk.bf16.vlgmr.msra.gmra.mrb[4].mxu1 %vm1366_vm3, %v1389_v45 }
 0x3b1   : > { %8544 = vmatprep.mubr.msk.bf16.mxu1 %vm9181_vm0, %v9180_v0  ;;  %8541 = vmatpush3.bf16.msra.mxu1 %v8765_v52 }
 0x3b2   : > { %8542 = vmatprep.subr.bf16.mxu1 %v9180_v0 }
 0x3b5   : > { %8543 = vmatpush3.bf16.msra.mxu1 %v8766_v57 }
 0x3b6   : > { %8556 = vmatprep.subr.bf16.mxu1 %v9180_v0 }
 0x40d   : > { %v1384_v46 = vpop.xlane.xlu0 %1383 }
 0x40e   : > { %9045 = vrcp.f32 %v1384_v46 }
 0x411   : > { %v1441_v47 = vpop.permute.xlu0 %1440 }
 0x412   : > { %v1446_v48 = vsel %vm1396_vm4, %v1441_v47, 0 }
 0x413   : > { %8535 = vmatpush3.bf16.msra.mxu0 %v1446_v48 }
 0x414   : > { %8548 = vmatprep.subr.bf16.mxu0 %v9180_v0 }
 0x418   : > { %v9046_v49 = vpop.eup %9045 }
 0x419   : > { %v1388_v50 = vmul.f32 %v9046_v49, %v9042_v38 }
 0x41b   : > { %v1390_v51 = vpack.c.bf16 %v1388_v50, %v1388_v50 }
 0x41d   : > { %8537 = vmatmul.mubr.msk.bf16.vlgmr.msra.gmra.mrb[8].mxu0 %vm1366_vm3, %v1390_v51 }
 0x41e   : > { %8552 = vmatprep.mubr.msk.bf16.mxu0 %vm9181_vm0, %v9180_v0  ;;  %8549 = vmatpush3.bf16.msra.mxu0 %v8769_v19 }
 0x41f   : > { %8550 = vmatprep.subr.bf16.mxu0 %v9180_v0 }
 0x422   : > { %8551 = vmatpush3.bf16.msra.mxu0 %v8770_v22  ;;  %v8772_v22 = vld [vmem:[%s9586_s3 + $0x8] sm:$0xff]  }
 0x423   : > { %8564 = vmatprep.subr.bf16.mxu0 %v9180_v0 }
 0x483   : > { %v1434_v53 = vpop.f32.mrb[4].mxu1 }
 0x484   : > { %v8532_v54 = vpop.f32.mrb[5].mxu1 }
 0x485   : > { %v1437_v55 = vpop.f32.mrb[6].mxu1 }
 0x486   : > { %v8533_v56 = vpop.f32.mrb[7].mxu1 }
 0x4f0   : > { %v1482_v58 = vpop.f32.mrb[8].mxu0 }
 0x4f1   : > { %1489 = vrot.lane.b32.xlu0 %v1482_v58, %s10410_s28  ;;  %v8538_v59 = vpop.f32.mrb[9].mxu0  ;;  %s1085_s28 = scalar_select %p1084_p1, 1, 2 }
 0x4f2   : > { %v1485_v60 = vpop.f32.mrb[10].mxu0 }
 0x4f3   : > { %v8539_v61 = vpop.f32.mrb[11].mxu0  ;;  %s10510_s28 = smov (!%p1084_p1, %s1085_s28), 2 }
 0x4f4   : > { %s7326_s24 = sshll.u32 %s10510_s28, 1  ;;  %s10478_s28 = smov 16  }
 0x4f5   : > { %s1090_s2 = sadd.s32 %s7326_s24, %s9391_s22  ;;  %s10471_s22 = sld [smem:[#allocation29_spill]] }
 0x4f6   : > { %s7327_s25 = sshll.u32 %s1090_s2, 3  ;;  %s10481_s2 = sld [smem:[#allocation18_spill]] }
 0x4f7   : > { %s1092_s30 = scalar_lea.vmem %s10470_s5, %s7327_s25  ;;  %s9549_s25 = scalar_lea.vmem %s10473_s12, %s9394_s23 }
 0x4f8   : > { %v1185_v20 = vld [vmem:[%s1092_s30] sm:$0xff]  ;;  %s9561_s30 = scalar_lea.vmem %s10475_s10, %s9394_s23  ;;  %s8092_s5 = sshll.u32 %s9385_s27, 9 }
 0x4f9   : > { %v9515_v21 = vpack.c.bf16 %v1185_v20, %v1184_v18  ;;  %v7373_v33 = vld [vmem:[%s9549_s25] ss:$0 sm:$0xff]  ;;  %s9608_s24 = scalar_lea.vmem %s10386_s17, %s8092_s5  ;;  %s9628_s5 = scalar_lea.vmem %s10480_s15, %s9394_s23 }
 0x4fa   : > { %v7369_v44 = vld [vmem:[%s9561_s30] ss:$0 sm:$0xff]  ;;  %s9918_s27 = scalar_lea.vmem %s10389_s20, %s9394_s23  ;;  %s10483_s10 = sld [smem:[#allocation39_spill]] }
 0x4fb   : > { %s9528_s0 = scalar_lea.vmem %s10471_s22, %s9394_s23  ;;  %v8771_v20 = vld [vmem:[%s9586_s3] sm:$0xff]   ;;  %s10484_s15 = sld [smem:[#allocation40_spill]] }
 0x4fc   : > { %v7367_v27 = vld [vmem:[%s9528_s0] ss:$0 sm:$0xff] }
 0x500   : > { %s9932_s12 = scalar_lea.vmem %s10483_s10, %s9394_s23  ;;  %s10486_s10 = sld [smem:[#allocation20_spill]] }
 0x563   : > { %v1490_v62 = vpop.permute.xlu0 %1489 }
 0x564   : > { %v1492_v63 = vsel %vm1271_vm2, %v1434_v53, %v1490_v62 }
 0x565   : > { %v1493_v1 = vpack.c.bf16 %v1492_v63, %v1492_v63 }
 0x567   : > { %8545 = vmatmul.mubr.msk.bf16.vlgmr.msra.gmra.mrb[8].mxu1 %vm1211_vm1, %v1493_v1 }
 0x568   : > { %8560 = vmatprep.mubr.msk.bf16.mxu1 %vm9181_vm0, %v9180_v0  ;;  %8557 = vmatpush3.bf16.msra.mxu1 %v8767_v16 }
 0x569   : > { %8558 = vmatprep.subr.bf16.mxu1 %v9180_v0 }
 0x56c   : > { %8559 = vmatpush3.bf16.msra.mxu1 %v8768_v17 }
 0x56d   : > { %8570 = vmatprep.subr.bf16.mxu1 %v9180_v0 }
 0x56f   : > { %8561 = vmatmul.mubr.msk.bf16.vlgmr.msra.gmra.mrb[12].mxu1 %vm1211_vm1, %v9515_v21 }
 0x570   : > { %8572 = vmatprep.mubr.msk.bf16.mxu1 %vm9181_vm0, %v9180_v0 }
 0x63a   : > { %v1549_v3 = vpop.f32.mrb[8].mxu1 }
 0x63b   : > { %v1550_v4 = vadd.f32 %v7363_v2, %v1549_v3  ;;  %v8546_v5 = vpop.f32.mrb[9].mxu1 }
 0x63c   : > { %v1552_v6 = vpop.f32.mrb[10].mxu1 }
 0x63d   : > { %v8547_v7 = vpop.f32.mrb[11].mxu1  ;;  %v1557_v9 = vadd.f32 %v9083_v8, %v1550_v4 }
 0x63f   : > { %v1558_v10 = vsel %vm1211_vm1, %v1557_v9, 0.0 }
 0x640   : > { %1559 = vadd.xlane.f32.xlu1 %v1558_v10 }
 0x642   : > { %v1713_v34 = vpop.f32.mrb[12].mxu1 }
 0x643   : > { %v1714_v35 = vadd.f32 %v7373_v33, %v1713_v34  ;;  %v8562_v36 = vpop.f32.mrb[13].mxu1 }
 0x644   : > { %v1716_v37 = vpop.f32.mrb[14].mxu1 }
 0x645   : > { %v1717_v38 = vadd.f32 %v7373_v33, %v1716_v37  ;;  %v8563_v39 = vpop.f32.mrb[15].mxu1 }
 0x647   : > { %v1720_v40 = vpack.c.bf16 %v1717_v38, %v1714_v35  ;;  %v7381_v35 = vld [vmem:[%s9598_s26] ss:$0 sm:$0xff] }
 0x649   : > { %v1738_v41 = vsel %vm1271_vm2, %v1720_v40, 0 }
 0x6cd   : > { %v1560_v11 = vpop.xlane.xlu1 %1559 }
 0x6ce   : > { %v1562_v12 = vmul.f32 0.03125, %v1560_v11 }
 0x6d0   : > { %v1563_v13 = vsub.f32 %v1557_v9, %v1562_v12 }
 0x6d2   : > { %v1564_v14 = vmul.f32 %v1563_v13, %v1563_v13 }
 0x6d4   : > { %v1565_v15 = vsel %vm1211_vm1, %v1564_v14, 0.0 }
 0x6d5   : > { %1566 = vadd.xlane.f32.xlu0 %v1565_v15 }
 0x6eb   : > { %1732 = vrot.lane.b32.xlu0 %v1720_v40, %s10474_s19 }
 0x762   : > { %v1567_v23 = vpop.xlane.xlu0 %1566 }
 0x763   : > { %v1568_v24 = vmul.f32 0.03125, %v1567_v23 }
 0x765   : > { %v1569_v25 = vadd.f32 1e-05, %v1568_v24 }
 0x766   : > { %v1733_v42 = vpop.permute.xlu0 %1732 }
 0x767   : > { %9047 = vrsqrt.f32 %v1569_v25  ;;  %v1784_v43 = vsel %vm1271_vm2, %v1733_v42, 0 }
 0x768   : > { %8571 = vmatpush3.bf16.xpose.msra.mxu1 %v1784_v43 }
 0x769   : > { %8582 = vmatprep.subr.bf16.mxu1 %v9180_v0 }
 0x771   : > { %v9048_v26 = vpop.eup %9047 }
 0x772   : > { %v1571_v28 = vmul.f32 %v9048_v26, %v1563_v13 }
 0x774   : > { %v1578_v30 = vmul.f32 %v7367_v27, %v1571_v28 }
 0x776   : > { %v9538_v31 = vadd.f32 %v7368_v29, %v1578_v30 }
 0x778   : > { %v1586_v32 = vpack.c.bf16 %v9538_v31, %v9538_v31 }
 0x77a   : > { %8553 = vmatmul.mubr.msk.bf16.vlgmr.msra.gmra.mrb[12].mxu0 %vm1211_vm1, %v1586_v32 }
 0x77b   : > { %8566 = vmatprep.mubr.msk.bf16.mxu0 %vm9181_vm0, %v9180_v0  ;;  %8565 = vmatpush3.bf16.xpose.msra.mxu0 %v1738_v41 }
 0x77c   : > { %8576 = vmatprep.subr.bf16.mxu0 %v9180_v0 }
 0x84d   : > { %v1647_v45 = vpop.f32.mrb[12].mxu0 }
 0x84e   : > { %v1648_v46 = vadd.f32 %v7369_v44, %v1647_v45  ;;  %v8554_v47 = vpop.f32.mrb[13].mxu0 }
 0x84f   : > { %v1650_v48 = vpop.f32.mrb[14].mxu0 }
 0x850   : > { %v1726_v49 = vmul.f32 0.25, %v1648_v46  ;;  %v8555_v50 = vpop.f32.mrb[15].mxu0  ;;  %v2048_v48 = vld [vmem:[%s9608_s24 + $0x40] sm:$0xff] }
 0x852   : > { %v1727_v51 = vpack.c.bf16 %v1726_v49, %v1726_v49  ;;  %v2041_v49 = vld [vmem:[%s9608_s24 + $0x8] sm:$0xff] }
 0x854   : > { %1729 = vrot.lane.b32.xlu1 %v1727_v51, %s10474_s19  ;;  %8567 = vmatmul.mubr.msk.bf16.vlgmr.msra.gmra.mrb[16].mxu0 %vm1271_vm2, %v1727_v51  ;;  %v2049_v51 = vld [vmem:[%s9608_s24 + $0x48] sm:$0xff] }
 0x855   : > { %8578 = vmatprep.mubr.msk.bf16.mxu0 %vm9181_vm0, %v9180_v0 }
 0x8c6   : > { %v1730_v52 = vpop.permute.xlu1 %1729 }
 0x8c7   : > { %8573 = vmatmul.mubr.msk.bf16.vlgmr.msra.gmra.mrb[16].mxu1 %vm1271_vm2, %v1730_v52 }
 0x8c8   : > { %8584 = vmatprep.mubr.msk.bf16.mxu1 %vm9181_vm0, %v9180_v0 }
 0x927   : > { %v1774_v53 = vpop.f32.mrb[16].mxu0 }
 0x928   : > { %v8568_v54 = vpop.f32.mrb[17].mxu0  ;;  %v1826_v55 = vsel %vm1271_vm2, %v1774_v53, -inf }
 0x929   : > { %1827 = vmax.xlane.f32.xlu0 %v1826_v55  ;;  %v1777_v56 = vpop.f32.mrb[18].mxu0  ;;  %v7390_v54 = vcombine.high %v2041_v49, %v2049_v51  ;;  %v2056_v55 = vld [vmem:[%s9608_s24 + $0x80] sm:$0xff] }
 0x92a   : > { %v8569_v57 = vpop.f32.mrb[19].mxu0  ;;  %v2064_v56 = vld [vmem:[%s9608_s24 + $0xc0] sm:$0xff] }
 0x92b   : > { %v2057_v57 = vld [vmem:[%s9608_s24 + $0x88] sm:$0xff] }
 0x99a   : > { %v1820_v58 = vpop.f32.mrb[16].mxu1 }
 0x99b   : > { %v8574_v59 = vpop.f32.mrb[17].mxu1  ;;  %v1829_v60 = vsel %vm1271_vm2, %v1820_v58, -inf }
 0x99c   : > { %1830 = vmax.xlane.f32.xlu1 %v1829_v60  ;;  %v1823_v61 = vpop.f32.mrb[18].mxu1  ;;  %v2065_v59 = vld [vmem:[%s9608_s24 + $0xc8] sm:$0xff]  ;;  %v7403_v60 = vcombine.low %v2056_v55, %v2064_v56 }
 0x99d   : > { %v8575_v62 = vpop.f32.mrb[19].mxu1  ;;  %v7405_v61 = vcombine.low %v2057_v57, %v2065_v59 }
 0x99e   : > { %v7406_v62 = vcombine.high %v2057_v57, %v2065_v59 }
 0x9ad   : > { %1896 = vrot.lane.b32.xlu1 %v1733_v42, %s10476_s11 }
 0x9b6   : > { %v1828_v63 = vpop.xlane.xlu0 %1827 }
 0x9b7   : > { %v1832_v1 = vsub.f32 %v1774_v53, %v1828_v63  ;;  %v7389_v53 = vcombine.low %v2041_v49, %v2049_v51  ;;  %v2042_v63 = vld [vmem:[%s9608_s24 + $0x10] sm:$0xff] }
 0x9b8   : > { %v2070_v51 = vld [vmem:[%s9608_s24 + $0xf0] sm:$0xff] }
 0x9b9   : > { %v1834_v4 = vmul.f32 1.442695, %v1832_v1  ;;  %v2050_v1 = vld [vmem:[%s9608_s24 + $0x50] sm:$0xff] }
 0xa29   : > { %v1831_v2 = vpop.xlane.xlu1 %1830 }
 0xa2a   : > { %v1833_v3 = vsub.f32 %v1820_v58, %v1831_v2  ;;  %v7404_v58 = vcombine.high %v2056_v55, %v2064_v56  ;;  %v2043_v2 = vld [vmem:[%s9608_s24 + $0x18] sm:$0xff] }
 0xa2c   : > { %v1836_v5 = vmul.f32 1.442695, %v1833_v3  ;;  %v7392_v3 = vcombine.high %v2042_v63, %v2050_v1 }
 0xa2d   : > { %v1897_v6 = vpop.permute.xlu1 %1896 }
 0xa2e   : > { %9049 = vpow2.f32 %v1836_v5  ;;  %8583 = vmatpush3.bf16.msra.mxu1 %v1897_v6  ;;  %v9186_v5 = vmov 0   ;;  %v7391_v6 = vcombine.low %v2042_v63, %v2050_v1  ;;  %v8776_v63 = vld [vmem:[%s9410_s4 + $0x80] sm:$0xff]   ;;  %v8777_v1 = vld [vmem:[%s9410_s4 + $0x48] sm:$0xff]  }
 0xa2f   : > { %9051 = vpow2.f32 %v1834_v4  ;;  %v2051_v4 = vld [vmem:[%s9608_s24 + $0x58] sm:$0xff] }
 0xa38   : > { %v9050_v7 = vpop.eup %9049 }
 0xa39   : > { %v1841_v8 = vsel %vm1271_vm2, %v9050_v7, 0.0  ;;  %v9052_v9 = vpop.eup %9051 }
 0xa3a   : > { %1842 = vadd.xlane.f32.xlu0 %v1841_v8  ;;  %v1838_v10 = vsel %vm1271_vm2, %v9052_v9, 0.0  ;;  %v7394_v8 = vcombine.high %v2043_v2, %v2051_v4 }
 0xa3e   : > { %1839 = vadd.xlane.f32.xlu0 %v1838_v10 }
 0xa54   : > { %1850 = vrot.lane.b32.xlu0 %v1720_v40, %s10476_s11 }
 0xac7   : > { %v1843_v11 = vpop.xlane.xlu0 %1842 }
 0xac8   : > { %9053 = vrcp.f32 %v1843_v11 }
 0xacb   : > { %v1840_v12 = vpop.xlane.xlu0 %1839 }
 0xacc   : > { %9055 = vrcp.f32 %v1840_v12 }
 0xacf   : > { %v1851_v13 = vpop.permute.xlu0 %1850 }
 0xad0   : > { %8577 = vmatpush3.bf16.msra.mxu0 %v1851_v13  ;;  %v7385_v13 = vld [vmem:[%s9628_s5] ss:$0 sm:$0xff] }
 0xad1   : > { %8588 = vmatprep.subr.bf16.mxu0 %v9180_v0 }
 0xad2   : > { %v9054_v14 = vpop.eup %9053 }
 0xad3   : > { %v1847_v15 = vmul.f32 %v9054_v14, %v9050_v7  ;;  %v7393_v7 = vcombine.low %v2043_v2, %v2051_v4  ;;  %v8778_v2 = vld [vmem:[%s9410_s4 + $0xc8] sm:$0xff]  }
 0xad4   : > { %v8780_v4 = vld [vmem:[%s9410_s4 + $0x88] sm:$0xff]  }
 0xad5   : > { %v1849_v16 = vpack.c.bf16 %v1847_v15, %v1847_v15  ;;  %v7386_v15 = vld [vmem:[%s9634_s8] ss:$0 sm:$0xff] }
 0xad6   : > { %v9056_v17 = vpop.eup %9055 }
 0xad7   : > { %v1845_v18 = vmul.f32 %v9056_v17, %v9052_v9  ;;  %8585 = vmatmul.mubr.msk.bf16.vlgmr.msra.gmra.mrb[20].mxu1 %vm1271_vm2, %v1849_v16  ;;  %v2058_v17 = vld [vmem:[%s9608_s24 + $0x90] sm:$0xff] }
 0xad8   : > { %2351 = vmatprep.mubr.bf16.mxu1 %v9186_v5 }
 0xad9   : > { %v1848_v19 = vpack.c.bf16 %v1845_v18, %v1845_v18  ;;  %v2066_v18 = vld [vmem:[%s9608_s24 + $0xd0] sm:$0xff] }
 0xadb   : > { %8579 = vmatmul.mubr.msk.bf16.vlgmr.msra.gmra.mrb[20].mxu0 %vm1271_vm2, %v1848_v19  ;;  %v2059_v19 = vld [vmem:[%s9608_s24 + $0x98] sm:$0xff] }
 0xadc   : > { %8592 = vmatprep.mubr.msk.bf16.mxu0 %vm9181_vm0, %v9180_v0  ;;  %8589 = vmatpush3.bf16.msra.mxu0 %v8771_v20  ;;  %v2067_v20 = vld [vmem:[%s9608_s24 + $0xd8] sm:$0xff] }
 0xadd   : > { %8590 = vmatprep.subr.bf16.mxu0 %v9180_v0 }
 0xae0   : > { %8591 = vmatpush3.bf16.msra.mxu0 %v8772_v22 }
 0xae1   : > { %2360 = vmatprep.subr.bf16.mxu0 %v7390_v54 }
 0xbaa   : > { %v1936_v23 = vpop.f32.mrb[20].mxu1 }
 0xbab   : > { %1943 = vrot.lane.b32.xlu1 %v1936_v23, %s10478_s28  ;;  %v8586_v24 = vpop.f32.mrb[21].mxu1 }
 0xbac   : > { %v1939_v25 = vpop.f32.mrb[22].mxu1  ;;  %v7408_v24 = vcombine.high %v2058_v17, %v2066_v18 }
 0xbad   : > { %v8587_v26 = vpop.f32.mrb[23].mxu1  ;;  %v7410_v25 = vcombine.high %v2059_v19, %v2067_v20 }
 0xbae   : > { %v1890_v27 = vpop.f32.mrb[20].mxu0  ;;  %v2044_v26 = vld [vmem:[%s9608_s24 + $0x20] sm:$0xff] }
 0xbaf   : > { %v8580_v28 = vpop.f32.mrb[21].mxu0 }
 0xbb0   : > { %v1893_v29 = vpop.f32.mrb[22].mxu0  ;;  %v2045_v28 = vld [vmem:[%s9608_s24 + $0x28] sm:$0xff] }
 0xbb1   : > { %v8581_v30 = vpop.f32.mrb[23].mxu0  ;;  %v2053_v29 = vld [vmem:[%s9608_s24 + $0x68] sm:$0xff] }
 0xbb2   : > { %v7407_v30 = vcombine.low %v2058_v17, %v2066_v18  ;;  %v8792_v17 = vld [vmem:[%s9410_s4 + $0xa0] sm:$0xff]   ;;  %v8793_v18 = vld [vmem:[%s9410_s4 + $0x68] sm:$0xff]  }
 0xc1d   : > { %v1944_v32 = vpop.permute.xlu1 %1943 }
 0xc1e   : > { %v1946_v33 = vsel %vm1271_vm2, %v1890_v27, %v1944_v32  ;;  %v2052_v27 = vld [vmem:[%s9608_s24 + $0x60] sm:$0xff]  ;;  %v7409_v32 = vcombine.low %v2059_v19, %v2067_v20  ;;  %v8794_v19 = vld [vmem:[%s9410_s4 + $0xe8] sm:$0xff]  }
 0xc1f   : > { %v1947_v34 = vpack.c.bf16 %v1946_v33, %v1946_v33  ;;  %v7396_v33 = vcombine.high %v2044_v26, %v2052_v27  ;;  %v8795_v20 = vld [vmem:[%s9410_s4 + $0x28] sm:$0xff]  }
 0xc21   : > { %8593 = vmatmul.mubr.msk.bf16.vlgmr.msra.gmra.mrb[24].mxu0 %vm1211_vm1, %v1947_v34  ;;  %v7398_v34 = vcombine.high %v2045_v28, %v2053_v29 }
 0xc22   : > { %2361 = vmatpush1.bf16.msra.mxu0 %v7389_v53  ;;  %2392 = vmatprep.mubr.bf16.mxu0 %v9186_v5  ;;  %v2071_v53 = vld [vmem:[%s9608_s24 + $0xf8] sm:$0xff] }
 0xc23   : > { %2362 = vmatprep.subr.bf16.mxu0 %v7406_v62  ;;  %v8775_v62 = vld [vmem:[%s9410_s4] sm:$0xff]  }
 0xc26   : > { %2363 = vmatpush1.bf16.msra.mxu0 %v7405_v61  ;;  %v8774_v61 = vld [vmem:[%s9410_s4 + $0xc0] sm:$0xff]  }
 0xc27   : > { %2442 = vmatprep.subr.bf16.mxu0 %v7394_v8  ;;  %v8783_v8 = vld [vmem:[%s9410_s4 + $0x10] sm:$0xff]  }
 0xcf4   : > { %v2003_v36 = vpop.f32.mrb[24].mxu0 }
 0xcf5   : > { %v2004_v37 = vadd.f32 %v7381_v35, %v2003_v36  ;;  %v8594_v38 = vpop.f32.mrb[25].mxu0  ;;  %v2060_v35 = vld [vmem:[%s9608_s24 + $0xa0] sm:$0xff] }
 0xcf6   : > { %v2006_v39 = vpop.f32.mrb[26].mxu0  ;;  %v2068_v36 = vld [vmem:[%s9608_s24 + $0xe0] sm:$0xff]  ;;  %v2069_v38 = vld [vmem:[%s9608_s24 + $0xe8] sm:$0xff] }
 0xcf7   : > { %v8595_v40 = vpop.f32.mrb[27].mxu0  ;;  %v2011_v41 = vadd.f32 %v2004_v37, %v9538_v31  ;;  %v2040_v31 = vld [vmem:[%s9608_s24] sm:$0xff]  ;;  %v2061_v37 = vld [vmem:[%s9608_s24 + $0xa8] sm:$0xff]  ;;  %v7395_v39 = vcombine.low %v2044_v26, %v2052_v27  ;;  %v8799_v26 = vld [vmem:[%s9410_s4 + $0x30] sm:$0xff]  }
 0xcf8   : > { %v7388_v50 = vcombine.high %v2040_v31, %v2048_v48  ;;  %v7387_v52 = vcombine.low %v2040_v31, %v2048_v48  ;;  %v7397_v40 = vcombine.low %v2045_v28, %v2053_v29  ;;  %v7413_v31 = vcombine.low %v2061_v37, %v2069_v38  ;;  %v8800_v27 = vld [vmem:[%s9410_s4 + $0xb0] sm:$0xff]   ;;  %v8801_v28 = vld [vmem:[%s9410_s4 + $0x78] sm:$0xff]  }
 0xcf9   : > { %v2012_v42 = vsel %vm1211_vm1, %v2011_v41, 0.0  ;;  %v8802_v29 = vld [vmem:[%s9410_s4 + $0xf8] sm:$0xff]  }
 0xcfa   : > { %2013 = vadd.xlane.f32.xlu1 %v2012_v42  ;;  %2319 = vmatprep.subr.bf16.mxu1 %v7388_v50  ;;  %v7414_v42 = vcombine.high %v2061_v37, %v2069_v38  ;;  %v2062_v50 = vld [vmem:[%s9608_s24 + $0xb0] sm:$0xff] }
 0xcfb   : > { %2320 = vmatpush1.bf16.msra.mxu1 %v7387_v52  ;;  %v2063_v52 = vld [vmem:[%s9608_s24 + $0xb8] sm:$0xff]  ;;  %v7416_v56 = vcombine.high %v2062_v50, %v2070_v51 }
 0xcfc   : > { %2321 = vmatprep.subr.bf16.mxu1 %v7404_v58  ;;  %v7418_v57 = vcombine.high %v2063_v52, %v2071_v53  ;;  %v7415_v58 = vcombine.low %v2062_v50, %v2070_v51  ;;  %v7417_v59 = vcombine.low %v2063_v52, %v2071_v53 }
 0xcff   : > { %2322 = vmatpush1.bf16.msra.mxu1 %v7403_v60  ;;  %v8773_v60 = vld [vmem:[%s9410_s4 + $0x40] sm:$0xff]  }
 0xd00   : > { %2401 = vmatprep.subr.bf16.mxu1 %v7392_v3  ;;  %v8779_v3 = vld [vmem:[%s9410_s4 + $0x8] sm:$0xff]  }
 0xd87   : > { %v2014_v43 = vpop.xlane.xlu1 %2013 }
 0xd88   : > { %v2015_v44 = vmul.f32 0.03125, %v2014_v43  ;;  %v2046_v43 = vld [vmem:[%s9608_s24 + $0x30] sm:$0xff] }
 0xd8a   : > { %v2016_v45 = vsub.f32 %v2011_v41, %v2015_v44  ;;  %v7412_v41 = vcombine.high %v2060_v35, %v2068_v36  ;;  %v2054_v44 = vld [vmem:[%s9608_s24 + $0x70] sm:$0xff] }
 0xd8b   : > { %v7400_v48 = vcombine.high %v2046_v43, %v2054_v44  ;;  %v7399_v54 = vcombine.low %v2046_v43, %v2054_v44 }
 0xd8c   : > { %v2017_v46 = vmul.f32 %v2016_v45, %v2016_v45 }
 0xd8e   : > { %v2018_v47 = vsel %vm1211_vm1, %v2017_v46, 0.0  ;;  %v2055_v46 = vld [vmem:[%s9608_s24 + $0x78] sm:$0xff] }
 0xd8f   : > { %2019 = vadd.xlane.f32.xlu0 %v2018_v47  ;;  %v7411_v47 = vcombine.low %v2060_v35, %v2068_v36  ;;  %v2076_v35 = vlaneseq }
 0xd91   : > { %v9720_v36 = vshrl.u32 %v2076_v35, 7  ;;  %v8818_v35 = vld [vmem:[%s9410_s4 + $0x1d8] sm:$0xff]  }
 0xd93   : > { %v9729_v37 = vsub.s32 0, %v9720_v36  ;;  %v9732_v38 = vsub.s32 2, %v9720_v36 }
 0xe1c   : > { %v2020_v9 = vpop.xlane.xlu0 %2019 }
 0xe1d   : > { %v2021_v10 = vmul.f32 0.03125, %v2020_v9  ;;  %v8784_v9 = vld [vmem:[%s9410_s4 + $0x90] sm:$0xff]  }
 0xe1f   : > { %v2022_v11 = vadd.f32 1e-05, %v2021_v10  ;;  %v8785_v10 = vld [vmem:[%s9410_s4 + $0x58] sm:$0xff]  }
 0xe21   : > { %9057 = vrsqrt.f32 %v2022_v11  ;;  %v8786_v11 = vld [vmem:[%s9410_s4 + $0xd8] sm:$0xff]  }
 0xe2b   : > { %v9058_v12 = vpop.eup %9057 }
 0xe2c   : > { %v2024_v14 = vmul.f32 %v9058_v12, %v2016_v45  ;;  %v2047_v45 = vld [vmem:[%s9608_s24 + $0x38] sm:$0xff] }
 0xe2d   : > { %v7402_v49 = vcombine.high %v2047_v45, %v2055_v46  ;;  %v7401_v55 = vcombine.low %v2047_v45, %v2055_v46  ;;  %v8787_v12 = vld [vmem:[%s9410_s4 + $0x18] sm:$0xff]  }
 0xe2e   : > { %v2031_v16 = vmul.f32 %v7385_v13, %v2024_v14  ;;  %v8788_v13 = vld [vmem:[%s9410_s4 + $0x98] sm:$0xff]   ;;  %v8789_v14 = vld [vmem:[%s9410_s4 + $0x60] sm:$0xff]  }
 0xe30   : > { %v9642_v22 = vadd.f32 %v7386_v15, %v2031_v16  ;;  %v8790_v15 = vld [vmem:[%s9410_s4 + $0xe0] sm:$0xff]  }
 0xe31   : > { %v8791_v16 = vld [vmem:[%s9410_s4 + $0x20] sm:$0xff]  }
 0xe32   : > { %v9646_v23 = vpack.c.bf16 %v9642_v22, %v9642_v22 }
 0xe34   : > { %7419 = vmatmul.mubr.msk.bf16.vlgmr.msra.gmra.mrb[24].mxu1 %vm1211_vm1, %v9646_v23  ;;  %7420 = vmatmul.mubr.msk.bf16.vlgmr.msra.gmra.mrb[28].mxu0 %vm1211_vm1, %v9646_v23 }
 0xe35   : > { %2402 = vmatpush1.bf16.msra.mxu1 %v7391_v6  ;;  %2443 = vmatpush1.bf16.msra.mxu0 %v7393_v7  ;;  %v8781_v6 = vld [vmem:[%s9410_s4 + $0x50] sm:$0xff]  }
 0xe36   : > { %2403 = vmatprep.subr.bf16.mxu1 %v7408_v24  ;;  %2444 = vmatprep.subr.bf16.mxu0 %v7410_v25  ;;  %v8782_v7 = vld [vmem:[%s9410_s4 + $0xd0] sm:$0xff]  }
 0xe37   : > { %2433 = vmatprep.mubr.bf16.mxu1 %v9186_v5  ;;  %2474 = vmatprep.mubr.bf16.mxu0 %v9186_v5  ;;  %v8797_v24 = vld [vmem:[%s9410_s4 + $0x70] sm:$0xff]  }
 0xe38   : > { %v8798_v25 = vld [vmem:[%s9410_s4 + $0xf0] sm:$0xff]  }
 0xe39   : > { %2404 = vmatpush1.bf16.msra.mxu1 %v7407_v30  ;;  %2445 = vmatpush1.bf16.msra.mxu0 %v7409_v32  ;;  %v8803_v30 = vld [vmem:[%s9410_s4 + $0x38] sm:$0xff]  }
 0xe3a   : > { %2483 = vmatprep.subr.bf16.mxu1 %v7396_v33  ;;  %2524 = vmatprep.subr.bf16.mxu0 %v7398_v34  ;;  %v8804_v32 = vld [vmem:[%s9410_s4 + $0xb8] sm:$0xff]   ;;  %v8805_v33 = vld [vmem:[%s9410_s4 + $0x140] sm:$0xff]  }
 0xe3b   : > { %v8806_v34 = vld [vmem:[%s9410_s4 + $0x1c0] sm:$0xff]  }
 0xe3c   : > { %7421 = vmatmul.mubr.msk.bf16.vlgmr.msra.gmra.mrb[28].mxu1 %vm1211_vm1, %v9646_v23  ;;  %7422 = vmatmul.mubr.msk.bf16.vlgmr.msra.gmra.mrb[32].mxu0 %vm1211_vm1, %v9646_v23 }
 0xe3d   : > { %2484 = vmatpush1.bf16.msra.mxu1 %v7395_v39  ;;  %2525 = vmatpush1.bf16.msra.mxu0 %v7397_v40  ;;  %v9735_v39 = vld [vmem:[%s9726_s21] sm:$0xff]  ;;  %v9738_v40 = vsub.s32 1, %v9720_v36 }
 0xe3e   : > { %2485 = vmatprep.subr.bf16.mxu1 %v7412_v41  ;;  %2526 = vmatprep.subr.bf16.mxu0 %v7414_v42  ;;  %v9741_v41 = vsub.s32 3, %v9720_v36  ;;  %v2079_v42 = vrot.slane %v9735_v39, %v9729_v37  ;;  %v2087_v43 = vrot.slane %v9735_v39, %v9732_v38 }
 0xe3f   : > { %2515 = vmatprep.mubr.bf16.mxu1 %v9186_v5  ;;  %2556 = vmatprep.mubr.bf16.mxu0 %v9186_v5  ;;  %v2083_v44 = vrot.slane %v9735_v39, %v9738_v40 }
 0xe40   : > { %v2091_v45 = vrot.slane %v9735_v39, %v9741_v41 }
 0xe41   : > { %2486 = vmatpush1.bf16.msra.mxu1 %v7411_v47  ;;  %2527 = vmatpush1.bf16.msra.mxu0 %v7413_v31 }
 0xe42   : > { %2565 = vmatprep.subr.bf16.mxu1 %v7400_v48  ;;  %2606 = vmatprep.subr.bf16.mxu0 %v7402_v49 }
 0xe44   : > { %7423 = vmatmul.mubr.msk.bf16.vlgmr.msra.gmra.mrb[32].mxu1 %vm1211_vm1, %v9646_v23  ;;  %7424 = vmatmul.mubr.msk.bf16.vlgmr.msra.gmra.mrb[36].mxu0 %vm1211_vm1, %v9646_v23 }
 0xe45   : > { %2566 = vmatpush1.bf16.msra.mxu1 %v7399_v54  ;;  %2607 = vmatpush1.bf16.msra.mxu0 %v7401_v55  ;;  %v9752_v55 = vsub.s32 5, %v9720_v36 }
 0xe46   : > { %2567 = vmatprep.subr.bf16.mxu1 %v7416_v56  ;;  %2608 = vmatprep.subr.bf16.mxu0 %v7418_v57  ;;  %v9755_v56 = vsub.s32 7, %v9720_v36 }
 0xe47   : > { %2597 = vmatprep.mubr.bf16.mxu1 %v9186_v5  ;;  %2638 = vmatprep.mubr.bf16.mxu0 %v9186_v5 }
 0xe49   : > { %2568 = vmatpush1.bf16.msra.mxu1 %v7415_v58  ;;  %2609 = vmatpush1.bf16.msra.mxu0 %v7417_v59 }
 0xe4a   : > { %8125 = vmatprep.subr.bf16.mxu1 %v8773_v60  ;;  %8147 = vmatprep.subr.bf16.mxu0 %v8774_v61 }
 0xe4c   : > { %7425 = vmatmul.mubr.msk.bf16.vlgmr.msra.gmra.mrb[36].mxu1 %vm1211_vm1, %v9646_v23  ;;  %7426 = vmatmul.mubr.msk.bf16.vlgmr.msra.gmra.mrb[40].mxu0 %vm1211_vm1, %v9646_v23  ;;  %v8796_v23 = vld [vmem:[%s9410_s4 + $0xa8] sm:$0xff]  }
 0xe4d   : > { %8126 = vmatpush3.bf16.msra.mxu1 %v8775_v62  ;;  %8148 = vmatpush3.bf16.msra.mxu0 %v8776_v63 }
 0xe4e   : > { %8127 = vmatprep.subr.bf16.mxu1 %v8777_v1  ;;  %8149 = vmatprep.subr.bf16.mxu0 %v8778_v2  ;;  %v2099_v2 = vrot.slane %v9735_v39, %v9752_v55 }
 0xe51   : > { %8128 = vmatpush3.bf16.msra.mxu1 %v8779_v3  ;;  %8150 = vmatpush3.bf16.msra.mxu0 %v8780_v4  ;;  %v2107_v3 = vrot.slane %v9735_v39, %v9755_v56  ;;  %v8807_v4 = vld [vmem:[%s9410_s4 + $0x100] sm:$0xff]  }
 0xe52   : > { %8129 = vmatprep.subr.bf16.mxu1 %v8781_v6  ;;  %8151 = vmatprep.subr.bf16.mxu0 %v8782_v7  ;;  %v8808_v6 = vld [vmem:[%s9410_s4 + $0x180] sm:$0xff]  }
 0xe55   : > { %8130 = vmatpush3.bf16.msra.mxu1 %v8783_v8  ;;  %8152 = vmatpush3.bf16.msra.mxu0 %v8784_v9  ;;  %v8809_v9 = vld [vmem:[%s9410_s4 + $0x148] sm:$0xff]  }
 0xe56   : > { %8131 = vmatprep.subr.bf16.mxu1 %v8785_v10  ;;  %8153 = vmatprep.subr.bf16.mxu0 %v8786_v11  ;;  %v8810_v10 = vld [vmem:[%s9410_s4 + $0x1c8] sm:$0xff]  }
 0xe59   : > { %8132 = vmatpush3.bf16.msra.mxu1 %v8787_v12  ;;  %8154 = vmatpush3.bf16.msra.mxu0 %v8788_v13 }
 0xe5a   : > { %8133 = vmatprep.subr.bf16.mxu1 %v8789_v14  ;;  %8155 = vmatprep.subr.bf16.mxu0 %v8790_v15 }
 0xe5d   : > { %8134 = vmatpush3.bf16.msra.mxu1 %v8791_v16  ;;  %8156 = vmatpush3.bf16.msra.mxu0 %v8792_v17 }
 0xe5e   : > { %8135 = vmatprep.subr.bf16.mxu1 %v8793_v18  ;;  %8157 = vmatprep.subr.bf16.mxu0 %v8794_v19  ;;  %v8811_v19 = vld [vmem:[%s9410_s4 + $0x108] sm:$0xff]  }
 0xe61   : > { %8136 = vmatpush3.bf16.msra.mxu1 %v8795_v20  ;;  %8158 = vmatpush3.bf16.msra.mxu0 %v8796_v23  ;;  %v8812_v20 = vld [vmem:[%s9410_s4 + $0x188] sm:$0xff]  }
 0xe62   : > { %8137 = vmatprep.subr.bf16.mxu1 %v8797_v24  ;;  %8159 = vmatprep.subr.bf16.mxu0 %v8798_v25  ;;  %v8813_v25 = vld [vmem:[%s9410_s4 + $0x150] sm:$0xff]  }
 0xe65   : > { %8138 = vmatpush3.bf16.msra.mxu1 %v8799_v26  ;;  %8160 = vmatpush3.bf16.msra.mxu0 %v8800_v27  ;;  %v8814_v26 = vld [vmem:[%s9410_s4 + $0x1d0] sm:$0xff]  }
 0xe66   : > { %8139 = vmatprep.subr.bf16.mxu1 %v8801_v28  ;;  %8161 = vmatprep.subr.bf16.mxu0 %v8802_v29 }
 0xe69   : > { %8140 = vmatpush3.bf16.msra.mxu1 %v8803_v30  ;;  %8162 = vmatpush3.bf16.msra.mxu0 %v8804_v32  ;;  %v8815_v32 = vld [vmem:[%s9410_s4 + $0x110] sm:$0xff]  }
 0xe6a   : > { %8169 = vmatprep.subr.bf16.mxu1 %v8805_v33  ;;  %8191 = vmatprep.subr.bf16.mxu0 %v8806_v34  ;;  %v8816_v33 = vld [vmem:[%s9410_s4 + $0x190] sm:$0xff]   ;;  %v8817_v34 = vld [vmem:[%s9410_s4 + $0x158] sm:$0xff]  }
 0xf07   : > { %v2353_v46 = vpop.f32.mrb[24].mxu1  ;;  %v2394_v47 = vpop.f32.mrb[28].mxu0 }
 0xf08   : > { %v2354_v31 = vadd.f32 %v2353_v46, %v2079_v42  ;;  %v2395_v48 = vadd.f32 %v2394_v47, %v2087_v43  ;;  %v2355_v49 = vpop.f32.mrb[25].mxu1  ;;  %v2396_v50 = vpop.f32.mrb[29].mxu0 }
 0xf09   : > { %v2356_v51 = vadd.f32 %v2355_v49, %v2083_v44  ;;  %v2397_v52 = vadd.f32 %v2396_v50, %v2091_v45  ;;  %v2357_v53 = vpop.f32.mrb[26].mxu1  ;;  %v2398_v54 = vpop.f32.mrb[30].mxu0  ;;  %v9784_v49 = vsub.s32 6, %v9720_v36 }
 0xf0a   : > { %v2647_v57 = vmax.f32 %v2354_v31, 0.0  ;;  %v2649_v58 = vmax.f32 %v2395_v48, 0.0  ;;  %v2358_v59 = vpop.f32.mrb[27].mxu1  ;;  %v2399_v60 = vpop.f32.mrb[31].mxu0  ;;  %v8819_v31 = vld [vmem:[%s9410_s4 + $0x118] sm:$0xff]   ;;  %v8822_v53 = vld [vmem:[%s9410_s4 + $0x1e0] sm:$0xff]  }
 0xf0b   : > { %v2648_v61 = vmax.f32 %v2356_v51, 0.0  ;;  %v2650_v62 = vmax.f32 %v2397_v52, 0.0  ;;  %v8820_v48 = vld [vmem:[%s9410_s4 + $0x198] sm:$0xff]   ;;  %v8821_v52 = vld [vmem:[%s9410_s4 + $0x160] sm:$0xff]   ;;  %v9789_v54 = vld [vmem:[%s9726_s21 + $0x8] sm:$0xff]  ;;  %v9796_v60 = vsub.s32 4, %v9720_v36 }
 0xf0c   : > { %v2663_v7 = vpack.c.bf16 %v2647_v57, %v2647_v57  ;;  %v2665_v8 = vpack.c.bf16 %v2649_v58, %v2649_v58  ;;  %v2135_v57 = vrot.slane %v9789_v54, %v9784_v49  ;;  %v8823_v58 = vld [vmem:[%s9410_s4 + $0x120] sm:$0xff]  }
 0xf0d   : > { %v2664_v63 = vpack.c.bf16 %v2648_v61, %v2648_v61  ;;  %v2666_v1 = vpack.c.bf16 %v2650_v62, %v2650_v62  ;;  %v8824_v59 = vld [vmem:[%s9410_s4 + $0x1a0] sm:$0xff]   ;;  %v8825_v61 = vld [vmem:[%s9410_s4 + $0x168] sm:$0xff]  }
 0xf0e   : > { %v8826_v62 = vld [vmem:[%s9410_s4 + $0x1e8] sm:$0xff]  }
 0xf0f   : > { %v9765_v11 = vpop.f32.mrb[28].mxu1  ;;  %v9767_v12 = vpop.f32.mrb[32].mxu0  ;;  %3742 = vmatprep.mubr.bf16.mxu1 %v2664_v63  ;;  %3782 = vmatprep.mubr.bf16.mxu0 %v2666_v1 }
 0xf10   : > { %v2437_v13 = vpop.f32.mrb[29].mxu1  ;;  %v2478_v14 = vpop.f32.mrb[33].mxu0  ;;  %3743 = vmatmul.mubr.bf16.vlgmr.msra.gmra.mrb[40].mxu1 %v2663_v7  ;;  %3783 = vmatmul.mubr.bf16.vlgmr.msra.gmra.mrb[44].mxu0 %v2665_v8  ;;  %v8827_v7 = vld [vmem:[%s9410_s4 + $0x128] sm:$0xff]  }
 0xf11   : > { %v2438_v15 = vadd.f32 %v2437_v13, %v2099_v2  ;;  %v2479_v16 = vadd.f32 %v2478_v14, %v2107_v3  ;;  %8170 = vmatpush3.bf16.msra.mxu1 %v8807_v4  ;;  %8192 = vmatpush3.bf16.msra.mxu0 %v8808_v6  ;;  %v2439_v17 = vpop.f32.mrb[30].mxu1  ;;  %v2480_v18 = vpop.f32.mrb[34].mxu0  ;;  %v8828_v8 = vld [vmem:[%s9410_s4 + $0x1a8] sm:$0xff]  }
 0xf12   : > { %v2440_v23 = vpop.f32.mrb[31].mxu1  ;;  %v2481_v24 = vpop.f32.mrb[35].mxu0  ;;  %8171 = vmatprep.subr.bf16.mxu1 %v8809_v9  ;;  %8193 = vmatprep.subr.bf16.mxu0 %v8810_v10  ;;  %v2095_v9 = vrot.slane %v9735_v39, %v9796_v60  ;;  %v2103_v10 = vrot.slane %v9735_v39, %v9784_v49  ;;  %v2115_v17 = vrot.slane %v9789_v54, %v9738_v40  ;;  %v8832_v39 = vld [vmem:[%s9410_s4 + $0x1b0] sm:$0xff]  }
 0xf13   : > { %v2652_v27 = vmax.f32 %v2438_v15, 0.0  ;;  %v2654_v28 = vmax.f32 %v2479_v16, 0.0  ;;  %v8829_v15 = vld [vmem:[%s9410_s4 + $0x170] sm:$0xff]   ;;  %v2123_v18 = vrot.slane %v9789_v54, %v9741_v41  ;;  %v8833_v24 = vld [vmem:[%s9410_s4 + $0x178] sm:$0xff]  }
 0xf14   : > { %v8830_v16 = vld [vmem:[%s9410_s4 + $0x1f0] sm:$0xff]   ;;  %v2477_v23 = vadd.f32 %v9767_v12, %v2103_v10  ;;  %v8838_v12 = vld [vmem:[%s9410_s4 + $0x2c0] sm:$0xff]   ;;  %v8857_v10 = vld [vmem:[%s9410_s4 + $0x268] sm:$0xff]  }
 0xf15   : > { %v2668_v29 = vpack.c.bf16 %v2652_v27, %v2652_v27  ;;  %v2670_v30 = vpack.c.bf16 %v2654_v28, %v2654_v28  ;;  %8172 = vmatpush3.bf16.msra.mxu1 %v8811_v19  ;;  %8194 = vmatpush3.bf16.msra.mxu0 %v8812_v20  ;;  %v8831_v19 = vld [vmem:[%s9410_s4 + $0x130] sm:$0xff]   ;;  %v2436_v20 = vadd.f32 %v9765_v11, %v2095_v9  ;;  %v8835_v28 = vld [vmem:[%s9410_s4 + $0x138] sm:$0xff]   ;;  %v8837_v11 = vld [vmem:[%s9410_s4 + $0x240] sm:$0xff]  }
 0xf16   : > { %8173 = vmatprep.subr.bf16.mxu1 %v8813_v25  ;;  %8195 = vmatprep.subr.bf16.mxu0 %v8814_v26  ;;  %v8834_v25 = vld [vmem:[%s9410_s4 + $0x1f8] sm:$0xff]   ;;  %v8856_v9 = vld [vmem:[%s9410_s4 + $0x2a0] sm:$0xff]  }
 0xf17   : > { %v9777_v42 = vpop.f32.mrb[32].mxu1  ;;  %v9779_v43 = vpop.f32.mrb[36].mxu0  ;;  %3822 = vmatprep.mubr.bf16.mxu1 %v2668_v29  ;;  %3862 = vmatprep.mubr.bf16.mxu0 %v2670_v30  ;;  %v8836_v29 = vld [vmem:[%s9410_s4 + $0x1b8] sm:$0xff]   ;;  %v2651_v30 = vmax.f32 %v2436_v20, 0.0  ;;  %v2139_v20 = vrot.slane %v9789_v54, %v9755_v56 }
 0xf18   : > { %v2519_v44 = vpop.f32.mrb[33].mxu1  ;;  %v2560_v45 = vpop.f32.mrb[37].mxu0 }
 0xf19   : > { %8174 = vmatpush3.bf16.msra.mxu1 %v8815_v32  ;;  %8196 = vmatpush3.bf16.msra.mxu0 %v8816_v33  ;;  %v2521_v46 = vpop.f32.mrb[34].mxu1  ;;  %v2562_v47 = vpop.f32.mrb[38].mxu0  ;;  %v2520_v26 = vadd.f32 %v2519_v44, %v2115_v17  ;;  %v2561_v27 = vadd.f32 %v2560_v45, %v2123_v18  ;;  %v2653_v32 = vmax.f32 %v2477_v23, 0.0  ;;  %v2667_v44 = vpack.c.bf16 %v2651_v30, %v2651_v30  ;;  %v8861_v17 = vld [vmem:[%s9410_s4 + $0x270] sm:$0xff]  }
 0xf1a   : > { %v2522_v50 = vpop.f32.mrb[35].mxu1  ;;  %v2563_v51 = vpop.f32.mrb[39].mxu0  ;;  %8175 = vmatprep.subr.bf16.mxu1 %v8817_v34  ;;  %8197 = vmatprep.subr.bf16.mxu0 %v8818_v35  ;;  %v8839_v35 = vld [vmem:[%s9410_s4 + $0x200] sm:$0xff]   ;;  %v2119_v18 = vrot.slane %v9789_v54, %v9732_v38  ;;  %v8863_v23 = vld [vmem:[%s9410_s4 + $0x230] sm:$0xff]  }
 0xf1b   : > { %v2656_v33 = vmax.f32 %v2520_v26, 0.0  ;;  %v2658_v34 = vmax.f32 %v2561_v27, 0.0  ;;  %v2669_v45 = vpack.c.bf16 %v2653_v32, %v2653_v32  ;;  %v8840_v46 = vld [vmem:[%s9410_s4 + $0x280] sm:$0xff]   ;;  %v8843_v51 = vld [vmem:[%s9410_s4 + $0x208] sm:$0xff]   ;;  %v8865_v26 = vld [vmem:[%s9410_s4 + $0x278] sm:$0xff]  }
 0xf1c   : > { %v2559_v27 = vadd.f32 %v9779_v43, %v2119_v18  ;;  %v8867_v32 = vld [vmem:[%s9410_s4 + $0x238] sm:$0xff]   ;;  %v8870_v43 = vld [vmem:[%s9410_s4 + $0x3c0] sm:$0xff]   ;;  %v8895_v18 = vld [vmem:[%s9410_s4 + $0x330] sm:$0xff]  }
 0xf1d   : > { %8176 = vmatpush3.bf16.msra.mxu1 %v8819_v31  ;;  %8198 = vmatpush3.bf16.msra.mxu0 %v8820_v48  ;;  %v2672_v47 = vpack.c.bf16 %v2656_v33, %v2656_v33  ;;  %v8841_v31 = vld [vmem:[%s9410_s4 + $0x248] sm:$0xff]   ;;  %v2674_v50 = vpack.c.bf16 %v2658_v34, %v2658_v34 }
 0xf1e   : > { %8177 = vmatprep.subr.bf16.mxu1 %v8821_v52  ;;  %8199 = vmatprep.subr.bf16.mxu0 %v8822_v53  ;;  %v8842_v48 = vld [vmem:[%s9410_s4 + $0x2c8] sm:$0xff]   ;;  %v8845_v53 = vld [vmem:[%s9410_s4 + $0x250] sm:$0xff]   ;;  %v2657_v33 = vmax.f32 %v2559_v27, 0.0 }
 0xf1f   : > { %v9800_v63 = vpop.f32.mrb[36].mxu1  ;;  %v2640_v1 = vpop.f32.mrb[40].mxu0  ;;  %v8844_v52 = vld [vmem:[%s9410_s4 + $0x288] sm:$0xff]  }
 0xf20   : > { %v9802_v2 = vadd.f32 %v2640_v1, %v2135_v57  ;;  %v9804_v3 = vpop.f32.mrb[37].mxu1  ;;  %v9806_v4 = vpop.f32.mrb[41].mxu0  ;;  %v8846_v57 = vld [vmem:[%s9410_s4 + $0x2d0] sm:$0xff]   ;;  %v8851_v1 = vld [vmem:[%s9410_s4 + $0x218] sm:$0xff]  }
 0xf21   : > { %8178 = vmatpush3.bf16.msra.mxu1 %v8823_v58  ;;  %8200 = vmatpush3.bf16.msra.mxu0 %v8824_v59  ;;  %v2603_v6 = vpop.f32.mrb[38].mxu1  ;;  %v2644_v36 = vpop.f32.mrb[42].mxu0  ;;  %v8847_v58 = vld [vmem:[%s9410_s4 + $0x210] sm:$0xff]   ;;  %v2643_v30 = vadd.f32 %v9806_v4, %v2139_v20  ;;  %v8872_v4 = vld [vmem:[%s9410_s4 + $0x380] sm:$0xff]   ;;  %v8897_v20 = vld [vmem:[%s9410_s4 + $0x378] sm:$0xff]  }
 0xf22   : > { %v2604_v13 = vpop.f32.mrb[39].mxu1  ;;  %v2645_v14 = vpop.f32.mrb[43].mxu0  ;;  %8179 = vmatprep.subr.bf16.mxu1 %v8825_v61  ;;  %8201 = vmatprep.subr.bf16.mxu0 %v8826_v62  ;;  %v8848_v59 = vld [vmem:[%s9410_s4 + $0x290] sm:$0xff]   ;;  %v8849_v61 = vld [vmem:[%s9410_s4 + $0x258] sm:$0xff]   ;;  %v8853_v36 = vld [vmem:[%s9410_s4 + $0x260] sm:$0xff]  }
 0xf23   : > { %v8850_v62 = vld [vmem:[%s9410_s4 + $0x2d8] sm:$0xff]   ;;  %v8858_v13 = vld [vmem:[%s9410_s4 + $0x2e8] sm:$0xff]  }
 0xf24   : > { %v8852_v6 = vld [vmem:[%s9410_s4 + $0x298] sm:$0xff]   ;;  %v8859_v14 = vld [vmem:[%s9410_s4 + $0x228] sm:$0xff]  }
 0xf25   : > { %8180 = vmatpush3.bf16.msra.mxu1 %v8827_v7  ;;  %8202 = vmatpush3.bf16.msra.mxu0 %v8828_v8  ;;  %v8854_v7 = vld [vmem:[%s9410_s4 + $0x2e0] sm:$0xff]  }
 0xf26   : > { %8181 = vmatprep.subr.bf16.mxu1 %v8829_v15  ;;  %8203 = vmatprep.subr.bf16.mxu0 %v8830_v16  ;;  %v8855_v8 = vld [vmem:[%s9410_s4 + $0x220] sm:$0xff]   ;;  %v2111_v15 = vrot.slane %v9789_v54, %v9729_v37  ;;  %v8860_v16 = vld [vmem:[%s9410_s4 + $0x2a8] sm:$0xff]  }
 0xf29   : > { %8182 = vmatpush3.bf16.msra.mxu1 %v8831_v19  ;;  %8204 = vmatpush3.bf16.msra.mxu0 %v8832_v39  ;;  %v8862_v19 = vld [vmem:[%s9410_s4 + $0x2f0] sm:$0xff]   ;;  %v2131_v39 = vrot.slane %v9789_v54, %v9752_v55 }
 0xf2a   : > { %8183 = vmatprep.subr.bf16.mxu1 %v8833_v24  ;;  %8205 = vmatprep.subr.bf16.mxu0 %v8834_v25  ;;  %v2518_v24 = vadd.f32 %v9777_v42, %v2111_v15  ;;  %v8864_v25 = vld [vmem:[%s9410_s4 + $0x2b0] sm:$0xff]   ;;  %v8868_v42 = vld [vmem:[%s9410_s4 + $0x2b8] sm:$0xff]   ;;  %v8892_v15 = vld [vmem:[%s9410_s4 + $0x3a8] sm:$0xff]  }
 0xf2d   : > { %8184 = vmatpush3.bf16.msra.mxu1 %v8835_v28  ;;  %8206 = vmatpush3.bf16.msra.mxu0 %v8836_v29  ;;  %v8866_v28 = vld [vmem:[%s9410_s4 + $0x2f8] sm:$0xff]   ;;  %v2602_v29 = vadd.f32 %v9804_v3, %v2131_v39  ;;  %v8871_v3 = vld [vmem:[%s9410_s4 + $0x300] sm:$0xff]   ;;  %v8896_v39 = vld [vmem:[%s9410_s4 + $0x3b0] sm:$0xff]  }
 0xf2e   : > { %8213 = vmatprep.subr.bf16.mxu1 %v8837_v11  ;;  %8235 = vmatprep.subr.bf16.mxu0 %v8838_v12  ;;  %v2655_v11 = vmax.f32 %v2518_v24, 0.0  ;;  %v8869_v12 = vld [vmem:[%s9410_s4 + $0x340] sm:$0xff]  }
 0xf2f   : > { %v2660_v34 = vmax.f32 %v2602_v29, 0.0  ;;  %v7427_v29 = vld [vmem:[%s9918_s27] ss:$0 sm:$0xff] }
 0xf30   : > { %3823 = vmatmul.mubr.bf16.vlgmr.msra.gmra.mrb[44].mxu1 %v2667_v44  ;;  %3863 = vmatmul.mubr.bf16.vlgmr.msra.gmra.mrb[48].mxu0 %v2669_v45  ;;  %v2671_v44 = vpack.c.bf16 %v2655_v11, %v2655_v11  ;;  %v2673_v45 = vpack.c.bf16 %v2657_v33, %v2657_v33 }
 0xf31   : > { %8214 = vmatpush3.bf16.msra.mxu1 %v8839_v35  ;;  %3902 = vmatprep.mubr.bf16.mxu1 %v2672_v47  ;;  %v2662_v35 = vmax.f32 %v2643_v30, 0.0  ;;  %v2676_v47 = vpack.c.bf16 %v2660_v34, %v2660_v34 }
 0xf32   : > { %8236 = vmatpush3.bf16.msra.mxu0 %v8840_v46  ;;  %3942 = vmatprep.mubr.bf16.mxu0 %v2674_v50  ;;  %v8873_v46 = vld [vmem:[%s9410_s4 + $0x348] sm:$0xff]  }
 0xf33   : > { %8215 = vmatprep.subr.bf16.mxu1 %v8841_v31  ;;  %8237 = vmatprep.subr.bf16.mxu0 %v8842_v48  ;;  %v8874_v31 = vld [vmem:[%s9410_s4 + $0x3c8] sm:$0xff]   ;;  %v2678_v48 = vpack.c.bf16 %v2662_v35, %v2662_v35 }
 0xf34   : > { %v8875_v50 = vld [vmem:[%s9410_s4 + $0x308] sm:$0xff]  }
 0xf35   : > { %8216 = vmatpush3.bf16.msra.mxu1 %v8843_v51  ;;  %v8876_v51 = vld [vmem:[%s9410_s4 + $0x388] sm:$0xff]  }
 0xf36   : > { %8238 = vmatpush3.bf16.msra.mxu0 %v8844_v52  ;;  %8217 = vmatprep.subr.bf16.mxu1 %v8845_v53  ;;  %v8877_v52 = vld [vmem:[%s9410_s4 + $0x350] sm:$0xff]  }
 0xf37   : > { %8239 = vmatprep.subr.bf16.mxu0 %v8846_v57  ;;  %v8878_v53 = vld [vmem:[%s9410_s4 + $0x3d0] sm:$0xff]  }
 0xf38   : > { %v8879_v57 = vld [vmem:[%s9410_s4 + $0x310] sm:$0xff]  }
 0xf39   : > { %8218 = vmatpush3.bf16.msra.mxu1 %v8847_v58  ;;  %v8880_v58 = vld [vmem:[%s9410_s4 + $0x390] sm:$0xff]  }
 0xf3a   : > { %8240 = vmatpush3.bf16.msra.mxu0 %v8848_v59  ;;  %8219 = vmatprep.subr.bf16.mxu1 %v8849_v61  ;;  %v8881_v59 = vld [vmem:[%s9410_s4 + $0x358] sm:$0xff]  }
 0xf3b   : > { %8241 = vmatprep.subr.bf16.mxu0 %v8850_v62  ;;  %v8882_v61 = vld [vmem:[%s9410_s4 + $0x3d8] sm:$0xff]  }
 0xf3c   : > { %v8883_v62 = vld [vmem:[%s9410_s4 + $0x318] sm:$0xff]  }
 0xf3d   : > { %8220 = vmatpush3.bf16.msra.mxu1 %v8851_v1  ;;  %v8884_v1 = vld [vmem:[%s9410_s4 + $0x398] sm:$0xff]  }
 0xf3e   : > { %8242 = vmatpush3.bf16.msra.mxu0 %v8852_v6  ;;  %8221 = vmatprep.subr.bf16.mxu1 %v8853_v36  ;;  %v8885_v6 = vld [vmem:[%s9410_s4 + $0x360] sm:$0xff]  }
 0xf3f   : > { %8243 = vmatprep.subr.bf16.mxu0 %v8854_v7  ;;  %v8886_v36 = vld [vmem:[%s9410_s4 + $0x3e0] sm:$0xff]  }
 0xf40   : > { %v8887_v7 = vld [vmem:[%s9410_s4 + $0x320] sm:$0xff]  }
 0xf41   : > { %8222 = vmatpush3.bf16.msra.mxu1 %v8855_v8  ;;  %v8888_v8 = vld [vmem:[%s9410_s4 + $0x3a0] sm:$0xff]  }
 0xf42   : > { %8244 = vmatpush3.bf16.msra.mxu0 %v8856_v9  ;;  %8223 = vmatprep.subr.bf16.mxu1 %v8857_v10  ;;  %v8889_v9 = vld [vmem:[%s9410_s4 + $0x368] sm:$0xff]  }
 0xf43   : > { %8245 = vmatprep.subr.bf16.mxu0 %v8858_v13  ;;  %v8890_v10 = vld [vmem:[%s9410_s4 + $0x3e8] sm:$0xff]  }
 0xf44   : > { %v8891_v13 = vld [vmem:[%s9410_s4 + $0x328] sm:$0xff]  }
 0xf45   : > { %8224 = vmatpush3.bf16.msra.mxu1 %v8859_v14  ;;  %v2127_v14 = vrot.slane %v9789_v54, %v9796_v60  ;;  %v8899_v54 = vld [vmem:[%s9410_s4 + $0x338] sm:$0xff]  }
 0xf46   : > { %8246 = vmatpush3.bf16.msra.mxu0 %v8860_v16  ;;  %8225 = vmatprep.subr.bf16.mxu1 %v8861_v17  ;;  %v8893_v16 = vld [vmem:[%s9410_s4 + $0x370] sm:$0xff]  }
 0xf47   : > { %8247 = vmatprep.subr.bf16.mxu0 %v8862_v19  ;;  %v8894_v17 = vld [vmem:[%s9410_s4 + $0x3f0] sm:$0xff]   ;;  %v2600_v19 = vadd.f32 %v9800_v63, %v2127_v14 }
 0xf49   : > { %8226 = vmatpush3.bf16.msra.mxu1 %v8863_v23  ;;  %v8898_v23 = vld [vmem:[%s9410_s4 + $0x3f8] sm:$0xff]   ;;  %v2659_v24 = vmax.f32 %v2600_v19, 0.0 }
 0xf4a   : > { %8248 = vmatpush3.bf16.msra.mxu0 %v8864_v25  ;;  %8227 = vmatprep.subr.bf16.mxu1 %v8865_v26  ;;  %v8900_v25 = vld [vmem:[%s9410_s4 + $0x3b8] sm:$0xff]   ;;  %v2661_v26 = vmax.f32 %v9802_v2, 0.0 }
 0xf4b   : > { %8249 = vmatprep.subr.bf16.mxu0 %v8866_v28  ;;  %v2675_v27 = vpack.c.bf16 %v2659_v24, %v2659_v24 }
 0xf4c   : > { %v2677_v63 = vpack.c.bf16 %v2661_v26, %v2661_v26 }
 0xf4d   : > { %8228 = vmatpush3.bf16.msra.mxu1 %v8867_v32 }
 0xf4e   : > { %8250 = vmatpush3.bf16.msra.mxu0 %v8868_v42  ;;  %8257 = vmatprep.subr.bf16.mxu1 %v8869_v12 }
 0xf4f   : > { %8279 = vmatprep.subr.bf16.mxu0 %v8870_v43 }
 0xf50   : > { %3903 = vmatmul.mubr.bf16.vlgmr.msra.gmra.mrb[48].mxu1 %v2671_v44 }
 0xf51   : > { %3943 = vmatmul.mubr.bf16.vlgmr.msra.gmra.mrb[52].mxu0 %v2673_v45  ;;  %8258 = vmatpush3.bf16.msra.mxu1 %v8871_v3 }
 0xf52   : > { %3982 = vmatprep.mubr.bf16.mxu1 %v2676_v47  ;;  %8280 = vmatpush3.bf16.msra.mxu0 %v8872_v4 }
 0xf53   : > { %4022 = vmatprep.mubr.bf16.mxu0 %v2678_v48  ;;  %8259 = vmatprep.subr.bf16.mxu1 %v8873_v46 }
 0xf54   : > { %8281 = vmatprep.subr.bf16.mxu0 %v8874_v31 }
 0xf55   : > { %8260 = vmatpush3.bf16.msra.mxu1 %v8875_v50 }
 0xf56   : > { %8282 = vmatpush3.bf16.msra.mxu0 %v8876_v51  ;;  %8261 = vmatprep.subr.bf16.mxu1 %v8877_v52 }
 0xf57   : > { %8283 = vmatprep.subr.bf16.mxu0 %v8878_v53 }
 0xf59   : > { %8262 = vmatpush3.bf16.msra.mxu1 %v8879_v57 }
 0xf5a   : > { %8284 = vmatpush3.bf16.msra.mxu0 %v8880_v58  ;;  %8263 = vmatprep.subr.bf16.mxu1 %v8881_v59 }
 0xf5b   : > { %8285 = vmatprep.subr.bf16.mxu0 %v8882_v61 }
 0xf5d   : > { %8264 = vmatpush3.bf16.msra.mxu1 %v8883_v62 }
 0xf5e   : > { %8286 = vmatpush3.bf16.msra.mxu0 %v8884_v1  ;;  %8265 = vmatprep.subr.bf16.mxu1 %v8885_v6 }
 0xf5f   : > { %8287 = vmatprep.subr.bf16.mxu0 %v8886_v36 }
 0xf61   : > { %8266 = vmatpush3.bf16.msra.mxu1 %v8887_v7 }
 0xf62   : > { %8288 = vmatpush3.bf16.msra.mxu0 %v8888_v8  ;;  %8267 = vmatprep.subr.bf16.mxu1 %v8889_v9 }
 0xf63   : > { %8289 = vmatprep.subr.bf16.mxu0 %v8890_v10 }
 0xf65   : > { %8268 = vmatpush3.bf16.msra.mxu1 %v8891_v13 }
 0xf66   : > { %8290 = vmatpush3.bf16.msra.mxu0 %v8892_v15  ;;  %8269 = vmatprep.subr.bf16.mxu1 %v8893_v16 }
 0xf67   : > { %8291 = vmatprep.subr.bf16.mxu0 %v8894_v17 }
 0xf69   : > { %8270 = vmatpush3.bf16.msra.mxu1 %v8895_v18 }
 0xf6a   : > { %8292 = vmatpush3.bf16.msra.mxu0 %v8896_v39  ;;  %8271 = vmatprep.subr.bf16.mxu1 %v8897_v20 }
 0xf6b   : > { %8293 = vmatprep.subr.bf16.mxu0 %v8898_v23 }
 0xf6d   : > { %8272 = vmatpush3.bf16.msra.mxu1 %v8899_v54 }
 0xf6e   : > { %8294 = vmatpush3.bf16.msra.mxu0 %v8900_v25  ;;  %8596 = vmatprep.subr.bf16.mxu1 %v9180_v0 }
 0xf6f   : > { %8604 = vmatprep.subr.bf16.mxu0 %v9180_v0 }
 0xf70   : > { %3983 = vmatmul.mubr.bf16.vlgmr.msra.gmra.mrb[52].mxu1 %v2675_v27 }
 0xf71   : > { %4023 = vmatmul.mubr.bf16.vlgmr.msra.gmra.mrb[56].mxu0 %v2677_v63  ;;  %8600 = vmatprep.mubr.msk.bf16.mxu1 %vm9181_vm0, %v9180_v0 }
 0xf72   : > { %8606 = vmatprep.mubr.msk.bf16.mxu0 %vm9181_vm0, %v9180_v0 }
 0xfe3   : > { %v8141_v2 = vpop.f32.mrb[40].mxu1  ;;  %v8163_v28 = vpop.f32.mrb[44].mxu0 }
 0xfe4   : > { %v8142_v30 = vpop.f32.mrb[41].mxu1  ;;  %v8164_v32 = vpop.f32.mrb[45].mxu0 }
 0xfe5   : > { %v8143_v11 = vadd.f32 %v8142_v30, %v8141_v2  ;;  %v8165_v42 = vadd.f32 %v8164_v32, %v8163_v28  ;;  %v8144_v12 = vpop.f32.mrb[42].mxu1  ;;  %v8166_v33 = vpop.f32.mrb[46].mxu0  ;;  %v8901_v32 = vld [vmem:[%s10481_s2 + $0x10] sm:$0xff]  }
 0xfe6   : > { %v8145_v43 = vpop.f32.mrb[43].mxu1  ;;  %v8167_v34 = vpop.f32.mrb[47].mxu0  ;;  %8597 = vmatpush3.bf16.msra.mxu1 %v8901_v32 }
 0xfe7   : > { %v3745_v35 = vadd.f32 %v8143_v11, %v7427_v29  ;;  %v8902_v11 = vld [vmem:[%s10481_s2 + $0x18] sm:$0xff]   ;;  %8598 = vmatprep.subr.bf16.mxu1 %v9180_v0  ;;  %s9938_s2 = scalar_lea.vmem %s10484_s15, %s9394_s23  ;;  %v7556_v43 = vld [vmem:[%s9932_s12] ss:$0 sm:$0xff]  ;;  %s10490_s15 = sld [smem:[#allocation9_spill]] }
 0xfe9   : > { %v3785_v3 = vadd.f32 %v8165_v42, %v3745_v35  ;;  %v7557_v35 = vld [vmem:[%s9938_s2] ss:$0 sm:$0xff] }
 0xfea   : > { %8599 = vmatpush3.bf16.msra.mxu1 %v8902_v11 }
 0xfeb   : > { %8610 = vmatprep.subr.bf16.mxu1 %v9180_v0 }
0x1003   : > { %v8185_v44 = vpop.f32.mrb[44].mxu1  ;;  %v8207_v4 = vpop.f32.mrb[48].mxu0 }
0x1004   : > { %v8186_v45 = vpop.f32.mrb[45].mxu1  ;;  %v8208_v46 = vpop.f32.mrb[49].mxu0 }
0x1005   : > { %v8187_v47 = vadd.f32 %v8186_v45, %v8185_v44  ;;  %v8209_v31 = vadd.f32 %v8208_v46, %v8207_v4  ;;  %v8188_v48 = vpop.f32.mrb[46].mxu1  ;;  %v8210_v50 = vpop.f32.mrb[50].mxu0  ;;  %v7563_v45 = vld [vmem:[%s10482_s29 + $0x1] ss:$0 sm:$0xff] }
0x1006   : > { %v8189_v51 = vpop.f32.mrb[47].mxu1  ;;  %v8211_v52 = vpop.f32.mrb[51].mxu0 }
0x1007   : > { %v3825_v53 = vadd.f32 %v8187_v47, %v3785_v3 }
0x1009   : > { %v3865_v57 = vadd.f32 %v8209_v31, %v3825_v53 }
0x1023   : > { %v8229_v58 = vpop.f32.mrb[48].mxu1 }
0x1024   : > { %v8251_v59 = vpop.f32.mrb[52].mxu0  ;;  %v8230_v61 = vpop.f32.mrb[49].mxu1 }
0x1025   : > { %v8231_v62 = vadd.f32 %v8230_v61, %v8229_v58  ;;  %v8252_v1 = vpop.f32.mrb[53].mxu0  ;;  %v8232_v6 = vpop.f32.mrb[50].mxu1 }
0x1026   : > { %v8253_v36 = vadd.f32 %v8252_v1, %v8251_v59  ;;  %v8254_v7 = vpop.f32.mrb[54].mxu0  ;;  %v8233_v8 = vpop.f32.mrb[51].mxu1 }
0x1027   : > { %v3905_v9 = vadd.f32 %v8231_v62, %v3865_v57  ;;  %v8255_v10 = vpop.f32.mrb[55].mxu0 }
0x1029   : > { %v3945_v13 = vadd.f32 %v8253_v36, %v3905_v9 }
0x1043   : > { %v8273_v14 = vpop.f32.mrb[52].mxu1 }
0x1044   : > { %v8295_v15 = vpop.f32.mrb[56].mxu0  ;;  %v8274_v16 = vpop.f32.mrb[53].mxu1 }
0x1045   : > { %v8275_v17 = vadd.f32 %v8274_v16, %v8273_v14  ;;  %v8296_v18 = vpop.f32.mrb[57].mxu0  ;;  %v8276_v19 = vpop.f32.mrb[54].mxu1 }
0x1046   : > { %v8297_v39 = vadd.f32 %v8296_v18, %v8295_v15  ;;  %v8298_v20 = vpop.f32.mrb[58].mxu0  ;;  %v8277_v23 = vpop.f32.mrb[55].mxu1 }
0x1047   : > { %v3985_v54 = vadd.f32 %v8275_v17, %v3945_v13  ;;  %v8299_v24 = vpop.f32.mrb[59].mxu0 }
0x1049   : > { %v4025_v25 = vadd.f32 %v8297_v39, %v3985_v54 }
0x104b   : > { %v4032_v26 = vadd.f32 %v4025_v25, %v9642_v22 }
0x104d   : > { %v4033_v27 = vsel %vm1211_vm1, %v4032_v26, 0.0 }
0x104e   : > { %4034 = vadd.xlane.f32.xlu1 %v4033_v27 }
0x10db   : > { %v4035_v63 = vpop.xlane.xlu1 %4034 }
0x10dc   : > { %v4036_v2 = vmul.f32 0.03125, %v4035_v63 }
0x10de   : > { %v4037_v28 = vsub.f32 %v4032_v26, %v4036_v2 }
0x10e0   : > { %v4038_v29 = vmul.f32 %v4037_v28, %v4037_v28 }
0x10e2   : > { %v4039_v30 = vsel %vm1211_vm1, %v4038_v29, 0.0 }
0x10e3   : > { %4040 = vadd.xlane.f32.xlu0 %v4039_v30 }
0x1170   : > { %v4041_v22 = vpop.xlane.xlu0 %4040 }
0x1171   : > { %v4042_v42 = vmul.f32 0.03125, %v4041_v22 }
0x1173   : > { %v4043_v12 = vadd.f32 1e-05, %v4042_v42 }
0x1175   : > { %9059 = vrsqrt.f32 %v4043_v12 }
0x117f   : > { %v9060_v33 = vpop.eup %9059 }
0x1180   : > { %v4045_v34 = vmul.f32 %v9060_v33, %v4037_v28 }
0x1182   : > { %v4052_v3 = vmul.f32 %v7556_v43, %v4045_v34  ;;  %v8903_v43 = vld [vmem:[%s10486_s10 + $0x10] sm:$0xff]  }
0x1184   : > { %v9942_v44 = vadd.f32 %v7557_v35, %v4052_v3 }
0x1186   : > { %v4060_v4 = vpack.c.bf16 %v9942_v44, %v9942_v44 }
0x1188   : > { %8601 = vmatmul.mubr.msk.bf16.vlgmr.msra.gmra.mrb[56].mxu1 %vm1211_vm1, %v4060_v4 }
0x1189   : > { %8612 = vmatprep.mubr.msk.bf16.mxu1 %vm9181_vm0, %v9180_v0 }
0x125b   : > { %v4123_v46 = vpop.f32.mrb[56].mxu1 }
0x125c   : > { %v4124_v47 = vadd.f32 %v7563_v45, %v4123_v46  ;;  %v8602_v31 = vpop.f32.mrb[57].mxu1  ;;  %v8904_v45 = vld [vmem:[%s10486_s10 + $0x18] sm:$0xff]  }
0x125d   : > { %v4126_v48 = vpop.f32.mrb[58].mxu1 }
0x125e   : > { %v4129_v50 = vpack.c.bf16 %v4124_v47, %v4124_v47  ;;  %v4137_v51 = vmul.f32 0.25, %v4124_v47  ;;  %v8603_v52 = vpop.f32.mrb[59].mxu1 }
0x1260   : > { %4143 = vrot.lane.b32.xlu1 %v4129_v50, %s10474_s19  ;;  %v4138_v53 = vpack.c.bf16 %v4137_v51, %v4137_v51 }
0x1264   : > { %4140 = vrot.lane.b32.xlu1 %v4138_v53, %s10474_s19 }
0x1268   : > { %4145 = vrot.lane.b32.xlu1 %v4129_v50, %s10476_s11 }
0x12d2   : > { %v4144_v57 = vpop.permute.xlu1 %4143 }
0x12d3   : > { %4193 = vrot.lane.b32.xlu0 %v4144_v57, %s10476_s11 }
0x12d6   : > { %v4141_v58 = vpop.permute.xlu1 %4140 }
0x12da   : > { %v4146_v59 = vpop.permute.xlu1 %4145 }
0x12db   : > { %v4151_v61 = vsel %vm1271_vm2, %v4146_v59, 0 }
0x12dc   : > { %8605 = vmatpush3.bf16.xpose.msra.mxu0 %v4151_v61 }
0x12dd   : > { %8616 = vmatprep.subr.bf16.mxu0 %v9180_v0 }
0x12e3   : > { %8607 = vmatmul.mubr.msk.bf16.vlgmr.msra.gmra.mrb[60].mxu0 %vm1271_vm2, %v4138_v53  ;;  %v7576_v53 = vld [vmem:[%s10487_s13 + $0x1] ss:$0 sm:$0xff] }
0x12e4   : > { %8618 = vmatprep.mubr.msk.bf16.mxu0 %vm9181_vm0, %v9180_v0 }
0x1345   : > { %v4194_v62 = vpop.permute.xlu0 %4193 }
0x1346   : > { %v4199_v1 = vsel %vm1271_vm2, %v4194_v62, 0 }
0x1347   : > { %8611 = vmatpush3.bf16.xpose.msra.mxu1 %v4199_v1 }
0x1348   : > { %8622 = vmatprep.subr.bf16.mxu1 %v9180_v0 }
0x134e   : > { %8613 = vmatmul.mubr.msk.bf16.vlgmr.msra.gmra.mrb[60].mxu1 %vm1271_vm2, %v4141_v58 }
0x134f   : > { %8624 = vmatprep.mubr.msk.bf16.mxu1 %vm9181_vm0, %v9180_v0 }
0x13b6   : > { %v4187_v6 = vpop.f32.mrb[60].mxu0 }
0x13b7   : > { %v8608_v36 = vpop.f32.mrb[61].mxu0  ;;  %v4241_v7 = vsel %vm1366_vm3, %v4187_v6, -inf }
0x13b8   : > { %4242 = vmax.xlane.f32.xlu1 %v4241_v7  ;;  %v4190_v8 = vpop.f32.mrb[62].mxu0 }
0x13b9   : > { %v8609_v9 = vpop.f32.mrb[63].mxu0 }
0x1421   : > { %v4235_v10 = vpop.f32.mrb[60].mxu1 }
0x1422   : > { %v8614_v13 = vpop.f32.mrb[61].mxu1  ;;  %v4244_v14 = vsel %vm1366_vm3, %v4235_v10, -inf }
0x1423   : > { %4245 = vmax.xlane.f32.xlu0 %v4244_v14  ;;  %v4238_v15 = vpop.f32.mrb[62].mxu1  ;;  %v8905_v13 = vld [vmem:[%s9494_s6 + $0x10] sm:$0xff]   ;;  %v8906_v14 = vld [vmem:[%s9494_s6 + $0x18] sm:$0xff]  }
0x1424   : > { %v8615_v16 = vpop.f32.mrb[63].mxu1  ;;  %v8908_v15 = vld [vmem:[%s9509_s1 + $0x18] sm:$0xff]  }
0x1445   : > { %v4243_v17 = vpop.xlane.xlu1 %4242 }
0x1446   : > { %v4247_v18 = vsub.f32 %v4187_v6, %v4243_v17 }
0x1448   : > { %v4249_v19 = vmul.f32 1.442695, %v4247_v18 }
0x144a   : > { %9061 = vpow2.f32 %v4249_v19 }
0x1454   : > { %v9062_v39 = vpop.eup %9061 }
0x1455   : > { %v4253_v20 = vsel %vm1366_vm3, %v9062_v39, 0.0 }
0x1456   : > { %4254 = vadd.xlane.f32.xlu1 %v4253_v20 }
0x1467   : > { %4265 = vrot.lane.b32.xlu1 %v4129_v50, %s10485_s9 }
0x14b0   : > { %v4246_v23 = vpop.xlane.xlu0 %4245 }
0x14b1   : > { %v4248_v54 = vsub.f32 %v4235_v10, %v4246_v23 }
0x14b3   : > { %v4251_v24 = vmul.f32 1.442695, %v4248_v54 }
0x14b5   : > { %9063 = vpow2.f32 %v4251_v24 }
0x14bf   : > { %v9064_v25 = vpop.eup %9063 }
0x14c0   : > { %v4256_v26 = vsel %vm1366_vm3, %v9064_v25, 0.0 }
0x14c1   : > { %4257 = vadd.xlane.f32.xlu0 %v4256_v26 }
0x14d7   : > { %4313 = vrot.lane.b32.xlu0 %v4144_v57, %s10485_s9 }
0x14e3   : > { %v4255_v27 = vpop.xlane.xlu1 %4254 }
0x14e4   : > { %9065 = vrcp.f32 %v4255_v27 }
0x14e7   : > { %v4266_v63 = vpop.permute.xlu1 %4265 }
0x14e8   : > { %v4271_v2 = vsel %vm1396_vm4, %v4266_v63, 0 }
0x14e9   : > { %8617 = vmatpush3.bf16.msra.mxu0 %v4271_v2 }
0x14ea   : > { %8628 = vmatprep.subr.bf16.mxu0 %v9180_v0 }
0x14ee   : > { %v9066_v28 = vpop.eup %9065 }
0x14ef   : > { %v4260_v29 = vmul.f32 %v9066_v28, %v9062_v39  ;;  %v7582_v39 = vld [vmem:[%s9528_s0 + $0x1] ss:$0 sm:$0xff] }
0x14f1   : > { %v4263_v30 = vpack.c.bf16 %v4260_v29, %v4260_v29 }
0x14f3   : > { %8619 = vmatmul.mubr.msk.bf16.vlgmr.msra.gmra.mrb[64].mxu0 %vm1366_vm3, %v4263_v30 }
0x14f4   : > { %8632 = vmatprep.mubr.msk.bf16.mxu0 %vm9181_vm0, %v9180_v0  ;;  %8629 = vmatpush3.bf16.msra.mxu0 %v8903_v43 }
0x14f5   : > { %8630 = vmatprep.subr.bf16.mxu0 %v9180_v0 }
0x14f8   : > { %8631 = vmatpush3.bf16.msra.mxu0 %v8904_v45 }
0x14f9   : > { %8644 = vmatprep.subr.bf16.mxu0 %v9180_v0 }
0x154e   : > { %v4258_v32 = vpop.xlane.xlu0 %4257 }
0x154f   : > { %9067 = vrcp.f32 %v4258_v32 }
0x1552   : > { %v4314_v11 = vpop.permute.xlu0 %4313 }
0x1553   : > { %v4319_v22 = vsel %vm1396_vm4, %v4314_v11, 0 }
0x1554   : > { %8623 = vmatpush3.bf16.msra.mxu1 %v4319_v22 }
0x1555   : > { %8636 = vmatprep.subr.bf16.mxu1 %v9180_v0 }
0x1559   : > { %v9068_v42 = vpop.eup %9067 }
0x155a   : > { %v4262_v12 = vmul.f32 %v9068_v42, %v9064_v25  ;;  %v7598_v25 = vld [vmem:[%s9549_s25 + $0x1] ss:$0 sm:$0xff] }
0x155b   : > { %v7589_v42 = vld [vmem:[%s9561_s30 + $0x1] ss:$0 sm:$0xff] }
0x155c   : > { %v4264_v33 = vpack.c.bf16 %v4262_v12, %v4262_v12 }
0x155e   : > { %8625 = vmatmul.mubr.msk.bf16.vlgmr.msra.gmra.mrb[64].mxu1 %vm1366_vm3, %v4264_v33 }
0x155f   : > { %8640 = vmatprep.mubr.msk.bf16.mxu1 %vm9181_vm0, %v9180_v0 }
0x15c6   : > { %v4307_v34 = vpop.f32.mrb[64].mxu0 }
0x15c7   : > { %v8620_v35 = vpop.f32.mrb[65].mxu0 }
0x15c8   : > { %v4310_v3 = vpop.f32.mrb[66].mxu0 }
0x15c9   : > { %v8621_v4 = vpop.f32.mrb[67].mxu0 }
0x1631   : > { %v4355_v46 = vpop.f32.mrb[64].mxu1 }
0x1632   : > { %4362 = vrot.lane.b32.xlu0 %v4355_v46, %s10478_s28  ;;  %v8626_v47 = vpop.f32.mrb[65].mxu1 }
0x1633   : > { %v4358_v31 = vpop.f32.mrb[66].mxu1 }
0x1634   : > { %v8627_v48 = vpop.f32.mrb[67].mxu1 }
0x16a4   : > { %v4363_v50 = vpop.permute.xlu0 %4362 }
0x16a5   : > { %v4365_v51 = vsel %vm1271_vm2, %v4307_v34, %v4363_v50 }
0x16a6   : > { %v4366_v52 = vpack.c.bf16 %v4365_v51, %v4365_v51 }
0x16a8   : > { %8633 = vmatmul.mubr.msk.bf16.vlgmr.msra.gmra.mrb[68].mxu0 %vm1211_vm1, %v4366_v52 }
0x16a9   : > { %8648 = vmatprep.mubr.msk.bf16.mxu0 %vm9181_vm0, %v9180_v0  ;;  %8645 = vmatpush3.bf16.msra.mxu0 %v8905_v13 }
0x16aa   : > { %8646 = vmatprep.subr.bf16.mxu0 %v9180_v0 }
0x16ad   : > { %8647 = vmatpush3.bf16.msra.mxu0 %v8906_v14 }
0x16ae   : > { %8658 = vmatprep.subr.bf16.mxu0 %v9180_v0 }
0x16b0   : > { %8649 = vmatmul.mubr.msk.bf16.vlgmr.msra.gmra.mrb[72].mxu0 %vm1211_vm1, %v9515_v21  ;;  %v7583_v21 = vld [vmem:[%s9534_s7 + $0x1] ss:$0 sm:$0xff] }
0x16b1   : > { %8660 = vmatprep.mubr.msk.bf16.mxu0 %vm9181_vm0, %v9180_v0 }
0x177b   : > { %v4422_v57 = vpop.f32.mrb[68].mxu0 }
0x177c   : > { %v4423_v58 = vadd.f32 %v7576_v53, %v4422_v57  ;;  %v8634_v59 = vpop.f32.mrb[69].mxu0 }
0x177d   : > { %v4425_v61 = vpop.f32.mrb[70].mxu0 }
0x177e   : > { %v8635_v62 = vpop.f32.mrb[71].mxu0  ;;  %v4432_v1 = vadd.f32 %v4423_v58, %v9942_v44  ;;  %v8907_v44 = vld [vmem:[%s9509_s1 + $0x10] sm:$0xff]   ;;  %s8684_s1 = smul.u32 3, %s10489_s14 }
0x177f   : > { %8637 = vmatpush3.bf16.msra.mxu1 %v8907_v44 }
0x1780   : > { %v4433_v6 = vsel %vm1211_vm1, %v4432_v1, 0.0  ;;  %8638 = vmatprep.subr.bf16.mxu1 %v9180_v0  ;;  %s6958_s6 = sadd.s32 %s10490_s15, %s8684_s1 }
0x1781   : > { %4434 = vadd.xlane.f32.xlu1 %v4433_v6  ;;  %s8084_s7 = sshll.u32 %s6958_s6, 7 }
0x1783   : > { %8639 = vmatpush3.bf16.msra.mxu1 %v8908_v15  ;;  %v4588_v26 = vpop.f32.mrb[72].mxu0 }
0x1784   : > { %8652 = vmatprep.subr.bf16.mxu1 %v9180_v0  ;;  %v4589_v27 = vadd.f32 %v7598_v25, %v4588_v26  ;;  %v8650_v63 = vpop.f32.mrb[73].mxu0 }
0x1785   : > { %v4591_v2 = vpop.f32.mrb[74].mxu0 }
0x1786   : > { %v4592_v28 = vadd.f32 %v7598_v25, %v4591_v2  ;;  %v8651_v29 = vpop.f32.mrb[75].mxu0 }
0x1788   : > { %v4595_v30 = vpack.c.bf16 %v4592_v28, %v4589_v27 }
0x178a   : > { %v4615_v32 = vsel %vm1271_vm2, %v4595_v30, 0 }
0x180e   : > { %v4435_v36 = vpop.xlane.xlu1 %4434 }
0x180f   : > { %v4436_v7 = vmul.f32 0.03125, %v4435_v36 }
0x1811   : > { %v4437_v8 = vsub.f32 %v4432_v1, %v4436_v7 }
0x1813   : > { %v4438_v9 = vmul.f32 %v4437_v8, %v4437_v8 }
0x1815   : > { %v4439_v10 = vsel %vm1211_vm1, %v4438_v9, 0.0 }
0x1816   : > { %4440 = vadd.xlane.f32.xlu0 %v4439_v10 }
0x182c   : > { %4609 = vrot.lane.b32.xlu0 %v4595_v30, %s10474_s19 }
0x18a3   : > { %v4441_v16 = vpop.xlane.xlu0 %4440 }
0x18a4   : > { %v4442_v17 = vmul.f32 0.03125, %v4441_v16 }
0x18a6   : > { %v4443_v18 = vadd.f32 1e-05, %v4442_v17 }
0x18a7   : > { %v4610_v11 = vpop.permute.xlu0 %4609 }
0x18a8   : > { %9069 = vrsqrt.f32 %v4443_v18  ;;  %v4661_v22 = vsel %vm1271_vm2, %v4610_v11, 0 }
0x18a9   : > { %8659 = vmatpush3.bf16.xpose.msra.mxu0 %v4661_v22 }
0x18aa   : > { %8670 = vmatprep.subr.bf16.mxu0 %v9180_v0 }
0x18b2   : > { %v9070_v19 = vpop.eup %9069 }
0x18b3   : > { %v4445_v20 = vmul.f32 %v9070_v19, %v4437_v8 }
0x18b5   : > { %v4452_v23 = vmul.f32 %v7582_v39, %v4445_v20 }
0x18b7   : > { %v10007_v54 = vadd.f32 %v7583_v21, %v4452_v23  ;;  %v8909_v21 = vld [vmem:[%s9586_s3 + $0x10] sm:$0xff]   ;;  %v8910_v23 = vld [vmem:[%s9586_s3 + $0x18] sm:$0xff]   ;;  %s10492_s3 = sld [smem:[#allocation41_spill]] }
0x18b9   : > { %v4460_v24 = vpack.c.bf16 %v10007_v54, %v10007_v54 }
0x18bb   : > { %8641 = vmatmul.mubr.msk.bf16.vlgmr.msra.gmra.mrb[68].mxu1 %vm1211_vm1, %v4460_v24 }
0x18bc   : > { %8654 = vmatprep.mubr.msk.bf16.mxu1 %vm9181_vm0, %v9180_v0  ;;  %8653 = vmatpush3.bf16.xpose.msra.mxu1 %v4615_v32 }
0x18bd   : > { %8664 = vmatprep.subr.bf16.mxu1 %v9180_v0 }
0x198e   : > { %v4523_v12 = vpop.f32.mrb[68].mxu1 }
0x198f   : > { %v4524_v33 = vadd.f32 %v7589_v42, %v4523_v12  ;;  %v8642_v43 = vpop.f32.mrb[69].mxu1 }
0x1990   : > { %v4526_v34 = vpop.f32.mrb[70].mxu1 }
0x1991   : > { %v4603_v35 = vmul.f32 0.25, %v4524_v33  ;;  %v8643_v3 = vpop.f32.mrb[71].mxu1 }
0x1993   : > { %v4604_v4 = vpack.c.bf16 %v4603_v35, %v4603_v35 }
0x1995   : > { %4606 = vrot.lane.b32.xlu1 %v4604_v4, %s10474_s19  ;;  %8655 = vmatmul.mubr.msk.bf16.vlgmr.msra.gmra.mrb[72].mxu1 %vm1271_vm2, %v4604_v4 }
0x1996   : > { %8666 = vmatprep.mubr.msk.bf16.mxu1 %vm9181_vm0, %v9180_v0 }
0x1a07   : > { %v4607_v45 = vpop.permute.xlu1 %4606 }
0x1a08   : > { %8661 = vmatmul.mubr.msk.bf16.vlgmr.msra.gmra.mrb[76].mxu0 %vm1271_vm2, %v4607_v45 }
0x1a09   : > { %8672 = vmatprep.mubr.msk.bf16.mxu0 %vm9181_vm0, %v9180_v0 }
0x1a68   : > { %v4651_v46 = vpop.f32.mrb[72].mxu1 }
0x1a69   : > { %v8656_v47 = vpop.f32.mrb[73].mxu1  ;;  %v4703_v31 = vsel %vm1271_vm2, %v4651_v46, -inf }
0x1a6a   : > { %4704 = vmax.xlane.f32.xlu0 %v4703_v31  ;;  %v4654_v48 = vpop.f32.mrb[74].mxu1  ;;  %v7619_v31 = vld [vmem:[%s9608_s24 + $0x100] sm:$0xff] }
0x1a6b   : > { %v8657_v50 = vpop.f32.mrb[75].mxu1  ;;  %v7627_v48 = vld [vmem:[%s9608_s24 + $0x140] sm:$0xff] }
0x1a6c   : > { %v7620_v50 = vld [vmem:[%s9608_s24 + $0x108] sm:$0xff] }
0x1adb   : > { %v4697_v51 = vpop.f32.mrb[76].mxu0 }
0x1adc   : > { %v8662_v52 = vpop.f32.mrb[77].mxu0  ;;  %v4706_v53 = vsel %vm1271_vm2, %v4697_v51, -inf }
0x1add   : > { %4707 = vmax.xlane.f32.xlu1 %v4706_v53  ;;  %v4700_v57 = vpop.f32.mrb[78].mxu0  ;;  %v7628_v52 = vld [vmem:[%s9608_s24 + $0x148] sm:$0xff] }
0x1ade   : > { %v8663_v58 = vpop.f32.mrb[79].mxu0  ;;  %v7655_v53 = vcombine.low %v7620_v50, %v7628_v52  ;;  %v7656_v57 = vcombine.high %v7620_v50, %v7628_v52  ;;  %v7633_v50 = vld [vmem:[%s9608_s24 + $0x170] sm:$0xff]  ;;  %v7634_v52 = vld [vmem:[%s9608_s24 + $0x178] sm:$0xff] }
0x1adf   : > { %v7635_v58 = vld [vmem:[%s9608_s24 + $0x180] sm:$0xff] }
0x1aee   : > { %4773 = vrot.lane.b32.xlu1 %v4610_v11, %s10476_s11 }
0x1af7   : > { %v4705_v59 = vpop.xlane.xlu0 %4704 }
0x1af8   : > { %v4709_v61 = vsub.f32 %v4651_v46, %v4705_v59  ;;  %v7643_v59 = vld [vmem:[%s9608_s24 + $0x1c0] sm:$0xff] }
0x1afa   : > { %v4711_v6 = vmul.f32 1.442695, %v4709_v61  ;;  %v7636_v61 = vld [vmem:[%s9608_s24 + $0x188] sm:$0xff] }
0x1b6a   : > { %v4708_v62 = vpop.xlane.xlu1 %4707 }
0x1b6b   : > { %v4710_v1 = vsub.f32 %v4697_v51, %v4708_v62  ;;  %v7654_v51 = vcombine.high %v7619_v31, %v7627_v48  ;;  %v7670_v62 = vcombine.high %v7635_v58, %v7643_v59 }
0x1b6d   : > { %v4713_v36 = vmul.f32 1.442695, %v4710_v1  ;;  %v7644_v1 = vld [vmem:[%s9608_s24 + $0x1c8] sm:$0xff] }
0x1b6e   : > { %v4774_v7 = vpop.permute.xlu1 %4773 }
0x1b6f   : > { %9071 = vpow2.f32 %v4713_v36  ;;  %8671 = vmatpush3.bf16.msra.mxu0 %v4774_v7  ;;  %v7671_v36 = vcombine.low %v7636_v61, %v7644_v1  ;;  %v7672_v7 = vcombine.high %v7636_v61, %v7644_v1  ;;  %v7649_v61 = vld [vmem:[%s9608_s24 + $0x1f0] sm:$0xff]  ;;  %v7650_v1 = vld [vmem:[%s9608_s24 + $0x1f8] sm:$0xff] }
0x1b70   : > { %9073 = vpow2.f32 %v4711_v6  ;;  %5200 = vmatprep.subr.bf16.mxu0 %v7654_v51  ;;  %v7669_v6 = vcombine.low %v7635_v58, %v7643_v59  ;;  %v7626_v51 = vld [vmem:[%s9608_s24 + $0x138] sm:$0xff]  ;;  %v7641_v59 = vld [vmem:[%s9608_s24 + $0x1b0] sm:$0xff] }
0x1b71   : > { %v7668_v58 = vcombine.high %v7626_v51, %v7634_v52 }
0x1b79   : > { %v9072_v8 = vpop.eup %9071 }
0x1b7a   : > { %v4718_v9 = vsel %vm1271_vm2, %v9072_v8, 0.0  ;;  %v9074_v10 = vpop.eup %9073 }
0x1b7b   : > { %4719 = vadd.xlane.f32.xlu0 %v4718_v9  ;;  %v4715_v13 = vsel %vm1271_vm2, %v9074_v10, 0.0  ;;  %v7629_v9 = vld [vmem:[%s9608_s24 + $0x150] sm:$0xff] }
0x1b7f   : > { %4716 = vadd.xlane.f32.xlu0 %v4715_v13 }
0x1b95   : > { %4727 = vrot.lane.b32.xlu0 %v4595_v30, %s10476_s11 }
0x1c08   : > { %v4720_v14 = vpop.xlane.xlu0 %4719 }
0x1c09   : > { %9075 = vrcp.f32 %v4720_v14 }
0x1c0c   : > { %v4717_v44 = vpop.xlane.xlu0 %4716 }
0x1c0d   : > { %9077 = vrcp.f32 %v4717_v44  ;;  %v7630_v44 = vld [vmem:[%s9608_s24 + $0x158] sm:$0xff] }
0x1c10   : > { %v4728_v15 = vpop.permute.xlu0 %4727 }
0x1c11   : > { %8665 = vmatpush3.bf16.msra.mxu1 %v4728_v15 }
0x1c12   : > { %8676 = vmatprep.subr.bf16.mxu1 %v9180_v0 }
0x1c13   : > { %v9076_v16 = vpop.eup %9075 }
0x1c14   : > { %v4724_v17 = vmul.f32 %v9076_v16, %v9072_v8  ;;  %v7621_v8 = vld [vmem:[%s9608_s24 + $0x110] sm:$0xff] }
0x1c15   : > { %v7657_v13 = vcombine.low %v7621_v8, %v7629_v9  ;;  %v7658_v14 = vcombine.high %v7621_v8, %v7629_v9  ;;  %v7681_v9 = vcombine.low %v7641_v59, %v7649_v61 }
0x1c16   : > { %v4726_v18 = vpack.c.bf16 %v4724_v17, %v4724_v17 }
0x1c17   : > { %v9078_v19 = vpop.eup %9077 }
0x1c18   : > { %v4722_v39 = vmul.f32 %v9078_v19, %v9074_v10  ;;  %8673 = vmatmul.mubr.msk.bf16.vlgmr.msra.gmra.mrb[80].mxu0 %vm1271_vm2, %v4726_v18  ;;  %v7622_v10 = vld [vmem:[%s9608_s24 + $0x118] sm:$0xff] }
0x1c19   : > { %5232 = vmatprep.mubr.bf16.mxu0 %v9186_v5  ;;  %v7659_v15 = vcombine.low %v7622_v10, %v7630_v44  ;;  %v7660_v16 = vcombine.high %v7622_v10, %v7630_v44  ;;  %v8913_v44 = vld [vmem:[%s9410_s4 + $0x400] sm:$0xff]  }
0x1c1a   : > { %v4725_v20 = vpack.c.bf16 %v4722_v39, %v4722_v39 }
0x1c1c   : > { %8667 = vmatmul.mubr.msk.bf16.vlgmr.msra.gmra.mrb[76].mxu1 %vm1271_vm2, %v4725_v20  ;;  %v7617_v20 = vld [vmem:[%s9628_s5 + $0x1] ss:$0 sm:$0xff] }
0x1c1d   : > { %8680 = vmatprep.mubr.msk.bf16.mxu1 %vm9181_vm0, %v9180_v0  ;;  %8677 = vmatpush3.bf16.msra.mxu1 %v8909_v21 }
0x1c1e   : > { %8678 = vmatprep.subr.bf16.mxu1 %v9180_v0  ;;  %v7611_v0 = vld [vmem:[%s9598_s26 + $0x1] ss:$0 sm:$0xff] }
0x1c21   : > { %8679 = vmatpush3.bf16.msra.mxu1 %v8910_v23  ;;  %v7618_v23 = vld [vmem:[%s9634_s8 + $0x1] ss:$0 sm:$0xff]  ;;  %s10488_s8 = sld [smem:[#allocation6_spill]] }
0x1c22   : > { %5241 = vmatprep.subr.bf16.mxu1 %v7656_v57 }
0x1ceb   : > { %v4813_v24 = vpop.f32.mrb[80].mxu0 }
0x1cec   : > { %4820 = vrot.lane.b32.xlu1 %v4813_v24, %s10478_s28  ;;  %v8674_v25 = vpop.f32.mrb[81].mxu0  ;;  %s10315_s28 = scalar_lea.hbm %s10492_s3, %s8084_s7 }
0x1ced   : > { %v4816_v26 = vpop.f32.mrb[82].mxu0  ;;  %v7637_v25 = vld [vmem:[%s9608_s24 + $0x190] sm:$0xff] }
0x1cee   : > { %v8675_v27 = vpop.f32.mrb[83].mxu0  ;;  %v7645_v26 = vld [vmem:[%s9608_s24 + $0x1d0] sm:$0xff] }
0x1cef   : > { %v4767_v63 = vpop.f32.mrb[76].mxu1  ;;  %v7638_v27 = vld [vmem:[%s9608_s24 + $0x198] sm:$0xff] }
0x1cf0   : > { %v8668_v2 = vpop.f32.mrb[77].mxu1 }
0x1cf1   : > { %v4770_v28 = vpop.f32.mrb[78].mxu1 }
0x1cf2   : > { %v8669_v29 = vpop.f32.mrb[79].mxu1 }
0x1cf3   : > { %v7674_v29 = vcombine.high %v7637_v25, %v7645_v26 }
0x1d5e   : > { %v4821_v30 = vpop.permute.xlu1 %4820 }
0x1d5f   : > { %v4823_v32 = vsel %vm1271_vm2, %v4767_v63, %v4821_v30  ;;  %v7646_v63 = vld [vmem:[%s9608_s24 + $0x1d8] sm:$0xff] }
0x1d60   : > { %v4824_v11 = vpack.c.bf16 %v4823_v32, %v4823_v32  ;;  %v7676_v30 = vcombine.high %v7638_v27, %v7646_v63  ;;  %v7623_v32 = vld [vmem:[%s9608_s24 + $0x120] sm:$0xff] }
0x1d62   : > { %8681 = vmatmul.mubr.msk.bf16.vlgmr.msra.gmra.mrb[80].mxu1 %vm1211_vm1, %v4824_v11  ;;  %v7631_v11 = vld [vmem:[%s9608_s24 + $0x160] sm:$0xff] }
0x1d63   : > { %5273 = vmatprep.mubr.bf16.mxu1 %v9186_v5  ;;  %5242 = vmatpush1.bf16.msra.mxu1 %v7655_v53 }
0x1d64   : > { %5243 = vmatprep.subr.bf16.mxu1 %v7672_v7  ;;  %v7682_v7 = vcombine.high %v7641_v59, %v7649_v61 }
0x1d67   : > { %5244 = vmatpush1.bf16.msra.mxu1 %v7671_v36  ;;  %v7667_v36 = vcombine.low %v7626_v51, %v7634_v52 }
0x1d68   : > { %5323 = vmatprep.subr.bf16.mxu1 %v7660_v16  ;;  %v8915_v16 = vld [vmem:[%s9410_s4 + $0x448] sm:$0xff]  }
0x1e35   : > { %v4880_v22 = vpop.f32.mrb[80].mxu1 }
0x1e36   : > { %v4881_v42 = vadd.f32 %v7611_v0, %v4880_v22  ;;  %v8682_v12 = vpop.f32.mrb[81].mxu1  ;;  %v7624_v0 = vld [vmem:[%s9608_s24 + $0x128] sm:$0xff] }
0x1e37   : > { %v4883_v33 = vpop.f32.mrb[82].mxu1  ;;  %v7632_v22 = vld [vmem:[%s9608_s24 + $0x168] sm:$0xff]  ;;  %v7675_v12 = vcombine.low %v7638_v27, %v7646_v63  ;;  %v8927_v27 = vld [vmem:[%s9410_s4 + $0x460] sm:$0xff]  }
0x1e38   : > { %v8683_v43 = vpop.f32.mrb[83].mxu1  ;;  %v4890_v34 = vadd.f32 %v4881_v42, %v10007_v54  ;;  %v7653_v54 = vcombine.low %v7619_v31, %v7627_v48  ;;  %v7673_v42 = vcombine.low %v7637_v25, %v7645_v26  ;;  %v7662_v33 = vcombine.high %v7623_v32, %v7631_v11  ;;  %v7625_v48 = vld [vmem:[%s9608_s24 + $0x130] sm:$0xff]  ;;  %v8925_v25 = vld [vmem:[%s9410_s4 + $0x418] sm:$0xff]   ;;  %v8928_v63 = vld [vmem:[%s9410_s4 + $0x4e0] sm:$0xff]  }
0x1e39   : > { %v7664_v43 = vcombine.high %v7624_v0, %v7632_v22  ;;  %v7666_v57 = vcombine.high %v7625_v48, %v7633_v50  ;;  %v8926_v26 = vld [vmem:[%s9410_s4 + $0x498] sm:$0xff]  }
0x1e3a   : > { %v4891_v35 = vsel %vm1211_vm1, %v4890_v34, 0.0  ;;  %5201 = vmatpush1.bf16.msra.mxu0 %v7653_v54 }
0x1e3b   : > { %4892 = vadd.xlane.f32.xlu1 %v4891_v35  ;;  %5202 = vmatprep.subr.bf16.mxu0 %v7670_v62  ;;  %v7647_v35 = vld [vmem:[%s9608_s24 + $0x1e0] sm:$0xff]  ;;  %v7642_v62 = vld [vmem:[%s9608_s24 + $0x1b8] sm:$0xff] }
0x1e3c   : > { %v7684_v8 = vcombine.high %v7642_v62, %v7650_v1  ;;  %v7683_v10 = vcombine.low %v7642_v62, %v7650_v1 }
0x1e3e   : > { %5203 = vmatpush1.bf16.msra.mxu0 %v7669_v6  ;;  %v7665_v6 = vcombine.low %v7625_v48, %v7633_v50 }
0x1e3f   : > { %5282 = vmatprep.subr.bf16.mxu0 %v7658_v14  ;;  %v8912_v14 = vld [vmem:[%s9410_s4 + $0x4c0] sm:$0xff]  }
0x1ec8   : > { %v4893_v3 = vpop.xlane.xlu1 %4892 }
0x1ec9   : > { %v4894_v4 = vmul.f32 0.03125, %v4893_v3  ;;  %v7640_v3 = vld [vmem:[%s9608_s24 + $0x1a8] sm:$0xff] }
0x1ecb   : > { %v4895_v45 = vsub.f32 %v4890_v34, %v4894_v4  ;;  %v7639_v34 = vld [vmem:[%s9608_s24 + $0x1a0] sm:$0xff]  ;;  %v7648_v4 = vld [vmem:[%s9608_s24 + $0x1e8] sm:$0xff]  ;;  %s9187_s24 = smov [#allocation2]  }
0x1ecc   : > { %v7680_v31 = vcombine.high %v7640_v3, %v7648_v4  ;;  %v7677_v54 = vcombine.low %v7639_v34, %v7647_v35  ;;  %v7679_v53 = vcombine.low %v7640_v3, %v7648_v4  ;;  %v8942_v3 = vld [vmem:[%s9410_s4 + $0x4b8] sm:$0xff]   ;;  %v8943_v4 = vld [vmem:[%s9410_s4 + $0x540] sm:$0xff]   ;;  %s9088_s5 = sshll.u32 %s9187_s24, 4  ;;  %s9089_s5 = int_to_ptr.vmem [resolvable:$false] %s9088_s5 }
0x1ecd   : > { %v4896_v46 = vmul.f32 %v4895_v45, %v4895_v45 }
0x1ecf   : > { %v4897_v47 = vsel %vm1211_vm1, %v4896_v46, 0.0  ;;  %v7663_v46 = vcombine.low %v7624_v0, %v7632_v22  ;;  %v8934_v0 = vld [vmem:[%s9410_s4 + $0x4a8] sm:$0xff]   ;;  %v8935_v22 = vld [vmem:[%s9410_s4 + $0x470] sm:$0xff]  }
0x1ed0   : > { %4898 = vadd.xlane.f32.xlu0 %v4897_v47  ;;  %v7678_v47 = vcombine.high %v7639_v34, %v7647_v35  ;;  %v8940_v34 = vld [vmem:[%s9410_s4 + $0x4f8] sm:$0xff]  }
0x1ed1   : > { %v8941_v35 = vld [vmem:[%s9410_s4 + $0x438] sm:$0xff]  }
0x1f5d   : > { %v4899_v17 = vpop.xlane.xlu0 %4898 }
0x1f5e   : > { %v4900_v18 = vmul.f32 0.03125, %v4899_v17  ;;  %v8916_v17 = vld [vmem:[%s9410_s4 + $0x4c8] sm:$0xff]  }
0x1f60   : > { %v4901_v19 = vadd.f32 1e-05, %v4900_v18  ;;  %v8918_v18 = vld [vmem:[%s9410_s4 + $0x488] sm:$0xff]  }
0x1f62   : > { %9079 = vrsqrt.f32 %v4901_v19  ;;  %v8919_v19 = vld [vmem:[%s9410_s4 + $0x450] sm:$0xff]  }
0x1f6c   : > { %v9080_v39 = vpop.eup %9079 }
0x1f6d   : > { %v4903_v21 = vmul.f32 %v9080_v39, %v4895_v45  ;;  %v7661_v45 = vcombine.low %v7623_v32, %v7631_v11  ;;  %v8920_v39 = vld [vmem:[%s9410_s4 + $0x4d0] sm:$0xff]   ;;  %v8932_v32 = vld [vmem:[%s9410_s4 + $0x4e8] sm:$0xff]  }
0x1f6e   : > { %v8933_v11 = vld [vmem:[%s9410_s4 + $0x428] sm:$0xff]  }
0x1f6f   : > { %v4910_v24 = vmul.f32 %v7617_v20, %v4903_v21  ;;  %v8921_v20 = vld [vmem:[%s9410_s4 + $0x410] sm:$0xff]  }
0x1f70   : > { %v8922_v21 = vld [vmem:[%s9410_s4 + $0x490] sm:$0xff]  }
0x1f71   : > { %v10069_v2 = vadd.f32 %v7618_v23, %v4910_v24  ;;  %v8923_v23 = vld [vmem:[%s9410_s4 + $0x458] sm:$0xff]  }
0x1f72   : > { %v8924_v24 = vld [vmem:[%s9410_s4 + $0x4d8] sm:$0xff]  }
0x1f73   : > { %v10073_v28 = vpack.c.bf16 %v10069_v2, %v10069_v2 }
0x1f75   : > { %7685 = vmatmul.mubr.msk.bf16.vlgmr.msra.gmra.mrb[84].mxu0 %vm1211_vm1, %v10073_v28  ;;  %7686 = vmatmul.mubr.msk.bf16.vlgmr.msra.gmra.mrb[84].mxu1 %vm1211_vm1, %v10073_v28 }
0x1f76   : > { %5283 = vmatpush1.bf16.msra.mxu0 %v7657_v13  ;;  %5324 = vmatpush1.bf16.msra.mxu1 %v7659_v15  ;;  %v8911_v13 = vld [vmem:[%s9410_s4 + $0x440] sm:$0xff]  }
0x1f77   : > { %5284 = vmatprep.subr.bf16.mxu0 %v7674_v29  ;;  %5325 = vmatprep.subr.bf16.mxu1 %v7676_v30  ;;  %v8914_v15 = vld [vmem:[%s9410_s4 + $0x480] sm:$0xff]   ;;  %v8931_v30 = vld [vmem:[%s9410_s4 + $0x468] sm:$0xff]  }
0x1f78   : > { %5314 = vmatprep.mubr.bf16.mxu0 %v9186_v5  ;;  %5355 = vmatprep.mubr.bf16.mxu1 %v9186_v5  ;;  %v8930_v29 = vld [vmem:[%s9410_s4 + $0x4a0] sm:$0xff]  }
0x1f7a   : > { %5285 = vmatpush1.bf16.msra.mxu0 %v7673_v42  ;;  %5326 = vmatpush1.bf16.msra.mxu1 %v7675_v12  ;;  %v8936_v42 = vld [vmem:[%s9410_s4 + $0x4f0] sm:$0xff]  }
0x1f7b   : > { %5364 = vmatprep.subr.bf16.mxu0 %v7662_v33  ;;  %5405 = vmatprep.subr.bf16.mxu1 %v7664_v43  ;;  %v8937_v12 = vld [vmem:[%s9410_s4 + $0x430] sm:$0xff]   ;;  %v8939_v43 = vld [vmem:[%s9410_s4 + $0x478] sm:$0xff]  }
0x1f7c   : > { %v8938_v33 = vld [vmem:[%s9410_s4 + $0x4b0] sm:$0xff]  }
0x1f7d   : > { %7687 = vmatmul.mubr.msk.bf16.vlgmr.msra.gmra.mrb[88].mxu0 %vm1211_vm1, %v10073_v28  ;;  %7688 = vmatmul.mubr.msk.bf16.vlgmr.msra.gmra.mrb[88].mxu1 %vm1211_vm1, %v10073_v28 }
0x1f7e   : > { %5365 = vmatpush1.bf16.msra.mxu0 %v7661_v45  ;;  %5406 = vmatpush1.bf16.msra.mxu1 %v7663_v46  ;;  %v8944_v45 = vld [vmem:[%s9410_s4 + $0x5c0] sm:$0xff]   ;;  %v10148_v46 = vld [vmem:[%s9726_s21 + $0x10] sm:$0xff] }
0x1f7f   : > { %5366 = vmatprep.subr.bf16.mxu0 %v7678_v47  ;;  %5407 = vmatprep.subr.bf16.mxu1 %v7680_v31  ;;  %v4960_v47 = vrot.slane %v10148_v46, %v9729_v37  ;;  %v4968_v31 = vrot.slane %v10148_v46, %v9732_v38  ;;  %v4964_v48 = vrot.slane %v10148_v46, %v9738_v40 }
0x1f80   : > { %5396 = vmatprep.mubr.bf16.mxu0 %v9186_v5  ;;  %5437 = vmatprep.mubr.bf16.mxu1 %v9186_v5  ;;  %v4972_v50 = vrot.slane %v10148_v46, %v9741_v41 }
0x1f82   : > { %5367 = vmatpush1.bf16.msra.mxu0 %v7677_v54  ;;  %5408 = vmatpush1.bf16.msra.mxu1 %v7679_v53 }
0x1f83   : > { %5446 = vmatprep.subr.bf16.mxu0 %v7666_v57  ;;  %5487 = vmatprep.subr.bf16.mxu1 %v7668_v58 }
0x1f85   : > { %7689 = vmatmul.mubr.msk.bf16.vlgmr.msra.gmra.mrb[92].mxu0 %vm1211_vm1, %v10073_v28  ;;  %7690 = vmatmul.mubr.msk.bf16.vlgmr.msra.gmra.mrb[92].mxu1 %vm1211_vm1, %v10073_v28 }
0x1f86   : > { %5447 = vmatpush1.bf16.msra.mxu0 %v7665_v6  ;;  %5488 = vmatpush1.bf16.msra.mxu1 %v7667_v36 }
0x1f87   : > { %5448 = vmatprep.subr.bf16.mxu0 %v7682_v7  ;;  %5489 = vmatprep.subr.bf16.mxu1 %v7684_v8 }
0x1f88   : > { %5478 = vmatprep.mubr.bf16.mxu0 %v9186_v5  ;;  %5519 = vmatprep.mubr.bf16.mxu1 %v9186_v5  ;;  %v8917_v5 = vld [vmem:[%s9410_s4 + $0x408] sm:$0xff]  }
0x1f8a   : > { %5449 = vmatpush1.bf16.msra.mxu0 %v7681_v9  ;;  %5490 = vmatpush1.bf16.msra.mxu1 %v7683_v10 }
0x1f8b   : > { %8332 = vmatprep.subr.bf16.mxu0 %v8911_v13  ;;  %8354 = vmatprep.subr.bf16.mxu1 %v8912_v14 }
0x1f8d   : > { %7691 = vmatmul.mubr.msk.bf16.vlgmr.msra.gmra.mrb[96].mxu0 %vm1211_vm1, %v10073_v28  ;;  %7692 = vmatmul.mubr.msk.bf16.vlgmr.msra.gmra.mrb[96].mxu1 %vm1211_vm1, %v10073_v28  ;;  %v8929_v28 = vld [vmem:[%s9410_s4 + $0x420] sm:$0xff]  }
0x1f8e   : > { %8333 = vmatpush3.bf16.msra.mxu0 %v8913_v44  ;;  %8355 = vmatpush3.bf16.msra.mxu1 %v8914_v15  ;;  %v4980_v44 = vrot.slane %v10148_v46, %v9752_v55  ;;  %v4988_v15 = vrot.slane %v10148_v46, %v9755_v56 }
0x1f8f   : > { %8334 = vmatprep.subr.bf16.mxu0 %v8915_v16  ;;  %8356 = vmatprep.subr.bf16.mxu1 %v8916_v17  ;;  %v8945_v16 = vld [vmem:[%s9410_s4 + $0x500] sm:$0xff]  }
0x1f90   : > { %v8946_v17 = vld [vmem:[%s9410_s4 + $0x580] sm:$0xff]  }
0x1f92   : > { %8335 = vmatpush3.bf16.msra.mxu0 %v8917_v5  ;;  %8357 = vmatpush3.bf16.msra.mxu1 %v8918_v18 }
0x1f93   : > { %8336 = vmatprep.subr.bf16.mxu0 %v8919_v19  ;;  %8358 = vmatprep.subr.bf16.mxu1 %v8920_v39  ;;  %v8947_v19 = vld [vmem:[%s9410_s4 + $0x548] sm:$0xff]  }
0x1f94   : > { %v8948_v39 = vld [vmem:[%s9410_s4 + $0x5c8] sm:$0xff]  }
0x1f96   : > { %8337 = vmatpush3.bf16.msra.mxu0 %v8921_v20  ;;  %8359 = vmatpush3.bf16.msra.mxu1 %v8922_v21 }
0x1f97   : > { %8338 = vmatprep.subr.bf16.mxu0 %v8923_v23  ;;  %8360 = vmatprep.subr.bf16.mxu1 %v8924_v24 }
0x1f9a   : > { %8339 = vmatpush3.bf16.msra.mxu0 %v8925_v25  ;;  %8361 = vmatpush3.bf16.msra.mxu1 %v8926_v26 }
0x1f9b   : > { %8340 = vmatprep.subr.bf16.mxu0 %v8927_v27  ;;  %8362 = vmatprep.subr.bf16.mxu1 %v8928_v63 }
0x1f9e   : > { %8341 = vmatpush3.bf16.msra.mxu0 %v8929_v28  ;;  %8363 = vmatpush3.bf16.msra.mxu1 %v8930_v29  ;;  %v8949_v28 = vld [vmem:[%s9410_s4 + $0x508] sm:$0xff]  }
0x1f9f   : > { %8342 = vmatprep.subr.bf16.mxu0 %v8931_v30  ;;  %8364 = vmatprep.subr.bf16.mxu1 %v8932_v32  ;;  %v8950_v29 = vld [vmem:[%s9410_s4 + $0x588] sm:$0xff]  }
0x1fa2   : > { %8343 = vmatpush3.bf16.msra.mxu0 %v8933_v11  ;;  %8365 = vmatpush3.bf16.msra.mxu1 %v8934_v0  ;;  %v8951_v11 = vld [vmem:[%s9410_s4 + $0x550] sm:$0xff]  }
0x1fa3   : > { %8344 = vmatprep.subr.bf16.mxu0 %v8935_v22  ;;  %8366 = vmatprep.subr.bf16.mxu1 %v8936_v42  ;;  %v8952_v0 = vld [vmem:[%s9410_s4 + $0x5d0] sm:$0xff]  }
0x1fa6   : > { %8345 = vmatpush3.bf16.msra.mxu0 %v8937_v12  ;;  %8367 = vmatpush3.bf16.msra.mxu1 %v8938_v33 }
0x1fa7   : > { %8346 = vmatprep.subr.bf16.mxu0 %v8939_v43  ;;  %8368 = vmatprep.subr.bf16.mxu1 %v8940_v34  ;;  %v8953_v43 = vld [vmem:[%s9410_s4 + $0x510] sm:$0xff]  }
0x1fa8   : > { %v8954_v34 = vld [vmem:[%s9410_s4 + $0x590] sm:$0xff]  }
0x1faa   : > { %8347 = vmatpush3.bf16.msra.mxu0 %v8941_v35  ;;  %8369 = vmatpush3.bf16.msra.mxu1 %v8942_v3  ;;  %v8955_v35 = vld [vmem:[%s9410_s4 + $0x558] sm:$0xff]  }
0x1fab   : > { %8376 = vmatprep.subr.bf16.mxu0 %v8943_v4  ;;  %8398 = vmatprep.subr.bf16.mxu1 %v8944_v45  ;;  %v8956_v3 = vld [vmem:[%s9410_s4 + $0x5d8] sm:$0xff]  }
0x2048   : > { %v5234_v51 = vpop.f32.mrb[84].mxu0  ;;  %v5275_v52 = vpop.f32.mrb[84].mxu1 }
0x2049   : > { %v5235_v54 = vadd.f32 %v5234_v51, %v4960_v47  ;;  %v5276_v53 = vadd.f32 %v5275_v52, %v4968_v31  ;;  %v5236_v57 = vpop.f32.mrb[85].mxu0  ;;  %v5277_v58 = vpop.f32.mrb[85].mxu1  ;;  %v8957_v51 = vld [vmem:[%s9410_s4 + $0x518] sm:$0xff]  }
0x204a   : > { %v5237_v59 = vadd.f32 %v5236_v57, %v4964_v48  ;;  %v5278_v61 = vadd.f32 %v5277_v58, %v4972_v50  ;;  %v5238_v62 = vpop.f32.mrb[86].mxu0  ;;  %v5279_v1 = vpop.f32.mrb[86].mxu1  ;;  %v8958_v52 = vld [vmem:[%s9410_s4 + $0x598] sm:$0xff]   ;;  %v8959_v57 = vld [vmem:[%s9410_s4 + $0x560] sm:$0xff]  }
0x204b   : > { %v5528_v6 = vmax.f32 %v5235_v54, 0.0  ;;  %v5530_v36 = vmax.f32 %v5276_v53, 0.0  ;;  %v5239_v7 = vpop.f32.mrb[87].mxu0  ;;  %v5280_v8 = vpop.f32.mrb[87].mxu1  ;;  %v8960_v58 = vld [vmem:[%s9410_s4 + $0x5e0] sm:$0xff]  }
0x204c   : > { %v5529_v9 = vmax.f32 %v5237_v59, 0.0  ;;  %v5531_v10 = vmax.f32 %v5278_v61, 0.0  ;;  %v10187_v59 = vld [vmem:[%s9726_s21 + $0x18] sm:$0xff]  ;;  %v8961_v62 = vld [vmem:[%s9410_s4 + $0x520] sm:$0xff]   ;;  %s9090_s21 = scalar_lea.vmem %s9089_s5, 256 }
0x204d   : > { %v5544_v5 = vpack.c.bf16 %v5528_v6, %v5528_v6  ;;  %v5546_v18 = vpack.c.bf16 %v5530_v36, %v5530_v36  ;;  %v5016_v61 = vrot.slane %v10187_v59, %v9784_v49  ;;  %v8962_v1 = vld [vmem:[%s9410_s4 + $0x5a0] sm:$0xff]   ;;  %v8963_v6 = vld [vmem:[%s9410_s4 + $0x568] sm:$0xff]  }
0x204e   : > { %v5545_v13 = vpack.c.bf16 %v5529_v9, %v5529_v9  ;;  %v5547_v14 = vpack.c.bf16 %v5531_v10, %v5531_v10  ;;  %v8964_v36 = vld [vmem:[%s9410_s4 + $0x5e8] sm:$0xff]  }
0x2050   : > { %v10166_v20 = vpop.f32.mrb[88].mxu0  ;;  %v10168_v21 = vpop.f32.mrb[88].mxu1  ;;  %6625 = vmatprep.mubr.bf16.mxu0 %v5545_v13  ;;  %6665 = vmatprep.mubr.bf16.mxu1 %v5547_v14 }
0x2051   : > { %v5318_v23 = vpop.f32.mrb[89].mxu0  ;;  %v5359_v24 = vpop.f32.mrb[89].mxu1  ;;  %6626 = vmatmul.mubr.bf16.vlgmr.msra.gmra.mrb[100].mxu0 %v5544_v5  ;;  %6666 = vmatmul.mubr.bf16.vlgmr.msra.gmra.mrb[100].mxu1 %v5546_v18  ;;  %v4984_v5 = vrot.slane %v10148_v46, %v9784_v49  ;;  %v8970_v49 = vld [vmem:[%s9410_s4 + $0x5b0] sm:$0xff]  }
0x2052   : > { %v5319_v25 = vadd.f32 %v5318_v23, %v4980_v44  ;;  %v5360_v26 = vadd.f32 %v5359_v24, %v4988_v15  ;;  %8377 = vmatpush3.bf16.msra.mxu0 %v8945_v16  ;;  %8399 = vmatpush3.bf16.msra.mxu1 %v8946_v17  ;;  %v5320_v27 = vpop.f32.mrb[90].mxu0  ;;  %v5361_v63 = vpop.f32.mrb[90].mxu1  ;;  %v8965_v15 = vld [vmem:[%s9410_s4 + $0x528] sm:$0xff]   ;;  %v4976_v17 = vrot.slane %v10148_v46, %v9796_v60  ;;  %v8968_v23 = vld [vmem:[%s9410_s4 + $0x5f0] sm:$0xff]  }
0x2053   : > { %v5321_v30 = vpop.f32.mrb[91].mxu0  ;;  %v5362_v32 = vpop.f32.mrb[91].mxu1  ;;  %8378 = vmatprep.subr.bf16.mxu0 %v8947_v19  ;;  %8400 = vmatprep.subr.bf16.mxu1 %v8948_v39  ;;  %v8966_v16 = vld [vmem:[%s9410_s4 + $0x5a8] sm:$0xff]   ;;  %v8967_v39 = vld [vmem:[%s9410_s4 + $0x570] sm:$0xff]   ;;  %v4996_v24 = vrot.slane %v10187_v59, %v9738_v40  ;;  %v5358_v27 = vadd.f32 %v10168_v21, %v4984_v5  ;;  %v8971_v63 = vld [vmem:[%s9410_s4 + $0x578] sm:$0xff]   ;;  %v5000_v5 = vrot.slane %v10187_v59, %v9732_v38 }
0x2054   : > { %v5533_v22 = vmax.f32 %v5319_v25, 0.0  ;;  %v5535_v42 = vmax.f32 %v5360_v26, 0.0  ;;  %v5004_v25 = vrot.slane %v10187_v59, %v9741_v41  ;;  %v8969_v26 = vld [vmem:[%s9410_s4 + $0x530] sm:$0xff]   ;;  %v5317_v46 = vadd.f32 %v10166_v20, %v4976_v17  ;;  %v8973_v41 = vld [vmem:[%s9410_s4 + $0x538] sm:$0xff]   ;;  %v8975_v20 = vld [vmem:[%s9410_s4 + $0x640] sm:$0xff]  }
0x2055   : > { %v8974_v30 = vld [vmem:[%s9410_s4 + $0x5b8] sm:$0xff]   ;;  %v8976_v21 = vld [vmem:[%s9410_s4 + $0x6c0] sm:$0xff]   ;;  %v8999_v17 = vld [vmem:[%s9410_s4 + $0x670] sm:$0xff]  }
0x2056   : > { %v5549_v12 = vpack.c.bf16 %v5533_v22, %v5533_v22  ;;  %v5551_v33 = vpack.c.bf16 %v5535_v42, %v5535_v42  ;;  %8379 = vmatpush3.bf16.msra.mxu0 %v8949_v28  ;;  %8401 = vmatpush3.bf16.msra.mxu1 %v8950_v29  ;;  %v8972_v28 = vld [vmem:[%s9410_s4 + $0x5f8] sm:$0xff]   ;;  %v5532_v32 = vmax.f32 %v5317_v46, 0.0  ;;  %v8977_v42 = vld [vmem:[%s9410_s4 + $0x600] sm:$0xff]  }
0x2057   : > { %8380 = vmatprep.subr.bf16.mxu0 %v8951_v11  ;;  %8402 = vmatprep.subr.bf16.mxu1 %v8952_v0  ;;  %v5534_v11 = vmax.f32 %v5358_v27, 0.0  ;;  %v9003_v38 = vld [vmem:[%s9410_s4 + $0x678] sm:$0xff]   ;;  %v9007_v27 = vld [vmem:[%s9410_s4 + $0x740] sm:$0xff]  }
0x2058   : > { %v10178_v4 = vpop.f32.mrb[92].mxu0  ;;  %v10180_v45 = vpop.f32.mrb[92].mxu1  ;;  %6705 = vmatprep.mubr.bf16.mxu0 %v5549_v12  ;;  %6745 = vmatprep.mubr.bf16.mxu1 %v5551_v33  ;;  %v5548_v12 = vpack.c.bf16 %v5532_v32, %v5532_v32 }
0x2059   : > { %v5400_v47 = vpop.f32.mrb[93].mxu0  ;;  %v5441_v31 = vpop.f32.mrb[93].mxu1  ;;  %v5550_v33 = vpack.c.bf16 %v5534_v11, %v5534_v11  ;;  %v9012_v11 = vld [vmem:[%s9410_s4 + $0x7c8] sm:$0xff]  }
0x205a   : > { %8381 = vmatpush3.bf16.msra.mxu0 %v8953_v43  ;;  %8403 = vmatpush3.bf16.msra.mxu1 %v8954_v34  ;;  %v5402_v48 = vpop.f32.mrb[94].mxu0  ;;  %v5443_v50 = vpop.f32.mrb[94].mxu1  ;;  %v5401_v40 = vadd.f32 %v5400_v47, %v4996_v24  ;;  %v5442_v29 = vadd.f32 %v5441_v31, %v5004_v25  ;;  %v8978_v43 = vld [vmem:[%s9410_s4 + $0x680] sm:$0xff]   ;;  %v8981_v31 = vld [vmem:[%s9410_s4 + $0x608] sm:$0xff]   ;;  %v9002_v24 = vld [vmem:[%s9410_s4 + $0x6b0] sm:$0xff]   ;;  %v5440_v25 = vadd.f32 %v10180_v45, %v5000_v5 }
0x205b   : > { %v5403_v54 = vpop.f32.mrb[95].mxu0  ;;  %v5444_v53 = vpop.f32.mrb[95].mxu1  ;;  %8382 = vmatprep.subr.bf16.mxu0 %v8955_v35  ;;  %8404 = vmatprep.subr.bf16.mxu1 %v8956_v3  ;;  %v8979_v35 = vld [vmem:[%s9410_s4 + $0x648] sm:$0xff]   ;;  %v8983_v50 = vld [vmem:[%s9410_s4 + $0x650] sm:$0xff]   ;;  %v9008_v45 = vld [vmem:[%s9410_s4 + $0x7c0] sm:$0xff]  }
0x205c   : > { %v5537_v0 = vmax.f32 %v5401_v40, 0.0  ;;  %v5539_v22 = vmax.f32 %v5442_v29, 0.0  ;;  %v8980_v3 = vld [vmem:[%s9410_s4 + $0x6c8] sm:$0xff]   ;;  %v8986_v54 = vld [vmem:[%s9410_s4 + $0x690] sm:$0xff]   ;;  %v8987_v53 = vld [vmem:[%s9410_s4 + $0x658] sm:$0xff]  }
0x205d   : > { %v8982_v48 = vld [vmem:[%s9410_s4 + $0x688] sm:$0xff]   ;;  %v7950_v5 = vld [vmem:[%s9918_s27 + $0x1] ss:$0 sm:$0xff] }
0x205e   : > { %8383 = vmatpush3.bf16.msra.mxu0 %v8957_v51  ;;  %8405 = vmatpush3.bf16.msra.mxu1 %v8958_v52  ;;  %v5553_v34 = vpack.c.bf16 %v5537_v0, %v5537_v0  ;;  %v5555_v47 = vpack.c.bf16 %v5539_v22, %v5539_v22  ;;  %v8984_v51 = vld [vmem:[%s9410_s4 + $0x6d0] sm:$0xff]   ;;  %v9014_v0 = vld [vmem:[%s9410_s4 + $0x788] sm:$0xff]  }
0x205f   : > { %8384 = vmatprep.subr.bf16.mxu0 %v8959_v57  ;;  %8406 = vmatprep.subr.bf16.mxu1 %v8960_v58  ;;  %v8985_v52 = vld [vmem:[%s9410_s4 + $0x610] sm:$0xff]   ;;  %v8988_v57 = vld [vmem:[%s9410_s4 + $0x6d8] sm:$0xff]  }
0x2060   : > { %v10195_v7 = vpop.f32.mrb[96].mxu0  ;;  %v5521_v8 = vpop.f32.mrb[96].mxu1  ;;  %v8989_v58 = vld [vmem:[%s9410_s4 + $0x618] sm:$0xff]   ;;  %v9015_v22 = vld [vmem:[%s9410_s4 + $0x750] sm:$0xff]  }
0x2061   : > { %v10197_v9 = vadd.f32 %v5521_v8, %v5016_v61  ;;  %v10199_v10 = vpop.f32.mrb[97].mxu0  ;;  %v10201_v13 = vpop.f32.mrb[97].mxu1  ;;  %v8990_v61 = vld [vmem:[%s9410_s4 + $0x698] sm:$0xff]   ;;  %v8995_v8 = vld [vmem:[%s9410_s4 + $0x668] sm:$0xff]  }
0x2062   : > { %8385 = vmatpush3.bf16.msra.mxu0 %v8961_v62  ;;  %8407 = vmatpush3.bf16.msra.mxu1 %v8962_v1  ;;  %v5484_v14 = vpop.f32.mrb[98].mxu0  ;;  %v5525_v44 = vpop.f32.mrb[98].mxu1  ;;  %v8991_v62 = vld [vmem:[%s9410_s4 + $0x660] sm:$0xff]  }
0x2063   : > { %v5485_v18 = vpop.f32.mrb[99].mxu0  ;;  %v5526_v19 = vpop.f32.mrb[99].mxu1  ;;  %8386 = vmatprep.subr.bf16.mxu0 %v8963_v6  ;;  %8408 = vmatprep.subr.bf16.mxu1 %v8964_v36  ;;  %v8992_v1 = vld [vmem:[%s9410_s4 + $0x6e0] sm:$0xff]   ;;  %v8996_v14 = vld [vmem:[%s9410_s4 + $0x6e8] sm:$0xff]  }
0x2064   : > { %v8993_v6 = vld [vmem:[%s9410_s4 + $0x620] sm:$0xff]   ;;  %v8997_v44 = vld [vmem:[%s9410_s4 + $0x628] sm:$0xff]   ;;  %v9000_v18 = vld [vmem:[%s9410_s4 + $0x6f0] sm:$0xff]   ;;  %v5012_v19 = vrot.slane %v10187_v59, %v9752_v55 }
0x2065   : > { %v8994_v36 = vld [vmem:[%s9410_s4 + $0x6a0] sm:$0xff]  }
0x2066   : > { %8387 = vmatpush3.bf16.msra.mxu0 %v8965_v15  ;;  %8409 = vmatpush3.bf16.msra.mxu1 %v8966_v16  ;;  %v4992_v15 = vrot.slane %v10187_v59, %v9729_v37  ;;  %v8998_v16 = vld [vmem:[%s9410_s4 + $0x6a8] sm:$0xff]   ;;  %v9001_v37 = vld [vmem:[%s9410_s4 + $0x630] sm:$0xff]   ;;  %v5483_v55 = vadd.f32 %v10199_v10, %v5012_v19  ;;  %v9009_v10 = vld [vmem:[%s9410_s4 + $0x700] sm:$0xff]  }
0x2067   : > { %8388 = vmatprep.subr.bf16.mxu0 %v8967_v39  ;;  %8410 = vmatprep.subr.bf16.mxu1 %v8968_v23  ;;  %v5020_v39 = vrot.slane %v10187_v59, %v9755_v56 }
0x2068   : > { %v5399_v23 = vadd.f32 %v10178_v4, %v4992_v15  ;;  %v9006_v4 = vld [vmem:[%s9410_s4 + $0x6b8] sm:$0xff]  }
0x2069   : > { %v5524_v56 = vadd.f32 %v10201_v13, %v5020_v39  ;;  %v9010_v13 = vld [vmem:[%s9410_s4 + $0x780] sm:$0xff]  }
0x206a   : > { %8389 = vmatpush3.bf16.msra.mxu0 %v8969_v26  ;;  %8411 = vmatpush3.bf16.msra.mxu1 %v8970_v49  ;;  %v9004_v26 = vld [vmem:[%s9410_s4 + $0x6f8] sm:$0xff]   ;;  %v5536_v46 = vmax.f32 %v5399_v23, 0.0 }
0x206b   : > { %8390 = vmatprep.subr.bf16.mxu0 %v8971_v63  ;;  %8412 = vmatprep.subr.bf16.mxu1 %v8972_v28  ;;  %v9005_v49 = vld [vmem:[%s9410_s4 + $0x638] sm:$0xff]   ;;  %v5538_v63 = vmax.f32 %v5440_v25, 0.0  ;;  %v5541_v28 = vmax.f32 %v5483_v55, 0.0  ;;  %v5543_v40 = vmax.f32 %v5524_v56, 0.0 }
0x206c   : > { %v5552_v29 = vpack.c.bf16 %v5536_v46, %v5536_v46 }
0x206d   : > { %v5557_v32 = vpack.c.bf16 %v5541_v28, %v5541_v28 }
0x206e   : > { %8391 = vmatpush3.bf16.msra.mxu0 %v8973_v41  ;;  %8413 = vmatpush3.bf16.msra.mxu1 %v8974_v30  ;;  %v5554_v41 = vpack.c.bf16 %v5538_v63, %v5538_v63  ;;  %v9011_v30 = vld [vmem:[%s9410_s4 + $0x748] sm:$0xff]  }
0x206f   : > { %8420 = vmatprep.subr.bf16.mxu0 %v8975_v20  ;;  %8442 = vmatprep.subr.bf16.mxu1 %v8976_v21  ;;  %v5559_v20 = vpack.c.bf16 %v5543_v40, %v5543_v40  ;;  %v9013_v21 = vld [vmem:[%s9410_s4 + $0x708] sm:$0xff]  }
0x2071   : > { %6706 = vmatmul.mubr.bf16.vlgmr.msra.gmra.mrb[104].mxu0 %v5548_v12  ;;  %6746 = vmatmul.mubr.bf16.vlgmr.msra.gmra.mrb[104].mxu1 %v5550_v33  ;;  %v9017_v12 = vld [vmem:[%s9410_s4 + $0x710] sm:$0xff]  }
0x2072   : > { %8421 = vmatpush3.bf16.msra.mxu0 %v8977_v42  ;;  %6785 = vmatprep.mubr.bf16.mxu0 %v5553_v34  ;;  %v9016_v42 = vld [vmem:[%s9410_s4 + $0x7d0] sm:$0xff]   ;;  %v9020_v34 = vld [vmem:[%s9410_s4 + $0x7d8] sm:$0xff]  }
0x2073   : > { %8443 = vmatpush3.bf16.msra.mxu1 %v8978_v43  ;;  %6825 = vmatprep.mubr.bf16.mxu1 %v5555_v47  ;;  %v9018_v33 = vld [vmem:[%s9410_s4 + $0x790] sm:$0xff]   ;;  %v9019_v43 = vld [vmem:[%s9410_s4 + $0x758] sm:$0xff]   ;;  %v9023_v47 = vld [vmem:[%s9410_s4 + $0x760] sm:$0xff]  }
0x2074   : > { %8422 = vmatprep.subr.bf16.mxu0 %v8979_v35  ;;  %8444 = vmatprep.subr.bf16.mxu1 %v8980_v3  ;;  %v9021_v35 = vld [vmem:[%s9410_s4 + $0x718] sm:$0xff]  }
0x2075   : > { %v9022_v3 = vld [vmem:[%s9410_s4 + $0x798] sm:$0xff]  }
0x2076   : > { %8423 = vmatpush3.bf16.msra.mxu0 %v8981_v31  ;;  %v9024_v31 = vld [vmem:[%s9410_s4 + $0x7e0] sm:$0xff]  }
0x2077   : > { %8445 = vmatpush3.bf16.msra.mxu1 %v8982_v48  ;;  %8424 = vmatprep.subr.bf16.mxu0 %v8983_v50  ;;  %v9025_v48 = vld [vmem:[%s9410_s4 + $0x720] sm:$0xff]  }
0x2078   : > { %8446 = vmatprep.subr.bf16.mxu1 %v8984_v51  ;;  %v9026_v50 = vld [vmem:[%s9410_s4 + $0x7a0] sm:$0xff]   ;;  %v9027_v51 = vld [vmem:[%s9410_s4 + $0x768] sm:$0xff]  }
0x207a   : > { %8425 = vmatpush3.bf16.msra.mxu0 %v8985_v52  ;;  %v9028_v52 = vld [vmem:[%s9410_s4 + $0x7e8] sm:$0xff]  }
0x207b   : > { %8447 = vmatpush3.bf16.msra.mxu1 %v8986_v54  ;;  %8426 = vmatprep.subr.bf16.mxu0 %v8987_v53  ;;  %v9029_v54 = vld [vmem:[%s9410_s4 + $0x728] sm:$0xff]   ;;  %v5008_v53 = vrot.slane %v10187_v59, %v9796_v60  ;;  %v9037_v60 = vld [vmem:[%s9410_s4 + $0x738] sm:$0xff]  }
0x207c   : > { %8448 = vmatprep.subr.bf16.mxu1 %v8988_v57  ;;  %v9030_v57 = vld [vmem:[%s9410_s4 + $0x7a8] sm:$0xff]  }
0x207e   : > { %8427 = vmatpush3.bf16.msra.mxu0 %v8989_v58  ;;  %v9031_v58 = vld [vmem:[%s9410_s4 + $0x770] sm:$0xff]  }
0x207f   : > { %8449 = vmatpush3.bf16.msra.mxu1 %v8990_v61  ;;  %8428 = vmatprep.subr.bf16.mxu0 %v8991_v62  ;;  %v9032_v61 = vld [vmem:[%s9410_s4 + $0x7f0] sm:$0xff]  }
0x2080   : > { %8450 = vmatprep.subr.bf16.mxu1 %v8992_v1  ;;  %v9033_v62 = vld [vmem:[%s9410_s4 + $0x730] sm:$0xff]   ;;  %v5481_v1 = vadd.f32 %v10195_v7, %v5008_v53 }
0x2082   : > { %8429 = vmatpush3.bf16.msra.mxu0 %v8993_v6  ;;  %v9034_v6 = vld [vmem:[%s9410_s4 + $0x7b0] sm:$0xff]   ;;  %v5540_v59 = vmax.f32 %v5481_v1, 0.0 }
0x2083   : > { %8451 = vmatpush3.bf16.msra.mxu1 %v8994_v36  ;;  %8430 = vmatprep.subr.bf16.mxu0 %v8995_v8  ;;  %v9035_v36 = vld [vmem:[%s9410_s4 + $0x778] sm:$0xff]  }
0x2084   : > { %8452 = vmatprep.subr.bf16.mxu1 %v8996_v14  ;;  %v9036_v8 = vld [vmem:[%s9410_s4 + $0x7f8] sm:$0xff]   ;;  %v5556_v15 = vpack.c.bf16 %v5540_v59, %v5540_v59 }
0x2085   : > { %v9038_v14 = vld [vmem:[%s9410_s4 + $0x7b8] sm:$0xff]   ;;  %s1061_s4 = sand.u32 1, %s10488_s8  }
0x2086   : > { %8431 = vmatpush3.bf16.msra.mxu0 %v8997_v44  ;;  %v5542_v44 = vmax.f32 %v10197_v9, 0.0  ;;  %s7321_s23 = sshll.u32 %s1061_s4, 3 }
0x2087   : > { %8453 = vmatpush3.bf16.msra.mxu1 %v8998_v16  ;;  %8432 = vmatprep.subr.bf16.mxu0 %v8999_v17  ;;  %s1063_s25 = scalar_lea.vmem [#allocation2], %s7321_s23 }
0x2088   : > { %8454 = vmatprep.subr.bf16.mxu1 %v9000_v18  ;;  %v5558_v7 = vpack.c.bf16 %v5542_v44, %v5542_v44  ;;  %s6962_s19 = sshll.u32 %s1063_s25, 4  ;;  %s10317_s19 = int_to_ptr.vmem [resolvable:$true] %s6962_s19 }
0x2089   : > { %s9084_s26 = scalar_lea.vmem %s10317_s19, 128  ;;  %p9091_p6 = scmp.lt.s32.totalorder %s10317_s19, %s9089_s5 }
0x208a   : > { %8433 = vmatpush3.bf16.msra.mxu0 %v9001_v37  ;;  %p9085_p2 = scmp.ne.s32.totalorder %s10317_s19, %s9084_s26  ;;  %p9092_p7 = scmp.lt.s32.totalorder %s9090_s21, %s9084_s26 }
0x208b   : > { %8455 = vmatpush3.bf16.msra.mxu1 %v9002_v24  ;;  %8434 = vmatprep.subr.bf16.mxu0 %v9003_v38 }
0x208c   : > { %8456 = vmatprep.subr.bf16.mxu1 %v9004_v26  ;;  %p9086_p4 = pnand %p9085_p2, %p9359_p3  ;;  %p9093_p9 = por %p9092_p7, %p9091_p6 }
0x208e   : > { %8435 = vmatpush3.bf16.msra.mxu0 %v9005_v49  ;;  %p9087_p5 = pneg %p9086_p4 }
0x208f   : > { %8457 = vmatpush3.bf16.msra.mxu1 %v9006_v4  ;;  %8464 = vmatprep.subr.bf16.mxu0 %v9007_v27 }
0x2090   : > { %8486 = vmatprep.subr.bf16.mxu1 %v9008_v45  ;;  %p9094_p10 = pnand %p9093_p9, %p9087_p5 }
0x2091   : > { %6786 = vmatmul.mubr.bf16.vlgmr.msra.gmra.mrb[108].mxu0 %v5552_v29 }
0x2092   : > { %6826 = vmatmul.mubr.bf16.vlgmr.msra.gmra.mrb[108].mxu1 %v5554_v41  ;;  %8465 = vmatpush3.bf16.msra.mxu0 %v9009_v10 }
0x2093   : > { %6865 = vmatprep.mubr.bf16.mxu0 %v5557_v32  ;;  %8487 = vmatpush3.bf16.msra.mxu1 %v9010_v13 }
0x2094   : > { %6905 = vmatprep.mubr.bf16.mxu1 %v5559_v20  ;;  %8466 = vmatprep.subr.bf16.mxu0 %v9011_v30 }
0x2095   : > { %8488 = vmatprep.subr.bf16.mxu1 %v9012_v11 }
0x2096   : > { %8467 = vmatpush3.bf16.msra.mxu0 %v9013_v21 }
0x2097   : > { %8489 = vmatpush3.bf16.msra.mxu1 %v9014_v0  ;;  %8468 = vmatprep.subr.bf16.mxu0 %v9015_v22 }
0x2098   : > { %8490 = vmatprep.subr.bf16.mxu1 %v9016_v42 }
0x209a   : > { %8469 = vmatpush3.bf16.msra.mxu0 %v9017_v12 }
0x209b   : > { %8491 = vmatpush3.bf16.msra.mxu1 %v9018_v33  ;;  %8470 = vmatprep.subr.bf16.mxu0 %v9019_v43 }
0x209c   : > { %8492 = vmatprep.subr.bf16.mxu1 %v9020_v34 }
0x209e   : > { %8471 = vmatpush3.bf16.msra.mxu0 %v9021_v35 }
0x209f   : > { %8493 = vmatpush3.bf16.msra.mxu1 %v9022_v3  ;;  %8472 = vmatprep.subr.bf16.mxu0 %v9023_v47 }
0x20a0   : > { %8494 = vmatprep.subr.bf16.mxu1 %v9024_v31 }
0x20a2   : > { %8473 = vmatpush3.bf16.msra.mxu0 %v9025_v48 }
0x20a3   : > { %8495 = vmatpush3.bf16.msra.mxu1 %v9026_v50  ;;  %8474 = vmatprep.subr.bf16.mxu0 %v9027_v51 }
0x20a4   : > { %8496 = vmatprep.subr.bf16.mxu1 %v9028_v52 }
0x20a6   : > { %8475 = vmatpush3.bf16.msra.mxu0 %v9029_v54 }
0x20a7   : > { %8497 = vmatpush3.bf16.msra.mxu1 %v9030_v57  ;;  %8476 = vmatprep.subr.bf16.mxu0 %v9031_v58 }
0x20a8   : > { %8498 = vmatprep.subr.bf16.mxu1 %v9032_v61 }
0x20aa   : > { %8477 = vmatpush3.bf16.msra.mxu0 %v9033_v62 }
0x20ab   : > { %8499 = vmatpush3.bf16.msra.mxu1 %v9034_v6  ;;  %8478 = vmatprep.subr.bf16.mxu0 %v9035_v36 }
0x20ac   : > { %8500 = vmatprep.subr.bf16.mxu1 %v9036_v8 }
0x20ae   : > { %8479 = vmatpush3.bf16.msra.mxu0 %v9037_v60 }
0x20af   : > { %8501 = vmatpush3.bf16.msra.mxu1 %v9038_v14  ;;  %v8081_v14 = vld [vmem:[%s9932_s12 + $0x1] ss:$0 sm:$0xff]  ;;  %s6947_s12 = scalar_lea.sflag [#allocation3], %s1061_s4 }
0x20b1   : > { %6866 = vmatmul.mubr.bf16.vlgmr.msra.gmra.mrb[112].mxu0 %v5556_v15  ;;  %v8082_v15 = vld [vmem:[%s9938_s2 + $0x1] ss:$0 sm:$0xff] }
0x20b2   : > { %6906 = vmatmul.mubr.bf16.vlgmr.msra.gmra.mrb[112].mxu1 %v5558_v7 }
0x2124   : > { %v8348_v16 = vpop.f32.mrb[100].mxu0  ;;  %v8370_v17 = vpop.f32.mrb[100].mxu1 }
0x2125   : > { %v8349_v18 = vpop.f32.mrb[101].mxu0  ;;  %v8371_v19 = vpop.f32.mrb[101].mxu1 }
0x2126   : > { %v8350_v39 = vadd.f32 %v8349_v18, %v8348_v16  ;;  %v8372_v37 = vadd.f32 %v8371_v19, %v8370_v17  ;;  %v8351_v23 = vpop.f32.mrb[102].mxu0  ;;  %v8373_v24 = vpop.f32.mrb[102].mxu1 }
0x2127   : > { %v8352_v38 = vpop.f32.mrb[103].mxu0  ;;  %v8374_v25 = vpop.f32.mrb[103].mxu1 }
0x2128   : > { %v6628_v26 = vadd.f32 %v8350_v39, %v7950_v5 }
0x212a   : > { %v6668_v9 = vadd.f32 %v8372_v37, %v6628_v26 }
0x2144   : > { %v8392_v55 = vpop.f32.mrb[104].mxu0  ;;  %v8414_v56 = vpop.f32.mrb[104].mxu1 }
0x2145   : > { %v8393_v49 = vpop.f32.mrb[105].mxu0  ;;  %v8415_v46 = vpop.f32.mrb[105].mxu1 }
0x2146   : > { %v8394_v4 = vadd.f32 %v8393_v49, %v8392_v55  ;;  %v8416_v27 = vadd.f32 %v8415_v46, %v8414_v56  ;;  %v8395_v63 = vpop.f32.mrb[106].mxu0  ;;  %v8417_v45 = vpop.f32.mrb[106].mxu1 }
0x2147   : > { %v8396_v28 = vpop.f32.mrb[107].mxu0  ;;  %v8418_v40 = vpop.f32.mrb[107].mxu1 }
0x2148   : > { %v6708_v10 = vadd.f32 %v8394_v4, %v6668_v9 }
0x214a   : > { %v6748_v29 = vadd.f32 %v8416_v27, %v6708_v10 }
0x2164   : > { %v8436_v13 = vpop.f32.mrb[108].mxu0 }
0x2165   : > { %v8458_v41 = vpop.f32.mrb[108].mxu1  ;;  %v8437_v30 = vpop.f32.mrb[109].mxu0 }
0x2166   : > { %v8438_v32 = vadd.f32 %v8437_v30, %v8436_v13  ;;  %v8459_v11 = vpop.f32.mrb[109].mxu1  ;;  %v8439_v20 = vpop.f32.mrb[110].mxu0 }
0x2167   : > { %v8460_v21 = vadd.f32 %v8459_v11, %v8458_v41  ;;  %v8461_v0 = vpop.f32.mrb[110].mxu1  ;;  %v8440_v22 = vpop.f32.mrb[111].mxu0 }
0x2168   : > { %v6788_v42 = vadd.f32 %v8438_v32, %v6748_v29  ;;  %v8462_v12 = vpop.f32.mrb[111].mxu1 }
0x216a   : > { %v6828_v33 = vadd.f32 %v8460_v21, %v6788_v42 }
0x2184   : > { %v8480_v43 = vpop.f32.mrb[112].mxu0 }
0x2185   : > { %v8502_v34 = vpop.f32.mrb[112].mxu1  ;;  %v8481_v35 = vpop.f32.mrb[113].mxu0 }
0x2186   : > { %v8482_v3 = vadd.f32 %v8481_v35, %v8480_v43  ;;  %v8503_v47 = vpop.f32.mrb[113].mxu1  ;;  %v8483_v31 = vpop.f32.mrb[114].mxu0 }
0x2187   : > { %v8504_v48 = vadd.f32 %v8503_v47, %v8502_v34  ;;  %v8505_v50 = vpop.f32.mrb[114].mxu1  ;;  %v8484_v51 = vpop.f32.mrb[115].mxu0 }
0x2188   : > { %v6868_v52 = vadd.f32 %v8482_v3, %v6828_v33  ;;  %v8506_v54 = vpop.f32.mrb[115].mxu1 }
0x218a   : > { %v6908_v53 = vadd.f32 %v8504_v48, %v6868_v52 }
0x218c   : > { %v6917_v57 = vadd.f32 %v6908_v53, %v10069_v2 }
0x218e   : > { %v6918_v58 = vsel %vm1211_vm1, %v6917_v57, 0.0 }
0x218f   : > { %6919 = vadd.xlane.f32.xlu1 %v6918_v58 }
0x221c   : > { %v6920_v61 = vpop.xlane.xlu1 %6919 }
0x221d   : > { %v6921_v62 = vmul.f32 0.03125, %v6920_v61 }
0x221f   : > { %v6922_v1 = vsub.f32 %v6917_v57, %v6921_v62 }
0x2221   : > { %v6923_v6 = vmul.f32 %v6922_v1, %v6922_v1 }
0x2223   : > { %v6924_v36 = vsel %vm1211_vm1, %v6923_v6, 0.0 }
0x2224   : > { %6925 = vadd.xlane.f32.xlu0 %v6924_v36 }
0x22b1   : > { %v6926_v8 = vpop.xlane.xlu0 %6925 }
0x22b2   : > { %v6927_v60 = vmul.f32 0.03125, %v6926_v8 }
0x22b4   : > { %v6928_v59 = vadd.f32 1e-05, %v6927_v60 }
0x22b6   : > { %9081 = vrsqrt.f32 %v6928_v59 }
0x22c0   : > { %v9082_v2 = vpop.eup %9081 }
0x22c1   : > { %v6930_v44 = vmul.f32 %v9082_v2, %v6922_v1 }
0x22c3   : > { %v6937_v7 = vmul.f32 %v8081_v14, %v6930_v44 }
0x22c5   : > { %v6944_v16 = vadd.f32 %v8082_v15, %v6937_v7 }
0x22c7   : > { %6945 = vst.msk [vmem:[%s1063_s25] sm:$0xff] %vm1211_vm1, %v6944_v16 }
0x22c8   : > { %9097 = shalt.err (!%p9094_p10)
}
0x22c9   : > { %s9098_s27 = scalar_lea.hbm %s10315_s28, 128  ;;  %s9102_s2 = scalar_lea.hbm %s10492_s3, 768 }
0x22ca   : > { %p9099_p11 = scmp.ne.s32.totalorder %s10315_s28, %s9098_s27  ;;  %p9103_p0 = scmp.lt.u32.totalorder %s10315_s28, %s10492_s3 }
0x22cb   : > { %p9104_p1 = scmp.lt.u32.totalorder %s9102_s2, %s9098_s27  ;;  %p9106_p4 = scmp.lt.u32.totalorder %s9098_s27, %s10315_s28 }
0x22cc   : > { %p9100_p12 = pnand %p9099_p11, %p9359_p3 }
0x22cd   : > { %p9105_p2 = por %p9104_p1, %p9103_p0 }
0x22ce   : > { %p9101_p13 = pneg %p9100_p12 }
0x22cf   : > { %p9107_p5 = por %p9106_p4, %p9105_p2 }
0x22d1   : > { %p9108_p6 = pnand %p9107_p5, %p9101_p13 }
0x22d3   : > { %9111 = shalt.err (!%p9108_p6)
}
0x22d4   : > { %8685 = dma.vmem_to_hbm [thread:$0]  (%p9359_p3), %s10317_s19, 128, %s10315_s28, %s6947_s12  }
0x22d5 PF: > { %s10493_s13 = sld [smem:[#allocation12_spill]]  ;;  %s10494_s8 = sld [smem:[#allocation5_spill]] }
0x22db   : > { %p8691_p7 = scmp.ge.s32.totalorder %s10493_s13, 2  ;;  %s6974_s15 = sand.u32 1, %s10494_s8  }
0x22dc   : > { %s6975_s4 = scalar_lea.sflag [#allocation3], %s6974_s15 }
0x22dd   : > { %p8688_p9 = pnand %p8691_p7, %p9368_p8 }
0x22df   : > { %9145 = dma.done.wait (!%p8688_p9), %s6975_s4, 128  }
0x22e0   : > { %9147 = vsyncadd (!%p8688_p9), %s6975_s4, 4294967168  ;;  %s36_s2 = sadd.s32 1, %s10493_s13   ;;  %s10496_s4 = sld [smem:[#allocation6_spill]] }
0x22e1   : > { %p33_p10 = scmp.ge.s32.totalorder %s36_s2, 8   ;;  %s10497_s30 = sld [smem:[#allocation7_spill]] }
0x22e2   : > { %s10498_s24 = sld [smem:[#allocation17_spill]]  ;;  %s10499_s25 = sld [smem:[#allocation10_spill]] }
0x22e3   : > { %s10500_s5 = sld [smem:[#allocation11_spill]]  ;;  %s10501_s1 = sld [smem:[#allocation13_spill]] }
0x22e4   : > { %s10502_s26 = sld [smem:[#allocation15_spill]]  ;;  %35 = sbr.rel (!%p33_p10) target bundleno = 26 (0x1a), region = 233 }
0x22eb   :  { %6980 = vsyncpa [#allocation3], 1 }
0x22ec   :  { %6982 = vsyncpa [#allocation3 + $0x1], 1 }

</bundles_post_ra>
